<compile_context>
chip_gen: v7x
topology: tpu7x:2x2x1
jax: 0.10.0
libtpu: 0.0.40
codegen_flags: <defaults>
</compile_context>

<pallas_src>
import numpy as np
import jax
import jax.numpy as jnp
from jax.experimental import pallas as pl
from jax.experimental.pallas import tpu as pltpu

EPS = 1e-5
K = 5        # conv kernel size
STRIDE = 2   # conv stride


# ----------------------------- Pallas kernel -------------------------------

def _dqn_kernel(x_ref,
                r1_ref, m1_ref, s1_ref,
                r2_ref, m2_ref, s2_ref,
                r3_ref, m3_ref, s3_ref,
                wh_ref, bh_ref,
                o_ref):
    """Whole DQN forward for ONE batch element. Intermediates stay in VMEM.

    x_ref : [H, W*Cin]                 channels-last, lane-dense input tile
    rX    : [5, OH, Hin]               one-hot row selection per kh tap
    mX    : [5, Win*Cin, OW*Cout]      Toeplitz weight (BN scale folded in)
    sX    : [1, OW*Cout]               folded conv-bias + BN shift
    wh    : [OH3, OW3*C3, outputs]     head weight, reordered for NHWC rows
    bh    : [1, outputs]
    o_ref : [1, 1, outputs]
    """

    def conv_bn_relu(a, r_ref, m_ref, s_ref):
        acc = None
        for kh in range(r_ref.shape[0]):
            p = jnp.dot(r_ref[kh], a, preferred_element_type=jnp.float32)
            t = jnp.dot(p, m_ref[kh], preferred_element_type=jnp.float32)
            acc = t if acc is None else acc + t
        return jnp.maximum(acc + s_ref[...], 0.0)

    a = x_ref[...]                                   # [40, 120]
    a = conv_bn_relu(a, r1_ref, m1_ref, s1_ref)      # [18, 18*16]
    a = conv_bn_relu(a, r2_ref, m2_ref, s2_ref)      # [7,  7*32]
    a = conv_bn_relu(a, r3_ref, m3_ref, s3_ref)      # [2,  2*32]

    out = bh_ref[...]                                # [1, outputs]
    for h in range(wh_ref.shape[0]):
        out = out + jnp.dot(a[h:h + 1, :], wh_ref[h],
                            preferred_element_type=jnp.float32)
    o_ref[0] = out


def dqn_forward(x_nchw, P):
    """x_nchw: [B, 3, H, W] -> [B, outputs]; one fused Pallas call, grid over B."""
    B, _, H, _ = x_nchw.shape
    # One cheap host-side layout change of the *input* only (NCHW -> [B*H, W*C]).
    x2d = jnp.transpose(x_nchw, (0, 2, 3, 1)).reshape(B * H, -1)
    wcin = x2d.shape[1]
    n_out = P["bh"].shape[1]

    weights = (P["r1"], P["m1"], P["s1"],
               P["r2"], P["m2"], P["s2"],
               P["r3"], P["m3"], P["s3"],
               P["wh"], P["bh"])

    in_specs = [pl.BlockSpec((H, wcin), lambda b: (b, 0))]
    # Weights: full-array blocks, constant index_map -> stay resident in VMEM.
    in_specs += [pl.BlockSpec(w.shape, lambda b, n=w.ndim: (0,) * n)
                 for w in weights]

    out = pl.pallas_call(
        _dqn_kernel,
        out_shape=jax.ShapeDtypeStruct((B, 1, n_out), jnp.float32),
        grid=(B,),
        in_specs=in_specs,
        out_specs=pl.BlockSpec((1, 1, n_out), lambda b: (b, 0, 0)),
        compiler_params=pltpu.CompilerParams(
            dimension_semantics=("parallel",)),
    )(x2d, *weights)
    return out.reshape(B, n_out)


dqn_forward = jax.jit(dqn_forward)


# ------------------------------- host glue ---------------------------------

def conv_size_out(size, kernel_size=K, stride=STRIDE):
    return (size - (kernel_size - 1) - 1) // stride + 1


def init_raw_params(key, outputs, h, w):
    """Deterministic synthetic parameters mirroring the PyTorch module shapes."""
    chans = [(3, 16), (16, 32), (32, 32)]
    raw = {}
    keys = jax.random.split(key, 32)
    ki = 0
    for i, (cin, cout) in enumerate(chans, start=1):
        raw[f"conv{i}_w"] = 0.05 * jax.random.normal(keys[ki], (cout, cin, K, K), jnp.float32); ki += 1
        raw[f"conv{i}_b"] = 0.05 * jax.random.normal(keys[ki], (cout,), jnp.float32); ki += 1
        raw[f"bn{i}_gamma"] = 1.0 + 0.1 * jax.random.normal(keys[ki], (cout,), jnp.float32); ki += 1
        raw[f"bn{i}_beta"] = 0.1 * jax.random.normal(keys[ki], (cout,), jnp.float32); ki += 1
        raw[f"bn{i}_mean"] = 0.1 * jax.random.normal(keys[ki], (cout,), jnp.float32); ki += 1
        raw[f"bn{i}_var"] = 1.0 + 0.1 * jnp.abs(jax.random.normal(keys[ki], (cout,), jnp.float32)); ki += 1
    convw = conv_size_out(conv_size_out(conv_size_out(w)))
    convh = conv_size_out(conv_size_out(conv_size_out(h)))
    lin_in = convw * convh * 32
    raw["head_w"] = 0.05 * jax.random.normal(keys[ki], (outputs, lin_in), jnp.float32); ki += 1
    raw["head_b"] = 0.05 * jax.random.normal(keys[ki], (outputs,), jnp.float32)
    return raw


def _make_row_select(h_in, oh):
    """R[kh]: [oh, h_in] one-hot picking input row 2*o + kh for output row o."""
    r = np.zeros((K, oh, h_in), np.float32)
    for kh in range(K):
        for o in range(oh):
            r[kh, o, STRIDE * o + kh] = 1.0
    return jnp.asarray(r)


def _make_col_weight(w_scaled, w_in, ow):
    """M[kh]: [w_in*cin, ow*cout] Toeplitz weight acting on the [W*C] lane axis.

    w_scaled: [cout, cin, K, K] (BN scale already folded per cout).
    M[kh][w*cin + ci, o*cout + co] = w_scaled[co, ci, kh, w - 2*o] when 0 <= w-2*o < K.
    """
    cout, cin = w_scaled.shape[:2]
    m = np.zeros((K, w_in * cin, ow * cout), np.float32)
    for kh in range(K):
        for o in range(ow):
            for kw in range(K):
                col = STRIDE * o + kw
                m[kh, col * cin:(col + 1) * cin, o * cout:(o + 1) * cout] = \
                    w_scaled[:, :, kh, kw].T
    return jnp.asarray(m)


def make_kernel_params(raw, h, w, outputs):
    """Lower conv+BN(eval)+ReLU stack and head to the fused kernel's operand set."""
    P = {}
    hin, win = h, w
    dims = []
    for i, cout in zip((1, 2, 3), (16, 32, 32)):
        oh, ow = conv_size_out(hin), conv_size_out(win)
        scale = raw[f"bn{i}_gamma"] / jnp.sqrt(raw[f"bn{i}_var"] + EPS)          # [cout]
        shift = raw[f"bn{i}_beta"] + (raw[f"conv{i}_b"] - raw[f"bn{i}_mean"]) * scale
        w_scaled = np.asarray(raw[f"conv{i}_w"] * scale[:, None, None, None])    # fold scale
        P[f"r{i}"] = _make_row_select(hin, oh)
        P[f"m{i}"] = _make_col_weight(w_scaled, win, ow)
        P[f"s{i}"] = jnp.tile(shift, ow).reshape(1, ow * cout)
        dims.append((oh, ow, cout))
        hin, win = oh, ow

    # Head: PyTorch flattens NCHW -> index c*(oh3*ow3) + hh*ow3 + ww.
    oh3, ow3, c3 = dims[-1]
    head_w4 = np.asarray(raw["head_w"]).reshape(outputs, c3, oh3, ow3)   # [O, c, h, w]
    wh = np.zeros((oh3, ow3 * c3, outputs), np.float32)
    for hh in range(oh3):
        # wh[hh][ww*c3 + c, o] = head_w[o, c, hh, ww]
        wh[hh] = head_w4[:, :, hh, :].transpose(2, 1, 0).reshape(ow3 * c3, outputs)
    P["wh"] = jnp.asarray(wh)
    P["bh"] = raw["head_b"].reshape(1, outputs)
    return P


def dqn_forward_ref(x, raw):
    """Pure-JAX (XLA) reference for correctness checking."""
    def conv(z, w, bias):
        y = jax.lax.conv_general_dilated(
            z, w, window_strides=(STRIDE, STRIDE), padding="VALID",
            dimension_numbers=("NCHW", "OIHW", "NCHW"))
        return y + bias[None, :, None, None]

    def bn(z, g, be, m, v):
        return (z - m[None, :, None, None]) / jnp.sqrt(v[None, :, None, None] + EPS) \
            * g[None, :, None, None] + be[None, :, None, None]

    out = x
    for i in (1, 2, 3):
        out = conv(out, raw[f"conv{i}_w"], raw[f"conv{i}_b"])
        out = bn(out, raw[f"bn{i}_gamma"], raw[f"bn{i}_beta"],
                 raw[f"bn{i}_mean"], raw[f"bn{i}_var"])
        out = jnp.maximum(out, 0.0)
    flat = out.reshape(out.shape[0], -1)
    return flat @ raw["head_w"].T + raw["head_b"]


if __name__ == "__main__":
    B, H, W, OUTPUTS = 2, 40, 40, 4

    key = jax.random.PRNGKey(0)
    k_in, k_params = jax.random.split(key)
    x = jax.random.normal(k_in, (B, 3, H, W), jnp.float32)

    raw = init_raw_params(k_params, OUTPUTS, H, W)
    params = make_kernel_params(raw, H, W, OUTPUTS)

    out = jax.block_until_ready(dqn_forward(x, params))
    ref = jax.block_until_ready(dqn_forward_ref(x, raw))

    assert out.shape == (B, OUTPUTS), out.shape
    assert jnp.allclose(out, ref, atol=1e-4, rtol=1e-4), \
        f"max abs err {float(jnp.max(jnp.abs(out - ref)))}"

    print("KERNEL_OK")
</pallas_src>

<mosaic_0001>
module attributes {stable_mosaic.version = 11 : i64} {
  func.func @_dqn_kernel(%arg0: i32, %arg1: memref<40x120xf32, #tpu.memory_space<vmem>>, %arg2: memref<5x18x40xf32, #tpu.memory_space<vmem>>, %arg3: memref<5x120x288xf32, #tpu.memory_space<vmem>>, %arg4: memref<1x288xf32, #tpu.memory_space<vmem>>, %arg5: memref<5x7x18xf32, #tpu.memory_space<vmem>>, %arg6: memref<5x288x224xf32, #tpu.memory_space<vmem>>, %arg7: memref<1x224xf32, #tpu.memory_space<vmem>>, %arg8: memref<5x2x7xf32, #tpu.memory_space<vmem>>, %arg9: memref<5x224x64xf32, #tpu.memory_space<vmem>>, %arg10: memref<1x64xf32, #tpu.memory_space<vmem>>, %arg11: memref<2x64x4xf32, #tpu.memory_space<vmem>>, %arg12: memref<1x4xf32, #tpu.memory_space<vmem>>, %arg13: memref<1x1x4xf32, #tpu.memory_space<vmem>>) attributes {dimension_semantics = [#tpu.dimension_semantics<parallel>], iteration_bounds = array<i64: 2>, scalar_prefetch = 0 : i64, scratch_operands = 0 : i64, tpu.core_type = #tpu.core_type<tc>, window_params = [{transform_indices = @transform_0, window_bounds = array<i64: 40, 120>}, {pipeline_mode = #tpu.pipeline_mode<synchronous>, transform_indices = @transform_1, window_bounds = array<i64: 5, 18, 40>}, {pipeline_mode = #tpu.pipeline_mode<synchronous>, transform_indices = @transform_2, window_bounds = array<i64: 5, 120, 288>}, {pipeline_mode = #tpu.pipeline_mode<synchronous>, transform_indices = @transform_3, window_bounds = array<i64: 1, 288>}, {pipeline_mode = #tpu.pipeline_mode<synchronous>, transform_indices = @transform_4, window_bounds = array<i64: 5, 7, 18>}, {pipeline_mode = #tpu.pipeline_mode<synchronous>, transform_indices = @transform_5, window_bounds = array<i64: 5, 288, 224>}, {pipeline_mode = #tpu.pipeline_mode<synchronous>, transform_indices = @transform_6, window_bounds = array<i64: 1, 224>}, {pipeline_mode = #tpu.pipeline_mode<synchronous>, transform_indices = @transform_7, window_bounds = array<i64: 5, 2, 7>}, {pipeline_mode = #tpu.pipeline_mode<synchronous>, transform_indices = @transform_8, window_bounds = array<i64: 5, 224, 64>}, {pipeline_mode = #tpu.pipeline_mode<synchronous>, transform_indices = @transform_9, window_bounds = array<i64: 1, 64>}, {pipeline_mode = #tpu.pipeline_mode<synchronous>, transform_indices = @transform_10, window_bounds = array<i64: 2, 64, 4>}, {pipeline_mode = #tpu.pipeline_mode<synchronous>, transform_indices = @transform_11, window_bounds = array<i64: 1, 4>}, {transform_indices = @transform_12, window_bounds = array<i64: 1, 1, 4>}]} {
    %c0 = arith.constant 0 : index
    %c0_0 = arith.constant 0 : index
    %0 = vector.load %arg1[%c0, %c0_0] : memref<40x120xf32, #tpu.memory_space<vmem>>, vector<40x120xf32>
    %c0_1 = arith.constant 0 : index
    %c0_2 = arith.constant 0 : index
    %c0_3 = arith.constant 0 : index
    %1 = vector.load %arg2[%c0_1, %c0_2, %c0_3] : memref<5x18x40xf32, #tpu.memory_space<vmem>>, vector<1x18x40xf32>
    %2 = vector.shape_cast %1 : vector<1x18x40xf32> to vector<18x40xf32>
    %cst = arith.constant dense<0.000000e+00> : vector<18x120xf32>
    %3 = tpu.matmul %2, %0, %cst {dimension_numbers = #tpu.dot_dimension_numbers<[1], [0], [0], [1], [0, 0, 1, 1], [], []>} : vector<18x40xf32>, vector<40x120xf32>, vector<18x120xf32> -> vector<18x120xf32>
    %c0_4 = arith.constant 0 : index
    %c0_5 = arith.constant 0 : index
    %c0_6 = arith.constant 0 : index
    %4 = vector.load %arg3[%c0_4, %c0_5, %c0_6] : memref<5x120x288xf32, #tpu.memory_space<vmem>>, vector<1x120x288xf32>
    %5 = vector.shape_cast %4 : vector<1x120x288xf32> to vector<120x288xf32>
    %cst_7 = arith.constant dense<0.000000e+00> : vector<18x288xf32>
    %6 = tpu.matmul %3, %5, %cst_7 {dimension_numbers = #tpu.dot_dimension_numbers<[1], [0], [0], [1], [0, 0, 1, 1], [], []>} : vector<18x120xf32>, vector<120x288xf32>, vector<18x288xf32> -> vector<18x288xf32>
    %c1 = arith.constant 1 : index
    %c0_8 = arith.constant 0 : index
    %c0_9 = arith.constant 0 : index
    %7 = vector.load %arg2[%c1, %c0_8, %c0_9] : memref<5x18x40xf32, #tpu.memory_space<vmem>>, vector<1x18x40xf32>
    %8 = vector.shape_cast %7 : vector<1x18x40xf32> to vector<18x40xf32>
    %cst_10 = arith.constant dense<0.000000e+00> : vector<18x120xf32>
    %9 = tpu.matmul %8, %0, %cst_10 {dimension_numbers = #tpu.dot_dimension_numbers<[1], [0], [0], [1], [0, 0, 1, 1], [], []>} : vector<18x40xf32>, vector<40x120xf32>, vector<18x120xf32> -> vector<18x120xf32>
    %c1_11 = arith.constant 1 : index
    %c0_12 = arith.constant 0 : index
    %c0_13 = arith.constant 0 : index
    %10 = vector.load %arg3[%c1_11, %c0_12, %c0_13] : memref<5x120x288xf32, #tpu.memory_space<vmem>>, vector<1x120x288xf32>
    %11 = vector.shape_cast %10 : vector<1x120x288xf32> to vector<120x288xf32>
    %cst_14 = arith.constant dense<0.000000e+00> : vector<18x288xf32>
    %12 = tpu.matmul %9, %11, %cst_14 {dimension_numbers = #tpu.dot_dimension_numbers<[1], [0], [0], [1], [0, 0, 1, 1], [], []>} : vector<18x120xf32>, vector<120x288xf32>, vector<18x288xf32> -> vector<18x288xf32>
    %13 = arith.addf %6, %12 : vector<18x288xf32>
    %c2 = arith.constant 2 : index
    %c0_15 = arith.constant 0 : index
    %c0_16 = arith.constant 0 : index
    %14 = vector.load %arg2[%c2, %c0_15, %c0_16] : memref<5x18x40xf32, #tpu.memory_space<vmem>>, vector<1x18x40xf32>
    %15 = vector.shape_cast %14 : vector<1x18x40xf32> to vector<18x40xf32>
    %cst_17 = arith.constant dense<0.000000e+00> : vector<18x120xf32>
    %16 = tpu.matmul %15, %0, %cst_17 {dimension_numbers = #tpu.dot_dimension_numbers<[1], [0], [0], [1], [0, 0, 1, 1], [], []>} : vector<18x40xf32>, vector<40x120xf32>, vector<18x120xf32> -> vector<18x120xf32>
    %c2_18 = arith.constant 2 : index
    %c0_19 = arith.constant 0 : index
    %c0_20 = arith.constant 0 : index
    %17 = vector.load %arg3[%c2_18, %c0_19, %c0_20] : memref<5x120x288xf32, #tpu.memory_space<vmem>>, vector<1x120x288xf32>
    %18 = vector.shape_cast %17 : vector<1x120x288xf32> to vector<120x288xf32>
    %cst_21 = arith.constant dense<0.000000e+00> : vector<18x288xf32>
    %19 = tpu.matmul %16, %18, %cst_21 {dimension_numbers = #tpu.dot_dimension_numbers<[1], [0], [0], [1], [0, 0, 1, 1], [], []>} : vector<18x120xf32>, vector<120x288xf32>, vector<18x288xf32> -> vector<18x288xf32>
    %20 = arith.addf %13, %19 : vector<18x288xf32>
    %c3 = arith.constant 3 : index
    %c0_22 = arith.constant 0 : index
    %c0_23 = arith.constant 0 : index
    %21 = vector.load %arg2[%c3, %c0_22, %c0_23] : memref<5x18x40xf32, #tpu.memory_space<vmem>>, vector<1x18x40xf32>
    %22 = vector.shape_cast %21 : vector<1x18x40xf32> to vector<18x40xf32>
    %cst_24 = arith.constant dense<0.000000e+00> : vector<18x120xf32>
    %23 = tpu.matmul %22, %0, %cst_24 {dimension_numbers = #tpu.dot_dimension_numbers<[1], [0], [0], [1], [0, 0, 1, 1], [], []>} : vector<18x40xf32>, vector<40x120xf32>, vector<18x120xf32> -> vector<18x120xf32>
    %c3_25 = arith.constant 3 : index
    %c0_26 = arith.constant 0 : index
    %c0_27 = arith.constant 0 : index
    %24 = vector.load %arg3[%c3_25, %c0_26, %c0_27] : memref<5x120x288xf32, #tpu.memory_space<vmem>>, vector<1x120x288xf32>
    %25 = vector.shape_cast %24 : vector<1x120x288xf32> to vector<120x288xf32>
    %cst_28 = arith.constant dense<0.000000e+00> : vector<18x288xf32>
    %26 = tpu.matmul %23, %25, %cst_28 {dimension_numbers = #tpu.dot_dimension_numbers<[1], [0], [0], [1], [0, 0, 1, 1], [], []>} : vector<18x120xf32>, vector<120x288xf32>, vector<18x288xf32> -> vector<18x288xf32>
    %27 = arith.addf %20, %26 : vector<18x288xf32>
    %c4 = arith.constant 4 : index
    %c0_29 = arith.constant 0 : index
    %c0_30 = arith.constant 0 : index
    %28 = vector.load %arg2[%c4, %c0_29, %c0_30] : memref<5x18x40xf32, #tpu.memory_space<vmem>>, vector<1x18x40xf32>
    %29 = vector.shape_cast %28 : vector<1x18x40xf32> to vector<18x40xf32>
    %cst_31 = arith.constant dense<0.000000e+00> : vector<18x120xf32>
    %30 = tpu.matmul %29, %0, %cst_31 {dimension_numbers = #tpu.dot_dimension_numbers<[1], [0], [0], [1], [0, 0, 1, 1], [], []>} : vector<18x40xf32>, vector<40x120xf32>, vector<18x120xf32> -> vector<18x120xf32>
    %c4_32 = arith.constant 4 : index
    %c0_33 = arith.constant 0 : index
    %c0_34 = arith.constant 0 : index
    %31 = vector.load %arg3[%c4_32, %c0_33, %c0_34] : memref<5x120x288xf32, #tpu.memory_space<vmem>>, vector<1x120x288xf32>
    %32 = vector.shape_cast %31 : vector<1x120x288xf32> to vector<120x288xf32>
    %cst_35 = arith.constant dense<0.000000e+00> : vector<18x288xf32>
    %33 = tpu.matmul %30, %32, %cst_35 {dimension_numbers = #tpu.dot_dimension_numbers<[1], [0], [0], [1], [0, 0, 1, 1], [], []>} : vector<18x120xf32>, vector<120x288xf32>, vector<18x288xf32> -> vector<18x288xf32>
    %34 = arith.addf %27, %33 : vector<18x288xf32>
    %c0_36 = arith.constant 0 : index
    %c0_37 = arith.constant 0 : index
    %35 = vector.load %arg4[%c0_36, %c0_37] : memref<1x288xf32, #tpu.memory_space<vmem>>, vector<1x288xf32>
    %36 = vector.broadcast %35 : vector<1x288xf32> to vector<18x288xf32>
    %37 = arith.addf %34, %36 : vector<18x288xf32>
    %cst_38 = arith.constant 0.000000e+00 : f32
    %38 = vector.broadcast %cst_38 : f32 to vector<18x288xf32>
    %39 = arith.maximumf %37, %38 : vector<18x288xf32>
    %c0_39 = arith.constant 0 : index
    %c0_40 = arith.constant 0 : index
    %c0_41 = arith.constant 0 : index
    %40 = vector.load %arg5[%c0_39, %c0_40, %c0_41] : memref<5x7x18xf32, #tpu.memory_space<vmem>>, vector<1x7x18xf32>
    %41 = vector.shape_cast %40 : vector<1x7x18xf32> to vector<7x18xf32>
    %cst_42 = arith.constant dense<0.000000e+00> : vector<7x288xf32>
    %42 = tpu.matmul %41, %39, %cst_42 {dimension_numbers = #tpu.dot_dimension_numbers<[1], [0], [0], [1], [0, 0, 1, 1], [], []>} : vector<7x18xf32>, vector<18x288xf32>, vector<7x288xf32> -> vector<7x288xf32>
    %c0_43 = arith.constant 0 : index
    %c0_44 = arith.constant 0 : index
    %c0_45 = arith.constant 0 : index
    %43 = vector.load %arg6[%c0_43, %c0_44, %c0_45] : memref<5x288x224xf32, #tpu.memory_space<vmem>>, vector<1x288x224xf32>
    %44 = vector.shape_cast %43 : vector<1x288x224xf32> to vector<288x224xf32>
    %cst_46 = arith.constant dense<0.000000e+00> : vector<7x224xf32>
    %45 = tpu.matmul %42, %44, %cst_46 {dimension_numbers = #tpu.dot_dimension_numbers<[1], [0], [0], [1], [0, 0, 1, 1], [], []>} : vector<7x288xf32>, vector<288x224xf32>, vector<7x224xf32> -> vector<7x224xf32>
    %c1_47 = arith.constant 1 : index
    %c0_48 = arith.constant 0 : index
    %c0_49 = arith.constant 0 : index
    %46 = vector.load %arg5[%c1_47, %c0_48, %c0_49] : memref<5x7x18xf32, #tpu.memory_space<vmem>>, vector<1x7x18xf32>
    %47 = vector.shape_cast %46 : vector<1x7x18xf32> to vector<7x18xf32>
    %cst_50 = arith.constant dense<0.000000e+00> : vector<7x288xf32>
    %48 = tpu.matmul %47, %39, %cst_50 {dimension_numbers = #tpu.dot_dimension_numbers<[1], [0], [0], [1], [0, 0, 1, 1], [], []>} : vector<7x18xf32>, vector<18x288xf32>, vector<7x288xf32> -> vector<7x288xf32>
    %c1_51 = arith.constant 1 : index
    %c0_52 = arith.constant 0 : index
    %c0_53 = arith.constant 0 : index
    %49 = vector.load %arg6[%c1_51, %c0_52, %c0_53] : memref<5x288x224xf32, #tpu.memory_space<vmem>>, vector<1x288x224xf32>
    %50 = vector.shape_cast %49 : vector<1x288x224xf32> to vector<288x224xf32>
    %cst_54 = arith.constant dense<0.000000e+00> : vector<7x224xf32>
    %51 = tpu.matmul %48, %50, %cst_54 {dimension_numbers = #tpu.dot_dimension_numbers<[1], [0], [0], [1], [0, 0, 1, 1], [], []>} : vector<7x288xf32>, vector<288x224xf32>, vector<7x224xf32> -> vector<7x224xf32>
    %52 = arith.addf %45, %51 : vector<7x224xf32>
    %c2_55 = arith.constant 2 : index
    %c0_56 = arith.constant 0 : index
    %c0_57 = arith.constant 0 : index
    %53 = vector.load %arg5[%c2_55, %c0_56, %c0_57] : memref<5x7x18xf32, #tpu.memory_space<vmem>>, vector<1x7x18xf32>
    %54 = vector.shape_cast %53 : vector<1x7x18xf32> to vector<7x18xf32>
    %cst_58 = arith.constant dense<0.000000e+00> : vector<7x288xf32>
    %55 = tpu.matmul %54, %39, %cst_58 {dimension_numbers = #tpu.dot_dimension_numbers<[1], [0], [0], [1], [0, 0, 1, 1], [], []>} : vector<7x18xf32>, vector<18x288xf32>, vector<7x288xf32> -> vector<7x288xf32>
    %c2_59 = arith.constant 2 : index
    %c0_60 = arith.constant 0 : index
    %c0_61 = arith.constant 0 : index
    %56 = vector.load %arg6[%c2_59, %c0_60, %c0_61] : memref<5x288x224xf32, #tpu.memory_space<vmem>>, vector<1x288x224xf32>
    %57 = vector.shape_cast %56 : vector<1x288x224xf32> to vector<288x224xf32>
    %cst_62 = arith.constant dense<0.000000e+00> : vector<7x224xf32>
    %58 = tpu.matmul %55, %57, %cst_62 {dimension_numbers = #tpu.dot_dimension_numbers<[1], [0], [0], [1], [0, 0, 1, 1], [], []>} : vector<7x288xf32>, vector<288x224xf32>, vector<7x224xf32> -> vector<7x224xf32>
    %59 = arith.addf %52, %58 : vector<7x224xf32>
    %c3_63 = arith.constant 3 : index
    %c0_64 = arith.constant 0 : index
    %c0_65 = arith.constant 0 : index
    %60 = vector.load %arg5[%c3_63, %c0_64, %c0_65] : memref<5x7x18xf32, #tpu.memory_space<vmem>>, vector<1x7x18xf32>
    %61 = vector.shape_cast %60 : vector<1x7x18xf32> to vector<7x18xf32>
    %cst_66 = arith.constant dense<0.000000e+00> : vector<7x288xf32>
    %62 = tpu.matmul %61, %39, %cst_66 {dimension_numbers = #tpu.dot_dimension_numbers<[1], [0], [0], [1], [0, 0, 1, 1], [], []>} : vector<7x18xf32>, vector<18x288xf32>, vector<7x288xf32> -> vector<7x288xf32>
    %c3_67 = arith.constant 3 : index
    %c0_68 = arith.constant 0 : index
    %c0_69 = arith.constant 0 : index
    %63 = vector.load %arg6[%c3_67, %c0_68, %c0_69] : memref<5x288x224xf32, #tpu.memory_space<vmem>>, vector<1x288x224xf32>
    %64 = vector.shape_cast %63 : vector<1x288x224xf32> to vector<288x224xf32>
    %cst_70 = arith.constant dense<0.000000e+00> : vector<7x224xf32>
    %65 = tpu.matmul %62, %64, %cst_70 {dimension_numbers = #tpu.dot_dimension_numbers<[1], [0], [0], [1], [0, 0, 1, 1], [], []>} : vector<7x288xf32>, vector<288x224xf32>, vector<7x224xf32> -> vector<7x224xf32>
    %66 = arith.addf %59, %65 : vector<7x224xf32>
    %c4_71 = arith.constant 4 : index
    %c0_72 = arith.constant 0 : index
    %c0_73 = arith.constant 0 : index
    %67 = vector.load %arg5[%c4_71, %c0_72, %c0_73] : memref<5x7x18xf32, #tpu.memory_space<vmem>>, vector<1x7x18xf32>
    %68 = vector.shape_cast %67 : vector<1x7x18xf32> to vector<7x18xf32>
    %cst_74 = arith.constant dense<0.000000e+00> : vector<7x288xf32>
    %69 = tpu.matmul %68, %39, %cst_74 {dimension_numbers = #tpu.dot_dimension_numbers<[1], [0], [0], [1], [0, 0, 1, 1], [], []>} : vector<7x18xf32>, vector<18x288xf32>, vector<7x288xf32> -> vector<7x288xf32>
    %c4_75 = arith.constant 4 : index
    %c0_76 = arith.constant 0 : index
    %c0_77 = arith.constant 0 : index
    %70 = vector.load %arg6[%c4_75, %c0_76, %c0_77] : memref<5x288x224xf32, #tpu.memory_space<vmem>>, vector<1x288x224xf32>
    %71 = vector.shape_cast %70 : vector<1x288x224xf32> to vector<288x224xf32>
    %cst_78 = arith.constant dense<0.000000e+00> : vector<7x224xf32>
    %72 = tpu.matmul %69, %71, %cst_78 {dimension_numbers = #tpu.dot_dimension_numbers<[1], [0], [0], [1], [0, 0, 1, 1], [], []>} : vector<7x288xf32>, vector<288x224xf32>, vector<7x224xf32> -> vector<7x224xf32>
    %73 = arith.addf %66, %72 : vector<7x224xf32>
    %c0_79 = arith.constant 0 : index
    %c0_80 = arith.constant 0 : index
    %74 = vector.load %arg7[%c0_79, %c0_80] : memref<1x224xf32, #tpu.memory_space<vmem>>, vector<1x224xf32>
    %75 = vector.broadcast %74 : vector<1x224xf32> to vector<7x224xf32>
    %76 = arith.addf %73, %75 : vector<7x224xf32>
    %cst_81 = arith.constant 0.000000e+00 : f32
    %77 = vector.broadcast %cst_81 : f32 to vector<7x224xf32>
    %78 = arith.maximumf %76, %77 : vector<7x224xf32>
    %c0_82 = arith.constant 0 : index
    %c0_83 = arith.constant 0 : index
    %c0_84 = arith.constant 0 : index
    %79 = vector.load %arg8[%c0_82, %c0_83, %c0_84] : memref<5x2x7xf32, #tpu.memory_space<vmem>>, vector<1x2x7xf32>
    %80 = vector.shape_cast %79 : vector<1x2x7xf32> to vector<2x7xf32>
    %cst_85 = arith.constant dense<0.000000e+00> : vector<2x224xf32>
    %81 = tpu.matmul %80, %78, %cst_85 {dimension_numbers = #tpu.dot_dimension_numbers<[1], [0], [0], [1], [0, 0, 1, 1], [], []>} : vector<2x7xf32>, vector<7x224xf32>, vector<2x224xf32> -> vector<2x224xf32>
    %c0_86 = arith.constant 0 : index
    %c0_87 = arith.constant 0 : index
    %c0_88 = arith.constant 0 : index
    %82 = vector.load %arg9[%c0_86, %c0_87, %c0_88] : memref<5x224x64xf32, #tpu.memory_space<vmem>>, vector<1x224x64xf32>
    %83 = vector.shape_cast %82 : vector<1x224x64xf32> to vector<224x64xf32>
    %cst_89 = arith.constant dense<0.000000e+00> : vector<2x64xf32>
    %84 = tpu.matmul %81, %83, %cst_89 {dimension_numbers = #tpu.dot_dimension_numbers<[1], [0], [0], [1], [0, 0, 1, 1], [], []>} : vector<2x224xf32>, vector<224x64xf32>, vector<2x64xf32> -> vector<2x64xf32>
    %c1_90 = arith.constant 1 : index
    %c0_91 = arith.constant 0 : index
    %c0_92 = arith.constant 0 : index
    %85 = vector.load %arg8[%c1_90, %c0_91, %c0_92] : memref<5x2x7xf32, #tpu.memory_space<vmem>>, vector<1x2x7xf32>
    %86 = vector.shape_cast %85 : vector<1x2x7xf32> to vector<2x7xf32>
    %cst_93 = arith.constant dense<0.000000e+00> : vector<2x224xf32>
    %87 = tpu.matmul %86, %78, %cst_93 {dimension_numbers = #tpu.dot_dimension_numbers<[1], [0], [0], [1], [0, 0, 1, 1], [], []>} : vector<2x7xf32>, vector<7x224xf32>, vector<2x224xf32> -> vector<2x224xf32>
    %c1_94 = arith.constant 1 : index
    %c0_95 = arith.constant 0 : index
    %c0_96 = arith.constant 0 : index
    %88 = vector.load %arg9[%c1_94, %c0_95, %c0_96] : memref<5x224x64xf32, #tpu.memory_space<vmem>>, vector<1x224x64xf32>
    %89 = vector.shape_cast %88 : vector<1x224x64xf32> to vector<224x64xf32>
    %cst_97 = arith.constant dense<0.000000e+00> : vector<2x64xf32>
    %90 = tpu.matmul %87, %89, %cst_97 {dimension_numbers = #tpu.dot_dimension_numbers<[1], [0], [0], [1], [0, 0, 1, 1], [], []>} : vector<2x224xf32>, vector<224x64xf32>, vector<2x64xf32> -> vector<2x64xf32>
    %91 = arith.addf %84, %90 : vector<2x64xf32>
    %c2_98 = arith.constant 2 : index
    %c0_99 = arith.constant 0 : index
    %c0_100 = arith.constant 0 : index
    %92 = vector.load %arg8[%c2_98, %c0_99, %c0_100] : memref<5x2x7xf32, #tpu.memory_space<vmem>>, vector<1x2x7xf32>
    %93 = vector.shape_cast %92 : vector<1x2x7xf32> to vector<2x7xf32>
    %cst_101 = arith.constant dense<0.000000e+00> : vector<2x224xf32>
    %94 = tpu.matmul %93, %78, %cst_101 {dimension_numbers = #tpu.dot_dimension_numbers<[1], [0], [0], [1], [0, 0, 1, 1], [], []>} : vector<2x7xf32>, vector<7x224xf32>, vector<2x224xf32> -> vector<2x224xf32>
    %c2_102 = arith.constant 2 : index
    %c0_103 = arith.constant 0 : index
    %c0_104 = arith.constant 0 : index
    %95 = vector.load %arg9[%c2_102, %c0_103, %c0_104] : memref<5x224x64xf32, #tpu.memory_space<vmem>>, vector<1x224x64xf32>
    %96 = vector.shape_cast %95 : vector<1x224x64xf32> to vector<224x64xf32>
    %cst_105 = arith.constant dense<0.000000e+00> : vector<2x64xf32>
    %97 = tpu.matmul %94, %96, %cst_105 {dimension_numbers = #tpu.dot_dimension_numbers<[1], [0], [0], [1], [0, 0, 1, 1], [], []>} : vector<2x224xf32>, vector<224x64xf32>, vector<2x64xf32> -> vector<2x64xf32>
    %98 = arith.addf %91, %97 : vector<2x64xf32>
    %c3_106 = arith.constant 3 : index
    %c0_107 = arith.constant 0 : index
    %c0_108 = arith.constant 0 : index
    %99 = vector.load %arg8[%c3_106, %c0_107, %c0_108] : memref<5x2x7xf32, #tpu.memory_space<vmem>>, vector<1x2x7xf32>
    %100 = vector.shape_cast %99 : vector<1x2x7xf32> to vector<2x7xf32>
    %cst_109 = arith.constant dense<0.000000e+00> : vector<2x224xf32>
    %101 = tpu.matmul %100, %78, %cst_109 {dimension_numbers = #tpu.dot_dimension_numbers<[1], [0], [0], [1], [0, 0, 1, 1], [], []>} : vector<2x7xf32>, vector<7x224xf32>, vector<2x224xf32> -> vector<2x224xf32>
    %c3_110 = arith.constant 3 : index
    %c0_111 = arith.constant 0 : index
    %c0_112 = arith.constant 0 : index
    %102 = vector.load %arg9[%c3_110, %c0_111, %c0_112] : memref<5x224x64xf32, #tpu.memory_space<vmem>>, vector<1x224x64xf32>
    %103 = vector.shape_cast %102 : vector<1x224x64xf32> to vector<224x64xf32>
    %cst_113 = arith.constant dense<0.000000e+00> : vector<2x64xf32>
    %104 = tpu.matmul %101, %103, %cst_113 {dimension_numbers = #tpu.dot_dimension_numbers<[1], [0], [0], [1], [0, 0, 1, 1], [], []>} : vector<2x224xf32>, vector<224x64xf32>, vector<2x64xf32> -> vector<2x64xf32>
    %105 = arith.addf %98, %104 : vector<2x64xf32>
    %c4_114 = arith.constant 4 : index
    %c0_115 = arith.constant 0 : index
    %c0_116 = arith.constant 0 : index
    %106 = vector.load %arg8[%c4_114, %c0_115, %c0_116] : memref<5x2x7xf32, #tpu.memory_space<vmem>>, vector<1x2x7xf32>
    %107 = vector.shape_cast %106 : vector<1x2x7xf32> to vector<2x7xf32>
    %cst_117 = arith.constant dense<0.000000e+00> : vector<2x224xf32>
    %108 = tpu.matmul %107, %78, %cst_117 {dimension_numbers = #tpu.dot_dimension_numbers<[1], [0], [0], [1], [0, 0, 1, 1], [], []>} : vector<2x7xf32>, vector<7x224xf32>, vector<2x224xf32> -> vector<2x224xf32>
    %c4_118 = arith.constant 4 : index
    %c0_119 = arith.constant 0 : index
    %c0_120 = arith.constant 0 : index
    %109 = vector.load %arg9[%c4_118, %c0_119, %c0_120] : memref<5x224x64xf32, #tpu.memory_space<vmem>>, vector<1x224x64xf32>
    %110 = vector.shape_cast %109 : vector<1x224x64xf32> to vector<224x64xf32>
    %cst_121 = arith.constant dense<0.000000e+00> : vector<2x64xf32>
    %111 = tpu.matmul %108, %110, %cst_121 {dimension_numbers = #tpu.dot_dimension_numbers<[1], [0], [0], [1], [0, 0, 1, 1], [], []>} : vector<2x224xf32>, vector<224x64xf32>, vector<2x64xf32> -> vector<2x64xf32>
    %112 = arith.addf %105, %111 : vector<2x64xf32>
    %c0_122 = arith.constant 0 : index
    %c0_123 = arith.constant 0 : index
    %113 = vector.load %arg10[%c0_122, %c0_123] : memref<1x64xf32, #tpu.memory_space<vmem>>, vector<1x64xf32>
    %114 = vector.broadcast %113 : vector<1x64xf32> to vector<2x64xf32>
    %115 = arith.addf %112, %114 : vector<2x64xf32>
    %cst_124 = arith.constant 0.000000e+00 : f32
    %116 = vector.broadcast %cst_124 : f32 to vector<2x64xf32>
    %117 = arith.maximumf %115, %116 : vector<2x64xf32>
    %c0_125 = arith.constant 0 : index
    %c0_126 = arith.constant 0 : index
    %118 = vector.load %arg12[%c0_125, %c0_126] : memref<1x4xf32, #tpu.memory_space<vmem>>, vector<1x4xf32>
    %119 = vector.extract_strided_slice %117 {offsets = [0, 0], sizes = [1, 64], strides = [1, 1]} : vector<2x64xf32> to vector<1x64xf32>
    %c0_127 = arith.constant 0 : index
    %c0_128 = arith.constant 0 : index
    %c0_129 = arith.constant 0 : index
    %120 = vector.load %arg11[%c0_127, %c0_128, %c0_129] : memref<2x64x4xf32, #tpu.memory_space<vmem>>, vector<1x64x4xf32>
    %121 = vector.shape_cast %120 : vector<1x64x4xf32> to vector<64x4xf32>
    %cst_130 = arith.constant dense<0.000000e+00> : vector<1x4xf32>
    %122 = tpu.matmul %119, %121, %cst_130 {dimension_numbers = #tpu.dot_dimension_numbers<[1], [0], [0], [1], [0, 0, 1, 1], [], []>} : vector<1x64xf32>, vector<64x4xf32>, vector<1x4xf32> -> vector<1x4xf32>
    %123 = arith.addf %118, %122 : vector<1x4xf32>
    %124 = vector.extract_strided_slice %117 {offsets = [1, 0], sizes = [1, 64], strides = [1, 1]} : vector<2x64xf32> to vector<1x64xf32>
    %c1_131 = arith.constant 1 : index
    %c0_132 = arith.constant 0 : index
    %c0_133 = arith.constant 0 : index
    %125 = vector.load %arg11[%c1_131, %c0_132, %c0_133] : memref<2x64x4xf32, #tpu.memory_space<vmem>>, vector<1x64x4xf32>
    %126 = vector.shape_cast %125 : vector<1x64x4xf32> to vector<64x4xf32>
    %cst_134 = arith.constant dense<0.000000e+00> : vector<1x4xf32>
    %127 = tpu.matmul %124, %126, %cst_134 {dimension_numbers = #tpu.dot_dimension_numbers<[1], [0], [0], [1], [0, 0, 1, 1], [], []>} : vector<1x64xf32>, vector<64x4xf32>, vector<1x4xf32> -> vector<1x4xf32>
    %128 = arith.addf %123, %127 : vector<1x4xf32>
    %c0_135 = arith.constant 0 : index
    %c0_136 = arith.constant 0 : index
    %c0_137 = arith.constant 0 : index
    %129 = vector.load %arg13[%c0_135, %c0_136, %c0_137] : memref<1x1x4xf32, #tpu.memory_space<vmem>>, vector<1x1x4xf32>
    %130 = vector.shape_cast %129 : vector<1x1x4xf32> to vector<1x4xf32>
    %131 = vector.shape_cast %128 : vector<1x4xf32> to vector<1x1x4xf32>
    tpu.vector_store %arg13[%c0_135, %c0_136, %c0_137], %131 {strides = array<i32>} : memref<1x1x4xf32, #tpu.memory_space<vmem>>, vector<1x1x4xf32>,
    return
  }
  func.func @transform_0(%arg0: i32) -> (i32, i32) {
    %c0_i32 = arith.constant 0 : i32
    %c0_i32_0 = arith.constant 0 : i32
    return %arg0, %c0_i32 : i32, i32
  }
  func.func @transform_1(%arg0: i32) -> (i32, i32, i32) {
    %c0_i32 = arith.constant 0 : i32
    %c0_i32_0 = arith.constant 0 : i32
    %c0_i32_1 = arith.constant 0 : i32
    %c0_i32_2 = arith.constant 0 : i32
    return %c0_i32, %c0_i32_0, %c0_i32_1 : i32, i32, i32
  }
  func.func @transform_2(%arg0: i32) -> (i32, i32, i32) {
    %c0_i32 = arith.constant 0 : i32
    %c0_i32_0 = arith.constant 0 : i32
    %c0_i32_1 = arith.constant 0 : i32
    %c0_i32_2 = arith.constant 0 : i32
    return %c0_i32, %c0_i32_0, %c0_i32_1 : i32, i32, i32
  }
  func.func @transform_3(%arg0: i32) -> (i32, i32) {
    %c0_i32 = arith.constant 0 : i32
    %c0_i32_0 = arith.constant 0 : i32
    %c0_i32_1 = arith.constant 0 : i32
    return %c0_i32, %c0_i32_0 : i32, i32
  }
  func.func @transform_4(%arg0: i32) -> (i32, i32, i32) {
    %c0_i32 = arith.constant 0 : i32
    %c0_i32_0 = arith.constant 0 : i32
    %c0_i32_1 = arith.constant 0 : i32
    %c0_i32_2 = arith.constant 0 : i32
    return %c0_i32, %c0_i32_0, %c0_i32_1 : i32, i32, i32
  }
  func.func @transform_5(%arg0: i32) -> (i32, i32, i32) {
    %c0_i32 = arith.constant 0 : i32
    %c0_i32_0 = arith.constant 0 : i32
    %c0_i32_1 = arith.constant 0 : i32
    %c0_i32_2 = arith.constant 0 : i32
    return %c0_i32, %c0_i32_0, %c0_i32_1 : i32, i32, i32
  }
  func.func @transform_6(%arg0: i32) -> (i32, i32) {
    %c0_i32 = arith.constant 0 : i32
    %c0_i32_0 = arith.constant 0 : i32
    %c0_i32_1 = arith.constant 0 : i32
    return %c0_i32, %c0_i32_0 : i32, i32
  }
  func.func @transform_7(%arg0: i32) -> (i32, i32, i32) {
    %c0_i32 = arith.constant 0 : i32
    %c0_i32_0 = arith.constant 0 : i32
    %c0_i32_1 = arith.constant 0 : i32
    %c0_i32_2 = arith.constant 0 : i32
    return %c0_i32, %c0_i32_0, %c0_i32_1 : i32, i32, i32
  }
  func.func @transform_8(%arg0: i32) -> (i32, i32, i32) {
    %c0_i32 = arith.constant 0 : i32
    %c0_i32_0 = arith.constant 0 : i32
    %c0_i32_1 = arith.constant 0 : i32
    %c0_i32_2 = arith.constant 0 : i32
    return %c0_i32, %c0_i32_0, %c0_i32_1 : i32, i32, i32
  }
  func.func @transform_9(%arg0: i32) -> (i32, i32) {
    %c0_i32 = arith.constant 0 : i32
    %c0_i32_0 = arith.constant 0 : i32
    %c0_i32_1 = arith.constant 0 : i32
    return %c0_i32, %c0_i32_0 : i32, i32
  }
  func.func @transform_10(%arg0: i32) -> (i32, i32, i32) {
    %c0_i32 = arith.constant 0 : i32
    %c0_i32_0 = arith.constant 0 : i32
    %c0_i32_1 = arith.constant 0 : i32
    %c0_i32_2 = arith.constant 0 : i32
    return %c0_i32, %c0_i32_0, %c0_i32_1 : i32, i32, i32
  }
  func.func @transform_11(%arg0: i32) -> (i32, i32) {
    %c0_i32 = arith.constant 0 : i32
    %c0_i32_0 = arith.constant 0 : i32
    %c0_i32_1 = arith.constant 0 : i32
    return %c0_i32, %c0_i32_0 : i32, i32
  }
  func.func @transform_12(%arg0: i32) -> (i32, i32, i32) {
    %c0_i32 = arith.constant 0 : i32
    %c0_i32_0 = arith.constant 0 : i32
    %c0_i32_1 = arith.constant 0 : i32
    return %arg0, %c0_i32, %c0_i32_0 : i32, i32, i32
  }
}

</mosaic_0001>

<bundles_post_ra>
// kernel: dqn_forward.1
= control target key start
LH: loop header
LB: loop body
LE: loop exit
PB: predicated region body
PF: predicated region fallthrough
CT: control target
= control target key end

     0   :  { %s10335_s0 = inlined_call_operand.vmem [shape: f32[80,120], index: 0, kind: input, shape index: {}]   ;;  %s10336_s1 = inlined_call_operand.vmem [shape: f32[5,18,40], index: 1, kind: input, shape index: {}]   ;;  %s10337_s2 = inlined_call_operand.vmem [shape: f32[5,120,288], index: 2, kind: input, shape index: {}]   ;;  %s10338_s3 = inlined_call_operand.vmem [shape: f32[1,288], index: 3, kind: input, shape index: {}]   ;;  %s10339_s4 = inlined_call_operand.vmem [shape: f32[5,7,18], index: 4, kind: input, shape index: {}]   ;;  %s10340_s5 = inlined_call_operand.vmem [shape: f32[5,288,224], index: 5, kind: input, shape index: {}]   ;;  %s10341_s6 = inlined_call_operand.vmem [shape: f32[1,224], index: 6, kind: input, shape index: {}]   ;;  %s10342_s7 = inlined_call_operand.vmem [shape: f32[5,2,7], index: 7, kind: input, shape index: {}]   ;;  %s10343_s8 = inlined_call_operand.vmem [shape: f32[5,224,64], index: 8, kind: input, shape index: {}]   ;;  %s10344_s9 = inlined_call_operand.vmem [shape: f32[1,64], index: 9, kind: input, shape index: {}]   ;;  %s10345_s10 = inlined_call_operand.vmem [shape: f32[2,64,4], index: 10, kind: input, shape index: {}]   ;;  %s10346_s11 = inlined_call_operand.vmem [shape: f32[1,4], index: 11, kind: input, shape index: {}]   ;;  %s10347_s12 = inlined_call_operand.hbm [shape: f32[2,1,4], index: 12, kind: output, shape index: {}]  }
   0x1   :  { %10351 = sst [smem:[#allocation8_spill]] %s10335_s0 }
   0x2   :  { %17 = vsyncpa [#allocation3], 0 }
   0x3   :  { %19 = vsyncpa [#allocation3 + $0x1], 0  ;;  %s7413_s21 = smov 0   ;;  %s7415_s22 = smov 0  }
   0x4   :  { %s7417_s23 = smov 0   ;;  %s7419_s24 = smov 0  }
   0x5 LB: > { %10352 = sst [smem:[#allocation5_spill]] %s7338_s23  ;;  %s7434_s25 = sadd.s32 4294967295, %s7342_s24   ;;  %s7342_s24 = sphi %s7419_s24, %s10358_s24   ;;  %s7338_s23 = sphi %s7417_s23, %s10360_s23   ;;  %s7334_s22 = sphi %s7415_s22, %s10362_s22   ;;  %s7330_s21 = sphi %s7413_s21, %s10361_s21  }
   0x6   : > { %s5033_s26 = sadd.s32 4294967294, %s7342_s24   ;;  %s7438_s27 = sadd.s32 1, %s7342_s24  }
   0x7   : > { %10353 = sst [smem:[#allocation6_spill]] %s7438_s27  ;;  %s289_s28 = sadd.s32 1, %s7338_s23 }
   0x8   : > { %s286_s29 = ssub.s32 %s7342_s24, %s7438_s27  ;;  %p299_p0 = scmp.ne.s32.totalorder %s7338_s23, %s7334_s22 }
   0x9   : > { %p287_p1 = scmp.eq.s32.totalorder %s286_s29, 0  ;;  %p300_p2 = scmp.eq.s32.totalorder %s7434_s25, 1 }
   0xa   : > { %p305_p3 = scmp.ne.s32.totalorder %s7334_s22, %s7330_s21  ;;  %p306_p4 = scmp.eq.s32.totalorder %s5033_s26, 1 }
   0xb   : > { %s7449_s30 = scalar_select %p287_p1, %s7338_s23, %s289_s28  }
   0xc   : > { %p7451_p5 = por %p300_p2, %p299_p0  ;;  %p7455_p6 = por %p306_p4, %p305_p3 }
   0xd   : > { %10354 = sst [smem:[#allocation7_spill]] %s7449_s30  ;;  %p5036_p7 = scmp.ge.s32.totalorder %s7342_s24, 1 }
   0xe   : > { %p366_p8 = scmp.lt.s32.totalorder %s7342_s24, 3 }
  0x10   : > { %p367_p9 = pnand %p5036_p7, %p366_p8 }
  0x11   : > { %s407_s15 = smul.u32 (!%p367_p9), 5, %s7434_s25  ;;  %v7344_v0 = vmov (!%p367_p9), 0.0|0.0   ;;  %vm7345_vm0 = vmmov (!%p367_p9), 0   ;;  %v7346_v1 = vmov (!%p367_p9), 0.0   ;;  %s10357_s0 = sld [smem:[#allocation8_spill]] (!%p367_p9)  ;;  %v5048_v8 = vld [vmem:[%s10337_s2 + $0x170] sm:$0xff] (!%p367_p9) }
  0x12   : > { %370 = sbr.rel (%p367_p9) target bundleno = 3300 (0xce4), region = 68  ;;  %6294 = vmatprep.subr.bf16.mxu1 (!%p367_p9), %v7344_v0  ;;  %5944 = vmatprep.mubr.msk.f32.mxu1 (!%p367_p9), %vm7345_vm0, %v7346_v1  ;;  %v5051_v9 = vld [vmem:[%s10337_s2 + $0x188] sm:$0xff] (!%p367_p9)  ;;  %v5050_v11 = vld [vmem:[%s10337_s2 + $0x180] sm:$0xff] (!%p367_p9)  ;;  %v5049_v13 = vld [vmem:[%s10337_s2 + $0x178] sm:$0xff] (!%p367_p9)  ;;  %vm421_vm1 = vcmask (!%p367_p9), 326656   ;;  %vm695_vm2 = vcmask (!%p367_p9), 982016  }
  0x13   : > { %p408_p10 = scmp.lt.s32.totalorder (!%p367_p9), %s407_s15, 9  ;;  %6288 = vmatprep.subr.bf16.mxu0 (!%p367_p9), %v7344_v0  ;;  %5925 = vmatprep.mubr.msk.f32.mxu0 (!%p367_p9), %vm7345_vm0, %v7346_v1  ;;  %v5047_v10 = vld [vmem:[%s10337_s2 + $0x168] sm:$0xff] (!%p367_p9)  ;;  %v5052_v14 = vld [vmem:[%s10337_s2 + $0x190] sm:$0xff] (!%p367_p9)  ;;  %v5041_v15 = vld [vmem:[%s10336_s1 + $0x18] sm:$0xff] (!%p367_p9)  ;;  %v6300_v17 = vpack.c.bf16 (!%p367_p9), %v5051_v9, %v5048_v8  ;;  %vm2040_vm3 = vcmask (!%p367_p9), 1041408   ;;  %vm2036_vm4 = vcmask (!%p367_p9), 146432  }
  0x14   : > { %v418_v16 = vld [vmem:[%s10336_s1] sm:$0xff] (!%p367_p9)  ;;  %v6302_v18 = vpack.c.bf16 (!%p367_p9), %v5050_v11, %v5047_v10  ;;  %v6329_v19 = vpack.c.bf16 (!%p367_p9), %v5052_v14, %v5049_v13  ;;  %v5057_v21 = vld [vmem:[%s10337_s2 + $0x1b8] sm:$0xff] (!%p367_p9)  ;;  %v5056_v23 = vld [vmem:[%s10337_s2 + $0x1b0] sm:$0xff] (!%p367_p9)  ;;  %vm2482_vm5 = vcmask (!%p367_p9), 261120   ;;  %vm3892_vm6 = vcmask (!%p367_p9), 1046528   ;;  %s405_s28 = sand.u32 (!%p367_p9), 1, %s7334_s22  }
  0x15   : > { %v5054_v20 = vld [vmem:[%s10337_s2 + $0x1a0] sm:$0xff] (!%p367_p9)  ;;  %v5053_v22 = vld [vmem:[%s10337_s2 + $0x198] sm:$0xff] (!%p367_p9)  ;;  %v5055_v24 = vld [vmem:[%s10337_s2 + $0x1a8] sm:$0xff] (!%p367_p9)  ;;  %vm3888_vm7 = vcmask (!%p367_p9), 56320   ;;  %vm4103_vm8 = vcmask (!%p367_p9), 785408   ;;  %vm4805_vm9 = vcmask (!%p367_p9), 523264  }
  0x16   : > { %v5058_v25 = vld [vmem:[%s10337_s2 + $0x1c0] sm:$0xff] (!%p367_p9)  ;;  %v419_v27 = vld [vmem:[%s10336_s1 + $0x8] sm:$0xff] (!%p367_p9)  ;;  %v6304_v28 = vpack.c.bf16 (!%p367_p9), %v5057_v21, %v5054_v20  ;;  %v5060_v29 = vld [vmem:[%s10337_s2 + $0x1d0] sm:$0xff] (!%p367_p9)  ;;  %v6306_v32 = vpack.c.bf16 (!%p367_p9), %v5056_v23, %v5053_v22  ;;  %vm4963_vm10 = vcmask (!%p367_p9), 24576   ;;  %s4966_s17 = scalar_lea.sflag (!%p367_p9), [#allocation3], %s405_s28 }
  0x17   : > { %v5042_v26 = vld [vmem:[%s10336_s1 + $0x20] sm:$0xff] (!%p367_p9)  ;;  %v5063_v30 = vld [vmem:[%s10337_s2 + $0x1e8] sm:$0xff] (!%p367_p9)  ;;  %v6332_v33 = vpack.c.bf16 (!%p367_p9), %v5058_v25, %v5055_v24  ;;  %v5061_v36 = vld [vmem:[%s10337_s2 + $0x1d8] sm:$0xff] (!%p367_p9) }
  0x18   : > { %v5043_v31 = vld [vmem:[%s10336_s1 + $0x28] sm:$0x3] (!%p367_p9)  ;;  %v5062_v35 = vld [vmem:[%s10337_s2 + $0x1e0] sm:$0xff] (!%p367_p9)  ;;  %v5064_v37 = vld [vmem:[%s10337_s2 + $0x1f0] sm:$0xff] (!%p367_p9)  ;;  %v6308_v39 = vpack.c.bf16 (!%p367_p9), %v5063_v30, %v5060_v29 }
  0x19   : > { %s10364_s15 = smov (!%p408_p10, %s407_s15), 9  ;;  %v5059_v34 = vld [vmem:[%s10337_s2 + $0x1c8] sm:$0xff]  ;;  %v420_v38 = vld [vmem:[%s10336_s1 + $0x10] sm:$0x3]  ;;  %v5066_v40 = vld [vmem:[%s10337_s2 + $0x200] sm:$0xff]  ;;  %v6335_v43 = vpack.c.bf16 %v5064_v37, %v5061_v36 }
  0x1a   : > { %s5037_s16 = sshll.u32 %s10364_s15, 3  ;;  %v5069_v41 = vld [vmem:[%s10337_s2 + $0x218] sm:$0xff]  ;;  %v6310_v42 = vpack.c.bf16 %v5062_v35, %v5059_v34  ;;  %v5068_v46 = vld [vmem:[%s10337_s2 + $0x210] sm:$0xff]  ;;  %v5067_v47 = vld [vmem:[%s10337_s2 + $0x208] sm:$0xff]  ;;  %s5744_s15 = sshll.u32 %s7434_s25, 4 }
  0x1b   : > { %s7471_s19 = scalar_lea.vmem %s10357_s0, %s5037_s16  ;;  %v5065_v44 = vld [vmem:[%s10337_s2 + $0x1f8] sm:$0xff]  ;;  %v6312_v45 = vpack.c.bf16 %v5069_v41, %v5066_v40  ;;  %v5070_v48 = vld [vmem:[%s10337_s2 + $0x220] sm:$0xff]  ;;  %v5072_v49 = vld [vmem:[%s10337_s2 + $0x230] sm:$0xff]  ;;  %s406_s16 = scalar_lea.vmem [#allocation2], %s405_s28 }
  0x1c   : > { %v413_v2 = vld [vmem:[%s7471_s19] sm:$0xff]  ;;  %v414_v3 = vld [vmem:[%s7471_s19 + $0x8] sm:$0xff]  ;;  %v415_v4 = vld [vmem:[%s7471_s19 + $0x10] sm:$0xff]  ;;  %v6314_v51 = vpack.c.bf16 %v5068_v46, %v5065_v44  ;;  %v6338_v52 = vpack.c.bf16 %v5070_v48, %v5067_v47  ;;  %s4978_s0 = sshll.u32 %s406_s16, 4  ;;  %s10293_s27 = scalar_lea.hbm %s10347_s12, %s5744_s15  ;;  %s10295_s0 = int_to_ptr.vmem [resolvable:$true] %s4978_s0 }
  0x1d   : > { %v7476_v5 = vpack.c.bf16 %v414_v3, %v413_v2  ;;  %v416_v6 = vld [vmem:[%s7471_s19 + $0x18] sm:$0xff]  ;;  %v7501_v12 = vld [vmem:[%s7471_s19 + $0x20] sm:$0xff]  ;;  %v5075_v50 = vld [vmem:[%s10337_s2 + $0x248] sm:$0xff]  ;;  %s7280_s18 = scalar_lea.vmem %s10295_s0, 16  ;;  %s7347_s25 = smov [#allocation2]  }
  0x1e   : > { %v7480_v7 = vpack.c.bf16 %v416_v6, %v415_v4  ;;  %v5071_v53 = vld [vmem:[%s10337_s2 + $0x228] sm:$0xff]  ;;  %v6316_v54 = vpack.c.bf16 %v5075_v50, %v5072_v49  ;;  %v5074_v55 = vld [vmem:[%s10337_s2 + $0x240] sm:$0xff]  ;;  %v5073_v56 = vld [vmem:[%s10337_s2 + $0x238] sm:$0xff]  ;;  %p7281_p11 = scmp.ne.s32.totalorder %s10295_s0, %s7280_s18  ;;  %s7284_s20 = sshll.u32 %s7347_s25, 4  ;;  %s7285_s20 = int_to_ptr.vmem [resolvable:$false] %s7284_s20 }
  0x1f   : > { %6296 = vmatpush3.bf16.msra.mxu1 %v7476_v5  ;;  %6290 = vmatpush3.bf16.msra.mxu0 %v7476_v5  ;;  %v5076_v57 = vld [vmem:[%s10337_s2 + $0x250] sm:$0xff]  ;;  %v5078_v58 = vld [vmem:[%s10337_s2 + $0x260] sm:$0xff]  ;;  %v5081_v59 = vld [vmem:[%s10337_s2 + $0x278] sm:$0xff]  ;;  %v6318_v60 = vpack.c.bf16 %v5074_v55, %v5071_v53  ;;  %s7286_s26 = scalar_lea.vmem %s7285_s20, 32  ;;  %p7287_p0 = scmp.lt.s32.totalorder %s10295_s0, %s7285_s20 }
  0x20   : > { %6297 = vmatprep.subr.bf16.mxu1 %v7344_v0  ;;  %6291 = vmatprep.subr.bf16.mxu0 %v7344_v0  ;;  %v6341_v61 = vpack.c.bf16 %v5076_v57, %v5073_v56  ;;  %v5077_v62 = vld [vmem:[%s10337_s2 + $0x258] sm:$0xff]  ;;  %v6320_v63 = vpack.c.bf16 %v5081_v59, %v5078_v58  ;;  %v5080_v2 = vld [vmem:[%s10337_s2 + $0x270] sm:$0xff]  ;;  %v5079_v3 = vld [vmem:[%s10337_s2 + $0x268] sm:$0xff]  ;;  %p7282_p12 = pnand %p7281_p11, %p7451_p5  ;;  %p7288_p1 = scmp.lt.s32.totalorder %s7286_s26, %s7280_s18 }
  0x21   : > { %v5082_v4 = vld [vmem:[%s10337_s2 + $0x280] sm:$0xff]  ;;  %v5084_v6 = vld [vmem:[%s10337_s2 + $0x290] sm:$0xff]  ;;  %v5087_v8 = vld [vmem:[%s10337_s2 + $0x2a8] sm:$0xff]  ;;  %v6322_v9 = vpack.c.bf16 %v5080_v2, %v5077_v62 }
  0x22   : > { %v6344_v10 = vpack.c.bf16 %v5082_v4, %v5079_v3  ;;  %v5083_v11 = vld [vmem:[%s10337_s2 + $0x288] sm:$0xff]  ;;  %v6324_v13 = vpack.c.bf16 %v5087_v8, %v5084_v6  ;;  %v5086_v14 = vld [vmem:[%s10337_s2 + $0x2a0] sm:$0xff]  ;;  %v5089_v20 = vld [vmem:[%s10337_s2 + $0x2b8] sm:$0xff]  ;;  %p7283_p13 = pneg %p7282_p12  ;;  %p7289_p2 = por %p7288_p1, %p7287_p0 }
  0x23   : > { %6299 = vmatpush3.bf16.msra.mxu1 %v7480_v7  ;;  %6293 = vmatpush3.bf16.msra.mxu0 %v7480_v7  ;;  %v5091_v21 = vld [vmem:[%s10337_s2 + $0x2c8] sm:$0xff]  ;;  %v515_v23 = vld [vmem:[%s10337_s2 + $0x20] sm:$0xff]  ;;  %v518_v29 = vld [vmem:[%s10337_s2 + $0x38] sm:$0xff] }
  0x24   : > { %5942 = vmatprep.subr.mxu1 %v7346_v1  ;;  %5923 = vmatprep.subr.mxu0 %v7346_v1  ;;  %v512_v22 = vld [vmem:[%s10337_s2 + $0x8] sm:$0xff]  ;;  %v511_v25 = vld [vmem:[%s10337_s2] sm:$0xff]  ;;  %v521_v30 = vld [vmem:[%s10337_s2 + $0x50] sm:$0xff]  ;;  %p7290_p3 = pnand %p7289_p2, %p7283_p13 }
  0x25   : > { %v6349_v24 = vpack.c.bf16 %v515_v23, %v512_v22  ;;  %v6353_v34 = vpack.c.bf16 %v521_v30, %v518_v29  ;;  %v520_v35 = vld [vmem:[%s10337_s2 + $0x48] sm:$0xff]  ;;  %v519_v36 = vld [vmem:[%s10337_s2 + $0x40] sm:$0xff]  ;;  %v522_v37 = vld [vmem:[%s10337_s2 + $0x58] sm:$0xff] }
  0x26   : > { %v527_v40 = vld [vmem:[%s10337_s2 + $0x80] sm:$0xff]  ;;  %v526_v48 = vld [vmem:[%s10337_s2 + $0x78] sm:$0xff]  ;;  %v525_v49 = vld [vmem:[%s10337_s2 + $0x70] sm:$0xff] }
  0x27   : > { %5943 = vmatpush3.msra.mxu1 %v7501_v12  ;;  %5924 = vmatpush3.msra.mxu0 %v7501_v12  ;;  %v523_v46 = vld [vmem:[%s10337_s2 + $0x60] sm:$0xff]  ;;  %v528_v50 = vld [vmem:[%s10337_s2 + $0x88] sm:$0xff]  ;;  %v529_v59 = vld [vmem:[%s10337_s2 + $0x90] sm:$0xff] }
  0x28   : > { %5945 = vmatmul.mubr.msk.f32.vlgmr.msra.gmra.mrb[0].mxu1 %vm421_vm1, %v5041_v15  ;;  %5926 = vmatmul.mubr.msk.f32.vlgmr.msra.gmra.mrb[0].mxu0 %vm421_vm1, %v418_v16  ;;  %v5085_v15 = vld [vmem:[%s10337_s2 + $0x298] sm:$0xff]  ;;  %v5088_v16 = vld [vmem:[%s10337_s2 + $0x2b0] sm:$0xff]  ;;  %v6359_v57 = vpack.c.bf16 %v526_v48, %v523_v46  ;;  %v6384_v58 = vpack.c.bf16 %v528_v50, %v525_v49  ;;  %v531_v62 = vld [vmem:[%s10337_s2 + $0xa0] sm:$0xff] }
  0x29   : > { %5947 = vmatprep.mubr.msk.f32.mxu1 %vm7345_vm0, %v7346_v1  ;;  %5928 = vmatprep.mubr.msk.f32.mxu0 %vm7345_vm0, %v7346_v1  ;;  %v536_v2 = vld [vmem:[%s10337_s2 + $0xc8] sm:$0xff]  ;;  %v539_v3 = vld [vmem:[%s10337_s2 + $0xe0] sm:$0xff]  ;;  %v541_v22 = vld [vmem:[%s10337_s2 + $0xf0] sm:$0xff] }
  0x2a   : > { %6301 = vmatprep.subr.bf16.mxu0 %v6300_v17  ;;  %6328 = vmatprep.subr.bf16.mxu1 %v7344_v0  ;;  %v6326_v17 = vpack.c.bf16 %v5086_v14, %v5083_v11  ;;  %v6365_v14 = vpack.c.bf16 %v539_v3, %v536_v2  ;;  %v5110_v46 = vld [vmem:[%s10337_s2 + $0x2d0] sm:$0xff]  ;;  %v5113_v48 = vld [vmem:[%s10337_s2 + $0x2e8] sm:$0xff]  ;;  %v5112_v49 = vld [vmem:[%s10337_s2 + $0x2e0] sm:$0xff] }
  0x2b   : > { %6303 = vmatpush1.bf16.msra.mxu0 %v6302_v18  ;;  %6330 = vmatpush3.bf16.msra.mxu1 %v6329_v19  ;;  %v6347_v18 = vpack.c.bf16 %v5088_v16, %v5085_v15  ;;  %v5090_v19 = vld [vmem:[%s10337_s2 + $0x2c0] sm:$0xff]  ;;  %v538_v15 = vld [vmem:[%s10337_s2 + $0xd8] sm:$0xff]  ;;  %v537_v16 = vld [vmem:[%s10337_s2 + $0xd0] sm:$0xff] }
  0x2c   : > { %5948 = vmatmul.mubr.msk.f32.gmra.mrb[2].mxu1 %vm421_vm1, %v5042_v26  ;;  %5929 = vmatmul.mubr.msk.f32.gmra.mrb[2].mxu0 %vm421_vm1, %v419_v27  ;;  %v514_v26 = vld [vmem:[%s10337_s2 + $0x18] sm:$0xff]  ;;  %v513_v27 = vld [vmem:[%s10337_s2 + $0x10] sm:$0xff] }
  0x2d   : > { %5950 = vmatprep.mubr.msk.f32.mxu1 %vm7345_vm0, %v7346_v1  ;;  %5931 = vmatprep.mubr.msk.f32.mxu0 %vm7345_vm0, %v7346_v1  ;;  %v5115_v50 = vld [vmem:[%s10337_s2 + $0x2f8] sm:$0xff]  ;;  %v5122_v2 = vld [vmem:[%s10337_s2 + $0x330] sm:$0xff] }
  0x2e   : > { %6305 = vmatprep.subr.bf16.mxu0 %v6304_v28  ;;  %6331 = vmatprep.subr.bf16.mxu1 %v7344_v0  ;;  %v516_v28 = vld [vmem:[%s10337_s2 + $0x28] sm:$0xff] }
  0x2f   : > { %6307 = vmatpush1.bf16.msra.mxu0 %v6306_v32  ;;  %6333 = vmatpush3.bf16.msra.mxu1 %v6332_v33  ;;  %v6378_v32 = vpack.c.bf16 %v516_v28, %v513_v27  ;;  %v517_v33 = vld [vmem:[%s10337_s2 + $0x30] sm:$0xff]  ;;  %v548_v27 = vld [vmem:[%s10337_s2 + $0x128] sm:$0xff]  ;;  %v551_v28 = vld [vmem:[%s10337_s2 + $0x140] sm:$0xff] }
  0x30   : > { %5951 = vmatmul.mubr.msk.f32.gmra.mrb[4].mxu1 %vm421_vm1, %v5043_v31  ;;  %5932 = vmatmul.mubr.msk.f32.gmra.mrb[4].mxu0 %vm421_vm1, %v420_v38  ;;  %v6351_v31 = vpack.c.bf16 %v514_v26, %v511_v25  ;;  %v6355_v44 = vpack.c.bf16 %v520_v35, %v517_v33  ;;  %v543_v25 = vld [vmem:[%s10337_s2 + $0x100] sm:$0xff]  ;;  %v546_v26 = vld [vmem:[%s10337_s2 + $0x118] sm:$0xff]  ;;  %v552_v35 = vld [vmem:[%s10337_s2 + $0x148] sm:$0xff] }
  0x31   : > { %6309 = vmatprep.subr.bf16.mxu0 %v6308_v39  ;;  %6334 = vmatprep.subr.bf16.mxu1 %v7344_v0  ;;  %v524_v39 = vld [vmem:[%s10337_s2 + $0x68] sm:$0xff]  ;;  %v6393_v30 = vpack.c.bf16 %v546_v26, %v543_v25  ;;  %v550_v33 = vld [vmem:[%s10337_s2 + $0x138] sm:$0xff]  ;;  %v5136_v26 = vld [vmem:[%s10337_s2 + $0x3a0] sm:$0xff] }
  0x32   : > { %769 = vmatprep.mubr.f32.mxu0 %v7346_v1  ;;  %5983 = vmatprep.mubr.msk.f32.mxu1 %vm7345_vm0, %v7346_v1  ;;  %v6357_v47 = vpack.c.bf16 %v527_v40, %v524_v39  ;;  %v553_v39 = vld [vmem:[%s10337_s2 + $0x150] sm:$0xff]  ;;  %v555_v40 = vld [vmem:[%s10337_s2 + $0x160] sm:$0xff]  ;;  %v5137_v25 = vld [vmem:[%s10337_s2 + $0x3a8] sm:$0xff] }
  0x33   : > { %6311 = vmatpush1.bf16.msra.mxu0 %v6310_v42  ;;  %6336 = vmatpush3.bf16.msra.mxu1 %v6335_v43 }
  0x34   : > { %6313 = vmatprep.subr.bf16.mxu0 %v6312_v45  ;;  %6337 = vmatprep.subr.bf16.mxu1 %v7344_v0  ;;  %v6381_v45 = vpack.c.bf16 %v522_v37, %v519_v36 }
  0x37   : > { %6315 = vmatpush1.bf16.msra.mxu0 %v6314_v51  ;;  %6339 = vmatpush3.bf16.msra.mxu1 %v6338_v52  ;;  %v530_v51 = vld [vmem:[%s10337_s2 + $0x98] sm:$0xff]  ;;  %v533_v52 = vld [vmem:[%s10337_s2 + $0xb0] sm:$0xff] }
  0x38   : > { %6317 = vmatprep.subr.bf16.mxu0 %v6316_v54  ;;  %6340 = vmatprep.subr.bf16.mxu1 %v7344_v0 }
  0x3b   : > { %6319 = vmatpush1.bf16.msra.mxu0 %v6318_v60  ;;  %6342 = vmatpush3.bf16.msra.mxu1 %v6341_v61  ;;  %v6361_v60 = vpack.c.bf16 %v533_v52, %v530_v51  ;;  %v532_v61 = vld [vmem:[%s10337_s2 + $0xa8] sm:$0xff]  ;;  %v6406_v51 = vpack.c.bf16 %v5113_v48, %v5110_v46  ;;  %v6433_v52 = vpack.c.bf16 %v5115_v50, %v5112_v49  ;;  %v5151_v46 = vld [vmem:[%s10337_s2 + $0x418] sm:$0xff]  ;;  %v5152_v49 = vld [vmem:[%s10337_s2 + $0x420] sm:$0xff] }
  0x3c   : > { %6321 = vmatprep.subr.bf16.mxu0 %v6320_v63  ;;  %6343 = vmatprep.subr.bf16.mxu1 %v7344_v0  ;;  %v534_v63 = vld [vmem:[%s10337_s2 + $0xb8] sm:$0xff]  ;;  %v5153_v48 = vld [vmem:[%s10337_s2 + $0x428] sm:$0xff]  ;;  %v5154_v50 = vld [vmem:[%s10337_s2 + $0x430] sm:$0xff] }
  0x3d   : > { %v6387_v11 = vpack.c.bf16 %v534_v63, %v531_v62  ;;  %v5123_v62 = vld [vmem:[%s10337_s2 + $0x338] sm:$0xff]  ;;  %v5126_v63 = vld [vmem:[%s10337_s2 + $0x350] sm:$0xff] }
  0x3e   : > { %v6412_v3 = vpack.c.bf16 %v5126_v63, %v5123_v62 }
  0x3f   : > { %6323 = vmatpush1.bf16.msra.mxu0 %v6322_v9  ;;  %6345 = vmatpush3.bf16.msra.mxu1 %v6344_v10  ;;  %v6363_v10 = vpack.c.bf16 %v532_v61, %v529_v59  ;;  %v5121_v59 = vld [vmem:[%s10337_s2 + $0x328] sm:$0xff] }
  0x40   : > { %6325 = vmatprep.subr.bf16.mxu0 %v6324_v13  ;;  %6346 = vmatprep.subr.bf16.mxu1 %v7344_v0  ;;  %v535_v13 = vld [vmem:[%s10337_s2 + $0xc0] sm:$0xff] }
  0x43   : > { %6327 = vmatpush1.bf16.msra.mxu0 %v6326_v17  ;;  %6348 = vmatpush3.bf16.msra.mxu1 %v6347_v18  ;;  %v540_v17 = vld [vmem:[%s10337_s2 + $0xe8] sm:$0xff]  ;;  %v542_v18 = vld [vmem:[%s10337_s2 + $0xf8] sm:$0xff] }
  0x44   : > { %733 = vmatprep.subr.mxu0 %v5090_v19  ;;  %5981 = vmatprep.subr.mxu1 %v7346_v1  ;;  %v545_v19 = vld [vmem:[%s10337_s2 + $0x110] sm:$0xff] }
  0x45   : > { %v6369_v23 = vpack.c.bf16 %v545_v19, %v542_v18  ;;  %v5133_v18 = vld [vmem:[%s10337_s2 + $0x388] sm:$0xff]  ;;  %v5135_v19 = vld [vmem:[%s10337_s2 + $0x398] sm:$0xff] }
  0x47   : > { %734 = vmatpush1.msra.mxu0 %v5089_v20  ;;  %5982 = vmatpush3.msra.mxu1 %v5091_v21  ;;  %v6367_v20 = vpack.c.bf16 %v538_v15, %v535_v13  ;;  %v6390_v21 = vpack.c.bf16 %v540_v17, %v537_v16  ;;  %v5131_v16 = vld [vmem:[%s10337_s2 + $0x378] sm:$0xff]  ;;  %v5130_v17 = vld [vmem:[%s10337_s2 + $0x370] sm:$0xff] }
  0x48   : > { %6377 = vmatprep.subr.bf16.mxu1 %v7344_v0  ;;  %6350 = vmatprep.subr.bf16.mxu0 %v6349_v24  ;;  %v544_v24 = vld [vmem:[%s10337_s2 + $0x108] sm:$0xff] }
  0x49   : > { %v6371_v29 = vpack.c.bf16 %v544_v24, %v541_v22  ;;  %v6442_v22 = vpack.c.bf16 %v5133_v18, %v5130_v17  ;;  %v5134_v24 = vld [vmem:[%s10337_s2 + $0x390] sm:$0xff]  ;;  %v5173_v17 = vld [vmem:[%s10337_s2 + $0x468] sm:$0xff]  ;;  %v5176_v18 = vld [vmem:[%s10337_s2 + $0x480] sm:$0xff] }
  0xfb   : > { %v635_v38 = vpop.f32.mrb[0].mxu1  ;;  %v7715_v41 = vpop.f32.mrb[0].mxu0 }
  0xfc   : > { %v5946_v42 = vpop.f32.mrb[1].mxu1  ;;  %5092 = vmatmul.mubr.msk.f32.vlgmr.msra.gmra.mrb[6].mxu0 %vm695_vm2, %v635_v38  ;;  %5984 = vmatmul.mubr.msk.f32.vlgmr.msra.gmra.mrb[6].mxu1 %vm695_vm2, %v635_v38  ;;  %v5927_v43 = vpop.f32.mrb[1].mxu0  ;;  %v554_v38 = vld [vmem:[%s10337_s2 + $0x158] sm:$0xff] }
  0xfd   : > { %6352 = vmatpush1.bf16.msra.mxu0 %v6351_v31  ;;  %6379 = vmatpush3.bf16.msra.mxu1 %v6378_v32  ;;  %v547_v31 = vld [vmem:[%s10337_s2 + $0x120] sm:$0xff]  ;;  %v6373_v32 = vpack.c.bf16 %v551_v28, %v548_v27  ;;  %v5105_v42 = vld [vmem:[%s10336_s1 + $0x38] sm:$0xff]  ;;  %v6422_v27 = vpack.c.bf16 %v5137_v25, %v5134_v24 }
  0xfe   : > { %6354 = vmatprep.subr.bf16.mxu0 %v6353_v34  ;;  %6380 = vmatprep.subr.bf16.mxu1 %v7344_v0  ;;  %v549_v34 = vld [vmem:[%s10337_s2 + $0x130] sm:$0xff]  ;;  %v6375_v36 = vpack.c.bf16 %v550_v33, %v547_v31  ;;  %v5106_v43 = vld [vmem:[%s10336_s1 + $0x40] sm:$0x3]  ;;  %v5139_v28 = vld [vmem:[%s10337_s2 + $0x3b8] sm:$0xff] }
  0xff   : > { %v640_v53 = vpop.f32.mrb[2].mxu1  ;;  %5986 = vmatprep.mubr.msk.f32.mxu1 %vm7345_vm0, %v7346_v1  ;;  %775 = vmatprep.mubr.f32.mxu0 %v7346_v1  ;;  %v7741_v54 = vpop.f32.mrb[2].mxu0  ;;  %v6396_v37 = vpack.c.bf16 %v552_v35, %v549_v34  ;;  %v5144_v31 = vld [vmem:[%s10337_s2 + $0x3e0] sm:$0xff]  ;;  %v5143_v34 = vld [vmem:[%s10337_s2 + $0x3d8] sm:$0xff]  ;;  %v5142_v35 = vld [vmem:[%s10337_s2 + $0x3d0] sm:$0xff] }
 0x100   : > { %v5949_v55 = vpop.f32.mrb[3].mxu1  ;;  %5987 = vmatmul.mubr.msk.f32.gmra.mrb[8].mxu1 %vm695_vm2, %v640_v53  ;;  %5093 = vmatmul.mubr.msk.f32.gmra.mrb[8].mxu0 %vm695_vm2, %v640_v53  ;;  %v5930_v56 = vpop.f32.mrb[3].mxu0  ;;  %v5117_v53 = vld [vmem:[%s10337_s2 + $0x308] sm:$0xff]  ;;  %v5140_v33 = vld [vmem:[%s10337_s2 + $0x3c0] sm:$0xff]  ;;  %v5179_v25 = vld [vmem:[%s10337_s2 + $0x498] sm:$0xff] }
 0x101   : > { %6356 = vmatpush1.bf16.msra.mxu0 %v6355_v44  ;;  %6382 = vmatpush3.bf16.msra.mxu1 %v6381_v45  ;;  %v5111_v44 = vld [vmem:[%s10337_s2 + $0x2d8] sm:$0xff]  ;;  %v5114_v45 = vld [vmem:[%s10337_s2 + $0x2f0] sm:$0xff]  ;;  %v5116_v55 = vld [vmem:[%s10337_s2 + $0x300] sm:$0xff] }
 0x102   : > { %6358 = vmatprep.subr.bf16.mxu0 %v6357_v47  ;;  %6383 = vmatprep.subr.bf16.mxu1 %v7344_v0  ;;  %v6404_v47 = vpack.c.bf16 %v5114_v45, %v5111_v44  ;;  %v5148_v44 = vld [vmem:[%s10337_s2 + $0x400] sm:$0xff] }
 0x103   : > { %v645_v4 = vpop.f32.mrb[4].mxu1  ;;  %5989 = vmatprep.mubr.msk.f32.mxu1 %vm7345_vm0, %v7346_v1  ;;  %781 = vmatprep.mubr.f32.mxu0 %v7346_v1  ;;  %v7767_v6 = vpop.f32.mrb[4].mxu0 }
 0x104   : > { %v5952_v8 = vpop.f32.mrb[5].mxu1  ;;  %5990 = vmatmul.mubr.msk.f32.gmra.mrb[10].mxu1 %vm695_vm2, %v645_v4  ;;  %5094 = vmatmul.mubr.msk.f32.gmra.mrb[10].mxu0 %vm695_vm2, %v645_v4  ;;  %v5933_v9 = vpop.f32.mrb[5].mxu0  ;;  %v5125_v4 = vld [vmem:[%s10337_s2 + $0x348] sm:$0xff] }
 0x105   : > { %6360 = vmatpush1.bf16.msra.mxu0 %v6359_v57  ;;  %6385 = vmatpush3.bf16.msra.mxu1 %v6384_v58  ;;  %v5119_v57 = vld [vmem:[%s10337_s2 + $0x318] sm:$0xff]  ;;  %v5118_v58 = vld [vmem:[%s10337_s2 + $0x310] sm:$0xff]  ;;  %v5129_v9 = vld [vmem:[%s10337_s2 + $0x368] sm:$0xff] }
 0x106   : > { %6362 = vmatprep.subr.bf16.mxu0 %v6361_v60  ;;  %6386 = vmatprep.subr.bf16.mxu1 %v7344_v0  ;;  %v6410_v60 = vpack.c.bf16 %v5119_v57, %v5116_v55  ;;  %v6436_v61 = vpack.c.bf16 %v5121_v59, %v5118_v58  ;;  %v5127_v8 = vld [vmem:[%s10337_s2 + $0x358] sm:$0xff] }
 0x107   : > { %941 = vmatprep.mubr.f32.mxu0 %v7346_v1  ;;  %6022 = vmatprep.mubr.msk.f32.mxu1 %vm7345_vm0, %v7346_v1 }
 0x109   : > { %6364 = vmatpush1.bf16.msra.mxu0 %v6363_v10  ;;  %6388 = vmatpush3.bf16.msra.mxu1 %v6387_v11  ;;  %v5132_v10 = vld [vmem:[%s10337_s2 + $0x380] sm:$0xff]  ;;  %v6414_v11 = vpack.c.bf16 %v5125_v4, %v5122_v2 }
 0x10a   : > { %6366 = vmatprep.subr.bf16.mxu0 %v6365_v14  ;;  %6389 = vmatprep.subr.bf16.mxu1 %v7344_v0  ;;  %v5128_v14 = vld [vmem:[%s10337_s2 + $0x360] sm:$0xff]  ;;  %v6416_v15 = vpack.c.bf16 %v5132_v10, %v5129_v9 }
 0x10d   : > { %6368 = vmatpush1.bf16.msra.mxu0 %v6367_v20  ;;  %6391 = vmatpush3.bf16.msra.mxu1 %v6390_v21  ;;  %v5138_v20 = vld [vmem:[%s10337_s2 + $0x3b0] sm:$0xff]  ;;  %v6418_v21 = vpack.c.bf16 %v5131_v16, %v5128_v14 }
 0x10e   : > { %6370 = vmatprep.subr.bf16.mxu0 %v6369_v23  ;;  %6392 = vmatprep.subr.bf16.mxu1 %v7344_v0  ;;  %v6420_v23 = vpack.c.bf16 %v5138_v20, %v5135_v19  ;;  %v5180_v20 = vld [vmem:[%s10337_s2 + $0x4a0] sm:$0xff] }
 0x111   : > { %6372 = vmatpush1.bf16.msra.mxu0 %v6371_v29  ;;  %6394 = vmatpush3.bf16.msra.mxu1 %v6393_v30  ;;  %v6445_v29 = vpack.c.bf16 %v5139_v28, %v5136_v26  ;;  %v5141_v30 = vld [vmem:[%s10337_s2 + $0x3c8] sm:$0xff]  ;;  %v5182_v26 = vld [vmem:[%s10337_s2 + $0x4b0] sm:$0xff] }
 0x112   : > { %6374 = vmatprep.subr.bf16.mxu0 %v6373_v32  ;;  %6395 = vmatprep.subr.bf16.mxu1 %v7344_v0  ;;  %v6424_v32 = vpack.c.bf16 %v5144_v31, %v5141_v30  ;;  %v5186_v28 = vld [vmem:[%s10337_s2 + $0x4d0] sm:$0xff]  ;;  %v5169_v30 = vld [vmem:[%s10337_s2 + $0x448] sm:$0xff]  ;;  %v5172_v31 = vld [vmem:[%s10337_s2 + $0x460] sm:$0xff] }
 0x115   : > { %6376 = vmatpush1.bf16.msra.mxu0 %v6375_v36  ;;  %6397 = vmatpush3.bf16.msra.mxu1 %v6396_v37  ;;  %v6426_v36 = vpack.c.bf16 %v5143_v34, %v5140_v33  ;;  %v5145_v37 = vld [vmem:[%s10337_s2 + $0x3e8] sm:$0xff] }
 0x116   : > { %905 = vmatprep.subr.mxu0 %v554_v38  ;;  %6020 = vmatprep.subr.mxu1 %v7346_v1  ;;  %v6448_v38 = vpack.c.bf16 %v5145_v37, %v5142_v35  ;;  %v5185_v35 = vld [vmem:[%s10337_s2 + $0x4c8] sm:$0xff] }
 0x119   : > { %906 = vmatpush1.msra.mxu0 %v553_v39  ;;  %6021 = vmatpush3.msra.mxu1 %v555_v40  ;;  %v5147_v39 = vld [vmem:[%s10337_s2 + $0x3f8] sm:$0xff]  ;;  %v5150_v40 = vld [vmem:[%s10337_s2 + $0x410] sm:$0xff] }
 0x11a   : > { %5098 = vmatmul.mubr.msk.f32.vlgmr.msra.gmra.mrb[6].mxu0 %vm695_vm2, %v7715_v41  ;;  %6023 = vmatmul.mubr.msk.f32.vlgmr.msra.gmra.mrb[12].mxu1 %vm695_vm2, %v7715_v41  ;;  %v5104_v41 = vld [vmem:[%s10336_s1 + $0x30] sm:$0xff] }
 0x11b   : > { %6398 = vmatprep.subr.bf16.mxu0 %v7344_v0  ;;  %947 = vmatprep.mubr.f32.mxu0 %v7346_v1 }
 0x11c   : > { %6025 = vmatprep.mubr.msk.f32.mxu1 %vm7345_vm0, %v7346_v1  ;;  %6400 = vmatpush3.bf16.msra.mxu0 %v7476_v5 }
 0x11d   : > { %6401 = vmatprep.subr.bf16.mxu0 %v7344_v0  ;;  %6432 = vmatprep.subr.bf16.mxu1 %v7344_v0 }
 0x11e   : > { %5099 = vmatmul.mubr.msk.f32.gmra.mrb[8].mxu0 %vm695_vm2, %v7741_v54  ;;  %6026 = vmatmul.mubr.msk.f32.gmra.mrb[14].mxu1 %vm695_vm2, %v7741_v54  ;;  %v5120_v54 = vld [vmem:[%s10337_s2 + $0x320] sm:$0xff] }
 0x11f   : > { %953 = vmatprep.mubr.f32.mxu0 %v7346_v1  ;;  %6028 = vmatprep.mubr.msk.f32.mxu1 %vm7345_vm0, %v7346_v1  ;;  %v6408_v56 = vpack.c.bf16 %v5120_v54, %v5117_v53 }
 0x120   : > { %6403 = vmatpush3.bf16.msra.mxu0 %v7480_v7  ;;  %6434 = vmatpush3.bf16.msra.mxu1 %v6433_v52  ;;  %v5171_v52 = vld [vmem:[%s10337_s2 + $0x458] sm:$0xff] }
 0x121   : > { %6039 = vmatprep.subr.mxu0 %v7346_v1  ;;  %6435 = vmatprep.subr.bf16.mxu1 %v7344_v0 }
 0x122   : > { %5100 = vmatmul.mubr.msk.f32.gmra.mrb[10].mxu0 %vm695_vm2, %v7767_v6  ;;  %6029 = vmatmul.mubr.msk.f32.gmra.mrb[16].mxu1 %vm695_vm2, %v7767_v6  ;;  %v5124_v6 = vld [vmem:[%s10337_s2 + $0x340] sm:$0xff] }
 0x123   : > { %6041 = vmatprep.mubr.msk.f32.mxu0 %vm7345_vm0, %v7346_v1  ;;  %6080 = vmatprep.mubr.msk.f32.mxu1 %vm7345_vm0, %v7346_v1  ;;  %v6439_v13 = vpack.c.bf16 %v5127_v8, %v5124_v6  ;;  %v5167_v6 = vld [vmem:[%s10337_s2 + $0x438] sm:$0xff]  ;;  %v5170_v8 = vld [vmem:[%s10337_s2 + $0x450] sm:$0xff] }
 0x124   : > { %6040 = vmatpush3.msra.mxu0 %v7501_v12  ;;  %6437 = vmatpush3.bf16.msra.mxu1 %v6436_v61  ;;  %v6461_v14 = vpack.c.bf16 %v5170_v8, %v5167_v6  ;;  %v5199_v6 = vld [vmem:[%s10337_s2 + $0x538] sm:$0xff] }
 0x125   : > { %6405 = vmatprep.subr.bf16.mxu0 %v6404_v47  ;;  %6438 = vmatprep.subr.bf16.mxu1 %v7344_v0  ;;  %v6451_v47 = vpack.c.bf16 %v5151_v46, %v5148_v44 }
 0x126   : > { %6042 = vmatmul.mubr.msk.f32.vlgmr.msra.gmra.mrb[12].mxu0 %vm421_vm1, %v5104_v41  ;;  %v6428_v41 = vpack.c.bf16 %v5150_v40, %v5147_v39  ;;  %v5195_v39 = vld [vmem:[%s10337_s2 + $0x518] sm:$0xff]  ;;  %v5161_v40 = vld [vmem:[%s10336_s1 + $0x48] sm:$0xff] }
 0x127   : > { %6044 = vmatprep.mubr.msk.f32.mxu0 %vm7345_vm0, %v7346_v1  ;;  %6407 = vmatpush1.bf16.msra.mxu0 %v6406_v51  ;;  %v5168_v51 = vld [vmem:[%s10337_s2 + $0x440] sm:$0xff] }
 0x128   : > { %6409 = vmatprep.subr.bf16.mxu0 %v6408_v56  ;;  %6440 = vmatpush3.bf16.msra.mxu1 %v6439_v13  ;;  %v6459_v53 = vpack.c.bf16 %v5171_v52, %v5168_v51  ;;  %v5177_v13 = vld [vmem:[%s10337_s2 + $0x488] sm:$0xff]  ;;  %v5187_v51 = vld [vmem:[%s10337_s2 + $0x4d8] sm:$0xff]  ;;  %v5190_v52 = vld [vmem:[%s10337_s2 + $0x4f0] sm:$0xff] }
 0x129   : > { %6441 = vmatprep.subr.bf16.mxu1 %v7344_v0 }
 0x12a   : > { %6045 = vmatmul.mubr.msk.f32.gmra.mrb[14].mxu0 %vm421_vm1, %v5105_v42  ;;  %v5146_v42 = vld [vmem:[%s10337_s2 + $0x3f0] sm:$0xff] }
 0x12b   : > { %6047 = vmatprep.mubr.msk.f32.mxu0 %vm7345_vm0, %v7346_v1  ;;  %6411 = vmatpush1.bf16.msra.mxu0 %v6410_v60 }
 0x12c   : > { %6413 = vmatprep.subr.bf16.mxu0 %v6412_v3  ;;  %6443 = vmatpush3.bf16.msra.mxu1 %v6442_v22  ;;  %v6465_v22 = vpack.c.bf16 %v5176_v18, %v5173_v17  ;;  %v5206_v17 = vld [vmem:[%s10337_s2 + $0x570] sm:$0xff]  ;;  %v5205_v18 = vld [vmem:[%s10337_s2 + $0x568] sm:$0xff] }
 0x12d   : > { %6444 = vmatprep.subr.bf16.mxu1 %v7344_v0 }
 0x12e   : > { %6048 = vmatmul.mubr.msk.f32.gmra.mrb[16].mxu0 %vm421_vm1, %v5106_v43  ;;  %v5149_v43 = vld [vmem:[%s10337_s2 + $0x408] sm:$0xff] }
 0x12f   : > { %1252 = vmatprep.mubr.f32.mxu0 %v7346_v1  ;;  %6415 = vmatpush1.bf16.msra.mxu0 %v6414_v11  ;;  %v6430_v45 = vpack.c.bf16 %v5149_v43, %v5146_v42  ;;  %v5174_v11 = vld [vmem:[%s10337_s2 + $0x470] sm:$0xff]  ;;  %v5175_v42 = vld [vmem:[%s10337_s2 + $0x478] sm:$0xff] }
 0x130   : > { %6417 = vmatprep.subr.bf16.mxu0 %v6416_v15  ;;  %6446 = vmatpush3.bf16.msra.mxu1 %v6445_v29  ;;  %v6463_v16 = vpack.c.bf16 %v5177_v13, %v5174_v11  ;;  %v5189_v29 = vld [vmem:[%s10337_s2 + $0x4e8] sm:$0xff]  ;;  %v5178_v43 = vld [vmem:[%s10337_s2 + $0x490] sm:$0xff]  ;;  %v5204_v13 = vld [vmem:[%s10337_s2 + $0x560] sm:$0xff] }
 0x131   : > { %6447 = vmatprep.subr.bf16.mxu1 %v7344_v0  ;;  %v6471_v34 = vpack.c.bf16 %v5189_v29, %v5186_v28  ;;  %v6491_v46 = vpack.c.bf16 %v5178_v43, %v5175_v42  ;;  %v5228_v43 = vld [vmem:[%s10337_s2 + $0x5c0] sm:$0xff] }
 0x133   : > { %6419 = vmatpush1.bf16.msra.mxu0 %v6418_v21  ;;  %v5183_v21 = vld [vmem:[%s10337_s2 + $0x4b8] sm:$0xff] }
 0x134   : > { %6421 = vmatprep.subr.bf16.mxu0 %v6420_v23  ;;  %6449 = vmatpush3.bf16.msra.mxu1 %v6448_v38  ;;  %v6467_v24 = vpack.c.bf16 %v5183_v21, %v5180_v20  ;;  %v5192_v38 = vld [vmem:[%s10337_s2 + $0x500] sm:$0xff] }
 0x135   : > { %6450 = vmatprep.subr.bf16.mxu1 %v7344_v0  ;;  %v5208_v20 = vld [vmem:[%s10337_s2 + $0x580] sm:$0xff] }
 0x136   : > { %v6506_v21 = vpack.c.bf16 %v5208_v20, %v5205_v18  ;;  %v5252_v18 = vld [vmem:[%s10337_s2 + $0x680] sm:$0xff] }
 0x137   : > { %6423 = vmatpush1.bf16.msra.mxu0 %v6422_v27 }
 0x138   : > { %6425 = vmatprep.subr.bf16.mxu0 %v6424_v32  ;;  %6452 = vmatpush3.bf16.msra.mxu1 %v6451_v47  ;;  %v6469_v32 = vpack.c.bf16 %v5182_v26, %v5179_v25  ;;  %v5181_v47 = vld [vmem:[%s10337_s2 + $0x4a8] sm:$0xff] }
 0x139   : > { %6078 = vmatprep.subr.mxu1 %v7346_v1 }
 0x13b   : > { %6427 = vmatpush1.bf16.msra.mxu0 %v6426_v36  ;;  %v5188_v36 = vld [vmem:[%s10337_s2 + $0x4e0] sm:$0xff] }
 0x13c   : > { %6429 = vmatprep.subr.bf16.mxu0 %v6428_v41  ;;  %6079 = vmatpush3.msra.mxu1 %v5154_v50  ;;  %v6488_v41 = vpack.c.bf16 %v5172_v31, %v5169_v30  ;;  %v6473_v44 = vpack.c.bf16 %v5188_v36, %v5185_v35 }
 0x13d   : > { %6453 = vmatprep.subr.bf16.mxu1 %v7344_v0 }
 0x13f   : > { %6431 = vmatpush1.bf16.msra.mxu0 %v6430_v45  ;;  %v6475_v45 = vpack.c.bf16 %v5195_v39, %v5192_v38 }
 0x140   : > { %1216 = vmatprep.subr.mxu0 %v5153_v48  ;;  %v5184_v48 = vld [vmem:[%s10337_s2 + $0x4c0] sm:$0xff] }
 0x141   : > { %v6494_v50 = vpack.c.bf16 %v5184_v48, %v5181_v47 }
 0x143   : > { %1217 = vmatpush1.msra.mxu0 %v5152_v49  ;;  %v5163_v49 = vld [vmem:[%s10336_s1 + $0x58] sm:$0x3] }
 0x144   : > { %6460 = vmatprep.subr.bf16.mxu0 %v6459_v53  ;;  %v6497_v53 = vpack.c.bf16 %v5190_v52, %v5187_v51  ;;  %v5218_v52 = vld [vmem:[%s10336_s1 + $0x60] sm:$0xff] }
 0x1cf   : > { %v854_v54 = vpop.f32.mrb[6].mxu1 }
 0x1d0   : > { %v5985_v55 = vpop.f32.mrb[7].mxu1 }
 0x1d1   : > { %v5194_v55 = vld [vmem:[%s10337_s2 + $0x510] sm:$0xff] }
 0x1d3   : > { %v859_v56 = vpop.f32.mrb[8].mxu1 }
 0x1d4   : > { %v5988_v57 = vpop.f32.mrb[9].mxu1 }
 0x1d7   : > { %v864_v58 = vpop.f32.mrb[10].mxu1 }
 0x1d8   : > { %v5991_v59 = vpop.f32.mrb[11].mxu1 }
 0x1ed   : > { %v1026_v60 = vpop.f32.mrb[12].mxu1 }
 0x1ee   : > { %v8031_v61 = vadd.f32 %v1026_v60, %v854_v54  ;;  %v6024_v62 = vpop.f32.mrb[13].mxu1  ;;  %v5191_v54 = vld [vmem:[%s10337_s2 + $0x4f8] sm:$0xff]  ;;  %v5198_v60 = vld [vmem:[%s10337_s2 + $0x530] sm:$0xff] }
 0x1ef   : > { %v6477_v57 = vpack.c.bf16 %v5194_v55, %v5191_v54  ;;  %v5201_v62 = vld [vmem:[%s10337_s2 + $0x548] sm:$0xff]  ;;  %v7279_v54 = vld [vmem:[%s7471_s19 + $0x20] sm:$0xff] }
 0x1f1   : > { %v1031_v63 = vpop.f32.mrb[14].mxu1 }
 0x1f2   : > { %v8033_v2 = vadd.f32 %v1031_v63, %v859_v56  ;;  %v6027_v3 = vpop.f32.mrb[15].mxu1  ;;  %v5193_v56 = vld [vmem:[%s10337_s2 + $0x508] sm:$0xff]  ;;  %v6479_v63 = vpack.c.bf16 %v5201_v62, %v5198_v60  ;;  %v5240_v60 = vld [vmem:[%s10337_s2 + $0x620] sm:$0xff] }
 0x1f3   : > { %v5197_v3 = vld [vmem:[%s10337_s2 + $0x528] sm:$0xff] }
 0x1f4   : > { %v5219_v62 = vld [vmem:[%s10336_s1 + $0x68] sm:$0xff] }
 0x1f5   : > { %v1036_v4 = vpop.f32.mrb[16].mxu1 }
 0x1f6   : > { %v8041_v9 = vadd.f32 %v1036_v4, %v864_v58  ;;  %v6030_v10 = vpop.f32.mrb[17].mxu1  ;;  %v5196_v58 = vld [vmem:[%s10337_s2 + $0x520] sm:$0xff] }
 0x1f7   : > { %v6500_v59 = vpack.c.bf16 %v5196_v58, %v5193_v56  ;;  %v5200_v4 = vld [vmem:[%s10337_s2 + $0x540] sm:$0xff]  ;;  %v5202_v10 = vld [vmem:[%s10337_s2 + $0x550] sm:$0xff] }
 0x1f8   : > { %v6481_v8 = vpack.c.bf16 %v5200_v4, %v5197_v3  ;;  %v6503_v11 = vpack.c.bf16 %v5202_v10, %v5199_v6  ;;  %v5230_v56 = vld [vmem:[%s10337_s2 + $0x5d0] sm:$0xff]  ;;  %v5236_v4 = vld [vmem:[%s10337_s2 + $0x600] sm:$0xff]  ;;  %v5239_v6 = vld [vmem:[%s10337_s2 + $0x618] sm:$0xff] }
 0x1f9   : > { %v1119_v15 = vpop.f32.mrb[12].mxu0  ;;  %v5246_v10 = vld [vmem:[%s10337_s2 + $0x650] sm:$0xff] }
 0x1fa   : > { %v6043_v19 = vpop.f32.mrb[13].mxu0  ;;  %5155 = vmatmul.mubr.msk.f32.vlgmr.msra.gmra.mrb[6].mxu0 %vm695_vm2, %v1119_v15  ;;  %6081 = vmatmul.mubr.msk.f32.vlgmr.msra.gmra.mrb[18].mxu1 %vm695_vm2, %v1119_v15 }
 0x1fb   : > { %1258 = vmatprep.mubr.f32.mxu0 %v7346_v1  ;;  %6083 = vmatprep.mubr.msk.f32.mxu1 %vm7345_vm0, %v7346_v1 }
 0x1fc   : > { %6455 = vmatpush3.bf16.msra.mxu1 %v7476_v5  ;;  %6462 = vmatpush1.bf16.msra.mxu0 %v6461_v14  ;;  %v5207_v14 = vld [vmem:[%s10337_s2 + $0x578] sm:$0xff] }
 0x1fd   : > { %v1124_v23 = vpop.f32.mrb[14].mxu0  ;;  %6456 = vmatprep.subr.bf16.mxu1 %v7344_v0  ;;  %6464 = vmatprep.subr.bf16.mxu0 %v6463_v16  ;;  %v6483_v15 = vpack.c.bf16 %v5207_v14, %v5204_v13  ;;  %v5203_v16 = vld [vmem:[%s10337_s2 + $0x558] sm:$0xff]  ;;  %v6524_v13 = vpack.c.bf16 %v5239_v6, %v5236_v4 }
 0x1fe   : > { %v6046_v27 = vpop.f32.mrb[15].mxu0  ;;  %5156 = vmatmul.mubr.msk.f32.gmra.mrb[8].mxu0 %vm695_vm2, %v1124_v23  ;;  %6084 = vmatmul.mubr.msk.f32.gmra.mrb[20].mxu1 %vm695_vm2, %v1124_v23  ;;  %v6485_v19 = vpack.c.bf16 %v5206_v17, %v5203_v16  ;;  %v5209_v23 = vld [vmem:[%s10337_s2 + $0x588] sm:$0xff] }
 0x1ff   : > { %1264 = vmatprep.mubr.f32.mxu0 %v7346_v1  ;;  %6086 = vmatprep.mubr.msk.f32.mxu1 %vm7345_vm0, %v7346_v1  ;;  %v5245_v16 = vld [vmem:[%s10337_s2 + $0x648] sm:$0xff] }
 0x200   : > { %6458 = vmatpush3.bf16.msra.mxu1 %v7480_v7  ;;  %6466 = vmatpush1.bf16.msra.mxu0 %v6465_v22  ;;  %v5210_v22 = vld [vmem:[%s10337_s2 + $0x590] sm:$0xff]  ;;  %v5249_v17 = vld [vmem:[%s10337_s2 + $0x668] sm:$0xff] }
 0x201   : > { %v1129_v33 = vpop.f32.mrb[16].mxu0  ;;  %6097 = vmatprep.subr.mxu1 %v7346_v1  ;;  %6468 = vmatprep.subr.bf16.mxu0 %v6467_v24  ;;  %v5211_v24 = vld [vmem:[%s10337_s2 + $0x598] sm:$0xff]  ;;  %v6530_v20 = vpack.c.bf16 %v5252_v18, %v5249_v17 }
 0x202   : > { %v6049_v37 = vpop.f32.mrb[17].mxu0  ;;  %5157 = vmatmul.mubr.msk.f32.gmra.mrb[10].mxu0 %vm695_vm2, %v1129_v33  ;;  %6087 = vmatmul.mubr.msk.f32.gmra.mrb[22].mxu1 %vm695_vm2, %v1129_v33  ;;  %v5229_v33 = vld [vmem:[%s10337_s2 + $0x5c8] sm:$0xff] }
 0x203   : > { %6099 = vmatprep.mubr.msk.f32.mxu1 %vm7345_vm0, %v7346_v1  ;;  %1572 = vmatprep.mubr.f32.mxu0 %v7346_v1  ;;  %v5235_v37 = vld [vmem:[%s10337_s2 + $0x5f8] sm:$0xff] }
 0x204   : > { %6098 = vmatpush3.msra.mxu1 %v7501_v12  ;;  %6470 = vmatpush1.bf16.msra.mxu0 %v6469_v32  ;;  %v5162_v12 = vld [vmem:[%s10336_s1 + $0x50] sm:$0xff] }
 0x205   : > { %6487 = vmatprep.subr.bf16.mxu1 %v7344_v0  ;;  %6472 = vmatprep.subr.bf16.mxu0 %v6471_v34  ;;  %v5226_v32 = vld [vmem:[%s10337_s2 + $0x5b0] sm:$0xff] }
 0x206   : > { %6100 = vmatmul.mubr.msk.f32.vlgmr.msra.gmra.mrb[24].mxu1 %vm421_vm1, %v5161_v40  ;;  %v6543_v35 = vpack.c.bf16 %v5229_v33, %v5226_v32  ;;  %v5238_v40 = vld [vmem:[%s10337_s2 + $0x610] sm:$0xff]  ;;  %v5257_v33 = vld [vmem:[%s10337_s2 + $0x6a8] sm:$0xff] }
 0x207   : > { %6102 = vmatprep.mubr.msk.f32.mxu1 %vm7345_vm0, %v7346_v1  ;;  %6489 = vmatpush3.bf16.msra.mxu1 %v6488_v41  ;;  %v5241_v41 = vld [vmem:[%s10337_s2 + $0x628] sm:$0xff]  ;;  %v5254_v32 = vld [vmem:[%s10337_s2 + $0x690] sm:$0xff] }
 0x208   : > { %6490 = vmatprep.subr.bf16.mxu1 %v7344_v0  ;;  %6474 = vmatpush1.bf16.msra.mxu0 %v6473_v44  ;;  %v5224_v44 = vld [vmem:[%s10337_s2 + $0x5a0] sm:$0xff] }
 0x209   : > { %6476 = vmatprep.subr.bf16.mxu0 %v6475_v45  ;;  %v5227_v45 = vld [vmem:[%s10337_s2 + $0x5b8] sm:$0xff] }
 0x20a   : > { %6103 = vmatmul.mubr.msk.f32.gmra.mrb[26].mxu1 %vm421_vm1, %v5162_v12  ;;  %v5231_v12 = vld [vmem:[%s10337_s2 + $0x5d8] sm:$0xff] }
 0x20b   : > { %6105 = vmatprep.mubr.msk.f32.mxu1 %vm7345_vm0, %v7346_v1  ;;  %6492 = vmatpush3.bf16.msra.mxu1 %v6491_v46  ;;  %v6549_v46 = vpack.c.bf16 %v5241_v41, %v5238_v40  ;;  %v5263_v40 = vld [vmem:[%s10337_s2 + $0x6d8] sm:$0xff]  ;;  %v5262_v41 = vld [vmem:[%s10337_s2 + $0x6d0] sm:$0xff] }
 0x20c   : > { %6493 = vmatprep.subr.bf16.mxu1 %v7344_v0  ;;  %6478 = vmatpush1.bf16.msra.mxu0 %v6477_v57  ;;  %v5233_v57 = vld [vmem:[%s10337_s2 + $0x5e8] sm:$0xff] }
 0x20d   : > { %6480 = vmatprep.subr.bf16.mxu0 %v6479_v63  ;;  %v6520_v63 = vpack.c.bf16 %v5233_v57, %v5230_v56  ;;  %v2002_v57 = vlaneseq }
 0x20e   : > { %6106 = vmatmul.mubr.msk.f32.gmra.mrb[28].mxu1 %vm421_vm1, %v5163_v49  ;;  %v5244_v49 = vld [vmem:[%s10337_s2 + $0x640] sm:$0xff] }
 0x20f   : > { %6495 = vmatpush3.bf16.msra.mxu1 %v6494_v50  ;;  %6138 = vmatprep.mubr.msk.f32.mxu1 %vm7345_vm0, %v7346_v1  ;;  %v5247_v50 = vld [vmem:[%s10337_s2 + $0x658] sm:$0xff] }
 0x210   : > { %6496 = vmatprep.subr.bf16.mxu1 %v7344_v0  ;;  %6482 = vmatpush1.bf16.msra.mxu0 %v6481_v8  ;;  %v6552_v58 = vpack.c.bf16 %v5247_v50, %v5244_v49  ;;  %v5243_v8 = vld [vmem:[%s10337_s2 + $0x638] sm:$0xff] }
 0x211   : > { %6484 = vmatprep.subr.bf16.mxu0 %v6483_v15  ;;  %v6526_v14 = vpack.c.bf16 %v5246_v10, %v5243_v8  ;;  %v5242_v15 = vld [vmem:[%s10337_s2 + $0x630] sm:$0xff] }
 0x213   : > { %6498 = vmatpush3.bf16.msra.mxu1 %v6497_v53  ;;  %v6516_v53 = vpack.c.bf16 %v5227_v45, %v5224_v44  ;;  %v5267_v44 = vld [vmem:[%s10337_s2 + $0x6f8] sm:$0xff]  ;;  %v5266_v45 = vld [vmem:[%s10337_s2 + $0x6f0] sm:$0xff] }
 0x214   : > { %6499 = vmatprep.subr.bf16.mxu1 %v7344_v0  ;;  %6486 = vmatpush1.bf16.msra.mxu0 %v6485_v19  ;;  %v6528_v19 = vpack.c.bf16 %v5245_v16, %v5242_v15 }
 0x215   : > { %1536 = vmatprep.subr.mxu0 %v5210_v22  ;;  %v5251_v22 = vld [vmem:[%s10337_s2 + $0x678] sm:$0xff] }
 0x217   : > { %6501 = vmatpush3.bf16.msra.mxu1 %v6500_v59  ;;  %v5237_v59 = vld [vmem:[%s10337_s2 + $0x608] sm:$0xff] }
 0x218   : > { %6502 = vmatprep.subr.bf16.mxu1 %v7344_v0  ;;  %1537 = vmatpush1.msra.mxu0 %v5209_v23  ;;  %v6522_v3 = vpack.c.bf16 %v5240_v60, %v5237_v59  ;;  %v5250_v23 = vld [vmem:[%s10337_s2 + $0x670] sm:$0xff]  ;;  %v2000_v60 = vld [vmem:[%s10338_s3] sm:$0x7] }
 0x219   : > { %6508 = vmatprep.subr.bf16.mxu0 %v7344_v0 }
 0x21b   : > { %6504 = vmatpush3.bf16.msra.mxu1 %v6503_v11  ;;  %v5220_v11 = vld [vmem:[%s10336_s1 + $0x70] sm:$0x3] }
 0x21c   : > { %6505 = vmatprep.subr.bf16.mxu1 %v7344_v0 }
 0x21f   : > { %6507 = vmatpush3.bf16.msra.mxu1 %v6506_v21  ;;  %v5248_v21 = vld [vmem:[%s10337_s2 + $0x660] sm:$0xff] }
 0x220   : > { %6136 = vmatprep.subr.mxu1 %v7346_v1 }
 0x223   : > { %6137 = vmatpush3.msra.mxu1 %v5211_v24  ;;  %v6532_v24 = vpack.c.bf16 %v5251_v22, %v5248_v21 }
 0x224   : > { %6542 = vmatprep.subr.bf16.mxu1 %v7344_v0 }
 0x2cd   : > { %v1337_v25 = vpop.f32.mrb[18].mxu1 }
 0x2ce   : > { %v8215_v26 = vadd.f32 %v1337_v25, %v8031_v61  ;;  %v6082_v27 = vpop.f32.mrb[19].mxu1  ;;  %v5253_v25 = vld [vmem:[%s10337_s2 + $0x688] sm:$0xff] }
 0x2cf   : > { %v6555_v27 = vpack.c.bf16 %v5253_v25, %v5250_v23 }
 0x2d1   : > { %v1342_v28 = vpop.f32.mrb[20].mxu1 }
 0x2d2   : > { %v8218_v29 = vadd.f32 %v1342_v28, %v8033_v2  ;;  %v6085_v30 = vpop.f32.mrb[21].mxu1  ;;  %v5232_v2 = vld [vmem:[%s10337_s2 + $0x5e0] sm:$0xff]  ;;  %v5255_v28 = vld [vmem:[%s10337_s2 + $0x698] sm:$0xff] }
 0x2d3   : > { %v5258_v30 = vld [vmem:[%s10337_s2 + $0x6b0] sm:$0xff] }
 0x2d5   : > { %v1347_v31 = vpop.f32.mrb[22].mxu1 }
 0x2d6   : > { %v8227_v34 = vadd.f32 %v1347_v31, %v8041_v9  ;;  %v6088_v61 = vpop.f32.mrb[23].mxu1  ;;  %v6546_v9 = vpack.c.bf16 %v5235_v37, %v5232_v2  ;;  %v6534_v31 = vpack.c.bf16 %v5258_v30, %v5255_v28  ;;  %v5261_v37 = vld [vmem:[%s10337_s2 + $0x6c8] sm:$0xff] }
 0x2d7   : > { %v5256_v61 = vld [vmem:[%s10337_s2 + $0x6a0] sm:$0xff] }
 0x2d9   : > { %v1439_v36 = vpop.f32.mrb[24].mxu1 }
 0x2da   : > { %v6101_v38 = vpop.f32.mrb[25].mxu1  ;;  %5212 = vmatmul.mubr.msk.f32.vlgmr.msra.gmra.mrb[6].mxu0 %vm695_vm2, %v1439_v36  ;;  %6139 = vmatmul.mubr.msk.f32.vlgmr.msra.gmra.mrb[30].mxu1 %vm695_vm2, %v1439_v36  ;;  %v5259_v36 = vld [vmem:[%s10337_s2 + $0x6b8] sm:$0xff] }
 0x2db   : > { %1578 = vmatprep.mubr.f32.mxu0 %v7346_v1  ;;  %6141 = vmatprep.mubr.msk.f32.mxu1 %vm7345_vm0, %v7346_v1  ;;  %v6558_v2 = vpack.c.bf16 %v5259_v36, %v5256_v61  ;;  %v5264_v38 = vld [vmem:[%s10337_s2 + $0x6e0] sm:$0xff] }
 0x2dc   : > { %6510 = vmatpush3.bf16.msra.mxu0 %v7476_v5  ;;  %6544 = vmatpush3.bf16.msra.mxu1 %v6543_v35  ;;  %v5225_v5 = vld [vmem:[%s10337_s2 + $0x5a8] sm:$0xff]  ;;  %v6536_v35 = vpack.c.bf16 %v5257_v33, %v5254_v32 }
 0x2dd   : > { %v1444_v39 = vpop.f32.mrb[26].mxu1  ;;  %6511 = vmatprep.subr.bf16.mxu0 %v7344_v0  ;;  %6545 = vmatprep.subr.bf16.mxu1 %v7344_v0  ;;  %v6514_v48 = vpack.c.bf16 %v5228_v43, %v5225_v5  ;;  %v5265_v5 = vld [vmem:[%s10337_s2 + $0x6e8] sm:$0xff] }
 0x2de   : > { %v6104_v42 = vpop.f32.mrb[27].mxu1  ;;  %5213 = vmatmul.mubr.msk.f32.gmra.mrb[8].mxu0 %vm695_vm2, %v1444_v39  ;;  %6142 = vmatmul.mubr.msk.f32.gmra.mrb[32].mxu1 %vm695_vm2, %v1444_v39  ;;  %v5260_v39 = vld [vmem:[%s10337_s2 + $0x6c0] sm:$0xff]  ;;  %v6561_v43 = vpack.c.bf16 %v5265_v5, %v5262_v41  ;;  %v5287_v5 = vld [vmem:[%s10340_s5 + $0x248] sm:$0xff] }
 0x2df   : > { %1584 = vmatprep.mubr.f32.mxu0 %v7346_v1  ;;  %6144 = vmatprep.mubr.msk.f32.mxu1 %vm7345_vm0, %v7346_v1  ;;  %v6540_v42 = vpack.c.bf16 %v5263_v40, %v5260_v39 }
 0x2e0   : > { %6513 = vmatpush3.bf16.msra.mxu0 %v7480_v7  ;;  %6547 = vmatpush3.bf16.msra.mxu1 %v6546_v9  ;;  %v5234_v7 = vld [vmem:[%s10337_s2 + $0x5f0] sm:$0xff]  ;;  %v6538_v9 = vpack.c.bf16 %v5264_v38, %v5261_v37 }
 0x2e1   : > { %v1449_v47 = vpop.f32.mrb[28].mxu1  ;;  %6155 = vmatprep.subr.mxu0 %v7346_v1  ;;  %6548 = vmatprep.subr.bf16.mxu1 %v7344_v0  ;;  %v6518_v55 = vpack.c.bf16 %v5234_v7, %v5231_v12  ;;  %v5268_v12 = vld [vmem:[%s10337_s2 + $0x700] sm:$0xff] }
 0x2e2   : > { %v6107_v51 = vpop.f32.mrb[29].mxu1  ;;  %5214 = vmatmul.mubr.msk.f32.gmra.mrb[10].mxu0 %vm695_vm2, %v1449_v47  ;;  %6145 = vmatmul.mubr.msk.f32.gmra.mrb[34].mxu1 %vm695_vm2, %v1449_v47 }
 0x2e3   : > { %6157 = vmatprep.mubr.msk.f32.mxu0 %vm7345_vm0, %v7346_v1  ;;  %6196 = vmatprep.mubr.msk.f32.mxu1 %vm7345_vm0, %v7346_v1 }
 0x2e4   : > { %6156 = vmatpush3.msra.mxu0 %v7279_v54  ;;  %6550 = vmatpush3.bf16.msra.mxu1 %v6549_v46 }
 0x2e5   : > { %6515 = vmatprep.subr.bf16.mxu0 %v6514_v48  ;;  %6551 = vmatprep.subr.bf16.mxu1 %v7344_v0 }
 0x2e6   : > { %6158 = vmatmul.mubr.msk.f32.vlgmr.msra.gmra.mrb[18].mxu0 %vm421_vm1, %v5218_v52 }
 0x2e7   : > { %6160 = vmatprep.mubr.msk.f32.mxu0 %vm7345_vm0, %v7346_v1  ;;  %6517 = vmatpush1.bf16.msra.mxu0 %v6516_v53 }
 0x2e8   : > { %6519 = vmatprep.subr.bf16.mxu0 %v6518_v55  ;;  %6553 = vmatpush3.bf16.msra.mxu1 %v6552_v58  ;;  %v8420_v58 = vshrl.u32 %v2002_v57, 7  ;;  %v5294_v57 = vld [vmem:[%s10340_s5 + $0x280] sm:$0xff] }
 0x2e9   : > { %6554 = vmatprep.subr.bf16.mxu1 %v7344_v0 }
 0x2ea   : > { %6161 = vmatmul.mubr.msk.f32.gmra.mrb[20].mxu0 %vm421_vm1, %v5219_v62  ;;  %v2004_v59 = vsub.s32 0, %v8420_v58  ;;  %v2008_v62 = vsub.s32 1, %v8420_v58 }
 0x2eb   : > { %6163 = vmatprep.mubr.msk.f32.mxu0 %vm7345_vm0, %v7346_v1  ;;  %6521 = vmatpush1.bf16.msra.mxu0 %v6520_v63  ;;  %v2012_v63 = vsub.s32 2, %v8420_v58  ;;  %v5600_v58 = vld [vmem:[%s10342_s7 + $0x2] sm:$0x3] }
 0x2ec   : > { %6523 = vmatprep.subr.bf16.mxu0 %v6522_v3  ;;  %6556 = vmatpush3.bf16.msra.mxu1 %v6555_v27  ;;  %v2005_v3 = vrot.slane %v2000_v60, %v2004_v59  ;;  %v2009_v8 = vrot.slane %v2000_v60, %v2008_v62 }
 0x2ed   : > { %6557 = vmatprep.subr.bf16.mxu1 %v7344_v0 }
 0x2ee   : > { %6164 = vmatmul.mubr.msk.f32.gmra.mrb[22].mxu0 %vm421_vm1, %v5220_v11  ;;  %v2013_v11 = vrot.slane %v2000_v60, %v2012_v63  ;;  %v5296_v60 = vld [vmem:[%s10340_s5 + $0x290] sm:$0xff]  ;;  %v5299_v63 = vld [vmem:[%s10340_s5 + $0x2a8] sm:$0xff] }
 0x2ef   : > { %6525 = vmatpush1.bf16.msra.mxu0 %v6524_v13  ;;  %1892 = vmatprep.mubr.f32.mxu0 %v7346_v1 }
 0x2f0   : > { %6527 = vmatprep.subr.bf16.mxu0 %v6526_v14  ;;  %6559 = vmatpush3.bf16.msra.mxu1 %v6558_v2 }
 0x2f1   : > { %6560 = vmatprep.subr.bf16.mxu1 %v7344_v0 }
 0x2f3   : > { %6529 = vmatpush1.bf16.msra.mxu0 %v6528_v19 }
 0x2f4   : > { %6531 = vmatprep.subr.bf16.mxu0 %v6530_v20  ;;  %6562 = vmatpush3.bf16.msra.mxu1 %v6561_v43  ;;  %v5289_v43 = vld [vmem:[%s10340_s5 + $0x258] sm:$0xff] }
 0x2f5   : > { %6194 = vmatprep.subr.mxu1 %v7346_v1 }
 0x2f7   : > { %6533 = vmatpush1.bf16.msra.mxu0 %v6532_v24 }
 0x2f8   : > { %6535 = vmatprep.subr.bf16.mxu0 %v6534_v31  ;;  %6195 = vmatpush3.msra.mxu1 %v5268_v12  ;;  %v5286_v12 = vld [vmem:[%s10340_s5 + $0x240] sm:$0xff] }
 0x2fb   : > { %6537 = vmatpush1.bf16.msra.mxu0 %v6536_v35 }
 0x2fc   : > { %6539 = vmatprep.subr.bf16.mxu0 %v6538_v9 }
 0x2ff   : > { %6541 = vmatpush1.bf16.msra.mxu0 %v6540_v42 }
 0x300   : > { %1856 = vmatprep.subr.mxu0 %v5267_v44 }
 0x303   : > { %1857 = vmatpush1.msra.mxu0 %v5266_v45  ;;  %v2035_v45 = vld [vmem:[%s10339_s4] sm:$0x7f] }
 0x3ad   : > { %v1657_v46 = vpop.f32.mrb[30].mxu1 }
 0x3ae   : > { %v1673_v47 = vadd.f32 %v1657_v46, %v8215_v26  ;;  %v6140_v48 = vpop.f32.mrb[31].mxu1  ;;  %v5288_v46 = vld [vmem:[%s10340_s5 + $0x250] sm:$0xff] }
 0x3af   : > { %v5291_v48 = vld [vmem:[%s10340_s5 + $0x268] sm:$0xff] }
 0x3b1   : > { %v1662_v7 = vpop.f32.mrb[32].mxu1 }
 0x3b2   : > { %v1676_v49 = vadd.f32 %v1662_v7, %v8218_v29  ;;  %v6143_v50 = vpop.f32.mrb[33].mxu1  ;;  %v5293_v7 = vld [vmem:[%s10340_s5 + $0x278] sm:$0xff] }
 0x3b3   : > { %v6577_v50 = vpack.c.bf16 %v5289_v43, %v5287_v5  ;;  %v5518_v5 = vld [vmem:[%s10339_s4 + $0x20] sm:$0x7f] }
 0x3b5   : > { %v1667_v51 = vpop.f32.mrb[34].mxu1 }
 0x3b6   : > { %v1679_v52 = vadd.f32 %v1667_v51, %v8227_v34  ;;  %v6146_v53 = vpop.f32.mrb[35].mxu1  ;;  %v6579_v51 = vpack.c.bf16 %v5288_v46, %v5286_v12  ;;  %v5320_v12 = vld [vmem:[%s10340_s5 + $0x350] sm:$0xff]  ;;  %v5325_v46 = vld [vmem:[%s10340_s5 + $0x378] sm:$0xff] }
 0x3b7   : > { %v5290_v53 = vld [vmem:[%s10340_s5 + $0x260] sm:$0xff] }
 0x3b9   : > { %v1759_v54 = vpop.f32.mrb[18].mxu0 }
 0x3ba   : > { %v6159_v55 = vpop.f32.mrb[19].mxu0  ;;  %5269 = vmatmul.mubr.msk.f32.vlgmr.msra.gmra.mrb[6].mxu0 %vm695_vm2, %v1759_v54  ;;  %6197 = vmatmul.mubr.msk.f32.vlgmr.msra.gmra.mrb[36].mxu1 %vm695_vm2, %v1759_v54  ;;  %v5292_v54 = vld [vmem:[%s10340_s5 + $0x270] sm:$0xff] }
 0x3bb   : > { %1898 = vmatprep.mubr.f32.mxu0 %v7346_v1  ;;  %6199 = vmatprep.mubr.msk.f32.mxu1 %vm7345_vm0, %v7346_v1  ;;  %v5295_v55 = vld [vmem:[%s10340_s5 + $0x288] sm:$0xff] }
 0x3bd   : > { %v1764_v26 = vpop.f32.mrb[20].mxu0 }
 0x3be   : > { %v6162_v56 = vpop.f32.mrb[21].mxu0  ;;  %5270 = vmatmul.mubr.msk.f32.gmra.mrb[8].mxu0 %vm695_vm2, %v1764_v26  ;;  %6200 = vmatmul.mubr.msk.f32.gmra.mrb[38].mxu1 %vm695_vm2, %v1764_v26  ;;  %v5297_v26 = vld [vmem:[%s10340_s5 + $0x298] sm:$0xff] }
 0x3bf   : > { %1904 = vmatprep.mubr.f32.mxu0 %v7346_v1  ;;  %6202 = vmatprep.mubr.msk.f32.mxu1 %vm7345_vm0, %v7346_v1 }
 0x3c1   : > { %v1769_v29 = vpop.f32.mrb[22].mxu0 }
 0x3c2   : > { %5271 = vmatmul.mubr.msk.f32.gmra.mrb[10].mxu0 %vm695_vm2, %v1769_v29  ;;  %6203 = vmatmul.mubr.msk.f32.gmra.mrb[40].mxu1 %vm695_vm2, %v1769_v29  ;;  %v6165_v34 = vpop.f32.mrb[23].mxu0  ;;  %v6583_v29 = vpack.c.bf16 %v5292_v54, %v5290_v53  ;;  %v5328_v53 = vld [vmem:[%s10340_s5 + $0x390] sm:$0xff]  ;;  %v5331_v54 = vld [vmem:[%s10340_s5 + $0x3a8] sm:$0xff] }
 0x3c3   : > { %2114 = vmatprep.mubr.f32.mxu1 %v7346_v1  ;;  %2332 = vmatprep.mubr.f32.mxu0 %v7346_v1  ;;  %v6585_v34 = vpack.c.bf16 %v5297_v26, %v5295_v55  ;;  %v5333_v55 = vld [vmem:[%s10340_s5 + $0x3b8] sm:$0xff] }
 0x48d   : > { %v1894_v4 = vpop.f32.mrb[6].mxu0  ;;  %v1977_v6 = vpop.f32.mrb[36].mxu1 }
 0x48e   : > { %v1993_v10 = vadd.f32 %v1977_v6, %v1673_v47  ;;  %v1896_v13 = vpop.f32.mrb[7].mxu0  ;;  %v6198_v14 = vpop.f32.mrb[37].mxu1  ;;  %v2017_v15 = vadd.f32 %v2005_v3, %v1894_v4  ;;  %v5280_v47 = vld [vmem:[%s10339_s4 + $0x8] sm:$0x7f]  ;;  %v6587_v4 = vpack.c.bf16 %v5296_v60, %v5294_v57  ;;  %v5337_v60 = vld [vmem:[%s10340_s5 + $0x3d8] sm:$0xff] }
 0x48f   : > { %v2018_v16 = vadd.f32 %v2009_v8, %v1896_v13  ;;  %v5305_v13 = vld [vmem:[%s10340_s5 + $0x2d8] sm:$0xff]  ;;  %v5360_v14 = vld [vmem:[%s10339_s4 + $0x10] sm:$0x7f]  ;;  %v5335_v57 = vld [vmem:[%s10340_s5 + $0x3c8] sm:$0xff] }
 0x490   : > { %v2019_v19 = vadd.f32 %v2013_v11, %v1993_v10  ;;  %v2026_v25 = vmax.f32 %v2017_v15, 0.0  ;;  %v5300_v10 = vld [vmem:[%s10340_s5 + $0x2b0] sm:$0xff] }
 0x491   : > { %v1900_v17 = vpop.f32.mrb[8].mxu0  ;;  %v1982_v18 = vpop.f32.mrb[38].mxu1  ;;  %v2027_v30 = vmax.f32 %v2018_v16, 0.0 }
 0x492   : > { %v2020_v20 = vadd.f32 %v2005_v3, %v1900_v17  ;;  %v1996_v21 = vadd.f32 %v1982_v18, %v1676_v49  ;;  %v1902_v22 = vpop.f32.mrb[9].mxu0  ;;  %v6201_v23 = vpop.f32.mrb[39].mxu1  ;;  %v2028_v61 = vmax.f32 %v2019_v19, 0.0  ;;  %v5302_v17 = vld [vmem:[%s10340_s5 + $0x2c0] sm:$0xff]  ;;  %v5304_v18 = vld [vmem:[%s10340_s5 + $0x2d0] sm:$0xff]  ;;  %v5307_v19 = vld [vmem:[%s10340_s5 + $0x2e8] sm:$0xff] }
 0x493   : > { %v2021_v24 = vadd.f32 %v2009_v8, %v1902_v22  ;;  %v5306_v23 = vld [vmem:[%s10340_s5 + $0x2e0] sm:$0xff] }
 0x494   : > { %v2029_v27 = vmax.f32 %v2020_v20, 0.0  ;;  %v2022_v28 = vadd.f32 %v2013_v11, %v1996_v21  ;;  %v5309_v20 = vld [vmem:[%s10340_s5 + $0x2f8] sm:$0xff]  ;;  %v6595_v21 = vpack.c.bf16 %v5304_v18, %v5302_v17 }
 0x495   : > { %v2030_v31 = vmax.f32 %v2021_v24, 0.0  ;;  %v1906_v32 = vpop.f32.mrb[10].mxu0  ;;  %v1987_v33 = vpop.f32.mrb[40].mxu1  ;;  %v6597_v22 = vpack.c.bf16 %v5309_v20, %v5307_v19  ;;  %v5308_v24 = vld [vmem:[%s10340_s5 + $0x2f0] sm:$0xff]  ;;  %v5345_v17 = vld [vmem:[%s10340_s5 + $0x418] sm:$0xff]  ;;  %v5342_v20 = vld [vmem:[%s10340_s5 + $0x400] sm:$0xff] }
 0x496   : > { %v8432_v35 = vpack.c.bf16 %v2029_v27, %v2026_v25  ;;  %v2031_v36 = vmax.f32 %v2022_v28, 0.0  ;;  %v1999_v2 = vadd.f32 %v1987_v33, %v1679_v52  ;;  %v1908_v37 = vpop.f32.mrb[11].mxu0  ;;  %v6204_v38 = vpop.f32.mrb[41].mxu1  ;;  %v2023_v41 = vadd.f32 %v2005_v3, %v1906_v32  ;;  %v5301_v3 = vld [vmem:[%s10340_s5 + $0x2b8] sm:$0xff]  ;;  %v5311_v25 = vld [vmem:[%s10340_s5 + $0x308] sm:$0xff]  ;;  %v5310_v32 = vld [vmem:[%s10340_s5 + $0x300] sm:$0xff] }
 0x497   : > { %v8434_v9 = vpack.c.bf16 %v2030_v31, %v2027_v30  ;;  %v2024_v39 = vadd.f32 %v2009_v8, %v1908_v37  ;;  %v6581_v52 = vpack.c.bf16 %v5293_v7, %v5291_v48  ;;  %v6589_v6 = vpack.c.bf16 %v5301_v3, %v5299_v63  ;;  %v5298_v8 = vld [vmem:[%s10340_s5 + $0x2a0] sm:$0xff]  ;;  %v5313_v27 = vld [vmem:[%s10340_s5 + $0x318] sm:$0xff]  ;;  %v5312_v33 = vld [vmem:[%s10340_s5 + $0x310] sm:$0xff] }
 0x498   : > { %v8436_v40 = vpack.c.bf16 %v2031_v36, %v2028_v61  ;;  %v8454_v44 = vmax.f32 %v2023_v41, 0.0  ;;  %v2025_v49 = vadd.f32 %v2013_v11, %v1999_v2  ;;  %v5303_v11 = vld [vmem:[%s10340_s5 + $0x2c8] sm:$0xff]  ;;  %v6591_v15 = vpack.c.bf16 %v5300_v10, %v5298_v8  ;;  %v5439_v28 = vld [vmem:[%s10339_s4 + $0x18] sm:$0x7f]  ;;  %v5314_v38 = vld [vmem:[%s10340_s5 + $0x320] sm:$0xff] }
 0x499   : > { %v8438_v42 = vmax.f32 %v2024_v39, 0.0  ;;  %6564 = vmatprep.subr.bf16.mxu1 %v8434_v9  ;;  %6571 = vmatprep.subr.bf16.mxu0 %v8434_v9  ;;  %v6593_v16 = vpack.c.bf16 %v5305_v13, %v5303_v11  ;;  %v6599_v30 = vpack.c.bf16 %v5308_v24, %v5306_v23  ;;  %v6601_v31 = vpack.c.bf16 %v5313_v27, %v5311_v25  ;;  %v5315_v61 = vld [vmem:[%s10340_s5 + $0x328] sm:$0xff]  ;;  %v5317_v36 = vld [vmem:[%s10340_s5 + $0x338] sm:$0xff]  ;;  %v5316_v39 = vld [vmem:[%s10340_s5 + $0x330] sm:$0xff] }
 0x49a   : > { %6566 = vmatpush1.bf16.msra.mxu1 %v8432_v35  ;;  %6573 = vmatpush1.bf16.msra.mxu0 %v8432_v35  ;;  %v8497_v56 = vmax.f32 %v2025_v49, 0.0  ;;  %v6603_v2 = vpack.c.bf16 %v5312_v33, %v5310_v32  ;;  %v6605_v37 = vpack.c.bf16 %v5317_v36, %v5315_v61  ;;  %v5319_v41 = vld [vmem:[%s10340_s5 + $0x348] sm:$0xff]  ;;  %v5322_v48 = vld [vmem:[%s10340_s5 + $0x360] sm:$0xff]  ;;  %v5324_v7 = vld [vmem:[%s10340_s5 + $0x370] sm:$0xff]  ;;  %v6625_v3 = vpack.c.bf16 %v5337_v60, %v5335_v57 }
 0x49b   : > { %5275 = vmatprep.subr.msk.mxu1 %vm2040_vm3, %v8438_v42  ;;  %5281 = vmatprep.subr.msk.mxu0 %vm2040_vm3, %v8438_v42  ;;  %v5327_v49 = vld [vmem:[%s10340_s5 + $0x388] sm:$0xff]  ;;  %v5341_v10 = vld [vmem:[%s10340_s5 + $0x3f8] sm:$0xff]  ;;  %v5346_v27 = vld [vmem:[%s10340_s5 + $0x420] sm:$0xff] }
 0x49c   : > { %v5339_v8 = vld [vmem:[%s10340_s5 + $0x3e8] sm:$0xff]  ;;  %v5349_v23 = vld [vmem:[%s10340_s5 + $0x438] sm:$0xff]  ;;  %v5350_v61 = vld [vmem:[%s10340_s5 + $0x440] sm:$0xff] }
 0x49d   : > { %v6629_v13 = vpack.c.bf16 %v5341_v10, %v5339_v8  ;;  %v5353_v32 = vld [vmem:[%s10340_s5 + $0x458] sm:$0xff]  ;;  %v5352_v36 = vld [vmem:[%s10340_s5 + $0x450] sm:$0xff]  ;;  %v2199_v60 = vld [vmem:[%s10340_s5 + $0x40] sm:$0xff] }
 0x49e   : > { %5276 = vmatpush1.msk.msra.mxu1 %vm2040_vm3, %v8454_v44  ;;  %5282 = vmatpush1.msk.msra.mxu0 %vm2040_vm3, %v8454_v44 }
 0x49f   : > { %6567 = vmatprep.subr.bf16.mxu1 %v7344_v0  ;;  %5277 = vmatmul.mubr.msk.f32.vlgmr.msra.gmra.mrb[42].mxu1 %vm2036_vm4, %v2035_v45 }
 0x4a0   : > { %6569 = vmatpush3.bf16.msra.mxu1 %v8436_v40  ;;  %5283 = vmatmul.mubr.msk.f32.vlgmr.msra.gmra.mrb[24].mxu0 %vm2036_vm4, %v5280_v47 }
 0x4a1   : > { %6209 = vmatprep.subr.mxu1 %v7346_v1  ;;  %6211 = vmatprep.mubr.msk.f32.mxu1 %vm7345_vm0, %v7346_v1 }
 0x4a2   : > { %6578 = vmatprep.subr.bf16.mxu0 %v6577_v50  ;;  %v6615_v50 = vpack.c.bf16 %v5324_v7, %v5322_v48  ;;  %v2191_v7 = vld [vmem:[%s10340_s5] sm:$0xff] }
 0x4a3   : > { %6580 = vmatpush1.bf16.msra.mxu0 %v6579_v51 }
 0x4a4   : > { %6210 = vmatpush3.msk.msra.mxu1 %vm2040_vm3, %v8497_v56  ;;  %6582 = vmatprep.subr.bf16.mxu0 %v6581_v52  ;;  %v5326_v52 = vld [vmem:[%s10340_s5 + $0x380] sm:$0xff] }
 0x4a5   : > { %6574 = vmatprep.subr.bf16.mxu1 %v7344_v0  ;;  %6212 = vmatmul.mubr.msk.f32.vlgmr.msra.gmra.mrb[44].mxu1 %vm2036_vm4, %v2035_v45  ;;  %v5318_v45 = vld [vmem:[%s10340_s5 + $0x340] sm:$0xff]  ;;  %v6619_v26 = vpack.c.bf16 %v5328_v53, %v5326_v52 }
 0x4a6   : > { %6576 = vmatpush3.bf16.msra.mxu1 %v8436_v40  ;;  %6220 = vmatprep.mubr.msk.f32.mxu1 %vm7345_vm0, %v7346_v1  ;;  %v2195_v53 = vld [vmem:[%s10340_s5 + $0x20] sm:$0xff] }
 0x4a7   : > { %6218 = vmatprep.subr.mxu1 %v7346_v1  ;;  %6584 = vmatpush1.bf16.msra.mxu0 %v6583_v29  ;;  %v5330_v29 = vld [vmem:[%s10340_s5 + $0x3a0] sm:$0xff] }
 0x4a8   : > { %6586 = vmatprep.subr.bf16.mxu0 %v6585_v34  ;;  %v5332_v34 = vld [vmem:[%s10340_s5 + $0x3b0] sm:$0xff] }
 0x4a9   : > { %v6623_v63 = vpack.c.bf16 %v5332_v34, %v5330_v29 }
 0x4aa   : > { %6219 = vmatpush3.msk.msra.mxu1 %vm2040_vm3, %v8497_v56 }
 0x4ab   : > { %6221 = vmatmul.mubr.msk.f32.vlgmr.msra.gmra.mrb[46].mxu1 %vm2036_vm4, %v5280_v47  ;;  %6722 = vmatprep.subr.bf16.mxu1 %v8434_v9  ;;  %v6611_v47 = vpack.c.bf16 %v5320_v12, %v5318_v45  ;;  %v5356_v45 = vld [vmem:[%s10340_s5 + $0x470] sm:$0xff]  ;;  %v2192_v12 = vld [vmem:[%s10340_s5 + $0x8] sm:$0xff] }
 0x4ac   : > { %6724 = vmatpush1.bf16.msra.mxu1 %v8432_v35  ;;  %2842 = vmatprep.mubr.f32.mxu1 %v7346_v1 }
 0x4ad   : > { %5361 = vmatprep.subr.msk.mxu1 %vm2040_vm3, %v8438_v42  ;;  %6588 = vmatpush1.bf16.msra.mxu0 %v6587_v4  ;;  %v5334_v4 = vld [vmem:[%s10340_s5 + $0x3c0] sm:$0xff] }
 0x4ae   : > { %6590 = vmatprep.subr.bf16.mxu0 %v6589_v6  ;;  %v5336_v6 = vld [vmem:[%s10340_s5 + $0x3d0] sm:$0xff] }
 0x4af   : > { %v6627_v11 = vpack.c.bf16 %v5336_v6, %v5334_v4  ;;  %v2206_v4 = vld [vmem:[%s10340_s5 + $0x78] sm:$0xff] }
 0x4b0   : > { %5362 = vmatpush1.msk.msra.mxu1 %vm2040_vm3, %v8454_v44 }
 0x4b1   : > { %6725 = vmatprep.subr.bf16.mxu1 %v7344_v0  ;;  %5363 = vmatmul.mubr.msk.f32.vlgmr.msra.gmra.mrb[48].mxu1 %vm2036_vm4, %v5360_v14 }
 0x4b2   : > { %6727 = vmatpush3.bf16.msra.mxu1 %v8436_v40  ;;  %6229 = vmatprep.mubr.msk.f32.mxu1 %vm7345_vm0, %v7346_v1 }
 0x4b3   : > { %6227 = vmatprep.subr.mxu1 %v7346_v1  ;;  %6592 = vmatpush1.bf16.msra.mxu0 %v6591_v15  ;;  %v5340_v15 = vld [vmem:[%s10340_s5 + $0x3f0] sm:$0xff] }
 0x4b4   : > { %6594 = vmatprep.subr.bf16.mxu0 %v6593_v16  ;;  %v5343_v16 = vld [vmem:[%s10340_s5 + $0x408] sm:$0xff] }
 0x4b5   : > { %v6633_v19 = vpack.c.bf16 %v5345_v17, %v5343_v16  ;;  %v2210_v16 = vld [vmem:[%s10340_s5 + $0x98] sm:$0xff] }
 0x4b6   : > { %6228 = vmatpush3.msk.msra.mxu1 %vm2040_vm3, %v8497_v56 }
 0x4b7   : > { %6801 = vmatprep.subr.bf16.mxu1 %v8434_v9  ;;  %6230 = vmatmul.mubr.msk.f32.vlgmr.msra.gmra.mrb[50].mxu1 %vm2036_vm4, %v5360_v14  ;;  %v5338_v14 = vld [vmem:[%s10340_s5 + $0x3e0] sm:$0xff] }
 0x4b8   : > { %6803 = vmatpush1.bf16.msra.mxu1 %v8432_v35  ;;  %3208 = vmatprep.mubr.f32.mxu1 %v7346_v1  ;;  %v6631_v18 = vpack.c.bf16 %v5340_v15, %v5338_v14  ;;  %v2208_v15 = vld [vmem:[%s10340_s5 + $0x88] sm:$0xff] }
 0x4b9   : > { %5440 = vmatprep.subr.msk.mxu1 %vm2040_vm3, %v8438_v42  ;;  %6596 = vmatpush1.bf16.msra.mxu0 %v6595_v21  ;;  %v5344_v21 = vld [vmem:[%s10340_s5 + $0x410] sm:$0xff] }
 0x4ba   : > { %6598 = vmatprep.subr.bf16.mxu0 %v6597_v22  ;;  %v5347_v22 = vld [vmem:[%s10340_s5 + $0x428] sm:$0xff]  ;;  %v6635_v24 = vpack.c.bf16 %v5344_v21, %v5342_v20  ;;  %v2209_v20 = vld [vmem:[%s10340_s5 + $0x90] sm:$0xff] }
 0x4bb   : > { %v6637_v25 = vpack.c.bf16 %v5349_v23, %v5347_v22  ;;  %v2212_v21 = vld [vmem:[%s10340_s5 + $0xa8] sm:$0xff]  ;;  %v2214_v22 = vld [vmem:[%s10340_s5 + $0xb8] sm:$0xff] }
 0x4bc   : > { %5441 = vmatpush1.msk.msra.mxu1 %vm2040_vm3, %v8454_v44 }
 0x4bd   : > { %6804 = vmatprep.subr.bf16.mxu1 %v7344_v0  ;;  %5442 = vmatmul.mubr.msk.f32.vlgmr.msra.gmra.mrb[52].mxu1 %vm2036_vm4, %v5439_v28 }
 0x4be   : > { %6806 = vmatpush3.bf16.msra.mxu1 %v8436_v40  ;;  %6238 = vmatprep.mubr.msk.f32.mxu1 %vm7345_vm0, %v7346_v1 }
 0x4bf   : > { %6236 = vmatprep.subr.mxu1 %v7346_v1  ;;  %6600 = vmatpush1.bf16.msra.mxu0 %v6599_v30 }
 0x4c0   : > { %6602 = vmatprep.subr.bf16.mxu0 %v6601_v31  ;;  %v5351_v31 = vld [vmem:[%s10340_s5 + $0x448] sm:$0xff] }
 0x4c1   : > { %v6641_v33 = vpack.c.bf16 %v5353_v32, %v5351_v31  ;;  %v2216_v31 = vld [vmem:[%s10340_s5 + $0xc8] sm:$0xff]  ;;  %v2218_v32 = vld [vmem:[%s10340_s5 + $0xd8] sm:$0xff] }
 0x4c2   : > { %6237 = vmatpush3.msk.msra.mxu1 %vm2040_vm3, %v8497_v56 }
 0x4c3   : > { %6880 = vmatprep.subr.bf16.mxu1 %v8434_v9  ;;  %6239 = vmatmul.mubr.msk.f32.vlgmr.msra.gmra.mrb[54].mxu1 %vm2036_vm4, %v5439_v28  ;;  %v5321_v9 = vld [vmem:[%s10340_s5 + $0x358] sm:$0xff]  ;;  %v5348_v28 = vld [vmem:[%s10340_s5 + $0x430] sm:$0xff] }
 0x4c4   : > { %6882 = vmatpush1.bf16.msra.mxu1 %v8432_v35  ;;  %3574 = vmatprep.mubr.f32.mxu1 %v7346_v1  ;;  %v6607_v35 = vpack.c.bf16 %v5316_v39, %v5314_v38  ;;  %v6609_v43 = vpack.c.bf16 %v5321_v9, %v5319_v41  ;;  %v6639_v30 = vpack.c.bf16 %v5348_v28, %v5346_v27  ;;  %v2211_v27 = vld [vmem:[%s10340_s5 + $0xa0] sm:$0xff]  ;;  %v2213_v28 = vld [vmem:[%s10340_s5 + $0xb0] sm:$0xff] }
 0x4c5   : > { %5519 = vmatprep.subr.msk.mxu1 %vm2040_vm3, %v8438_v42  ;;  %6604 = vmatpush1.bf16.msra.mxu0 %v6603_v2  ;;  %v5323_v42 = vld [vmem:[%s10340_s5 + $0x368] sm:$0xff]  ;;  %v6643_v9 = vpack.c.bf16 %v5352_v36, %v5350_v61  ;;  %v6673_v61 = vpack.c.bf16 %v2218_v32, %v2216_v31  ;;  %v2215_v36 = vld [vmem:[%s10340_s5 + $0xc0] sm:$0xff]  ;;  %v2254_v32 = vld [vmem:[%s10340_s5 + $0x1f8] sm:$0xff] }
 0x4c6   : > { %6606 = vmatprep.subr.bf16.mxu0 %v6605_v37  ;;  %v5355_v2 = vld [vmem:[%s10340_s5 + $0x468] sm:$0xff]  ;;  %v5357_v37 = vld [vmem:[%s10340_s5 + $0x478] sm:$0xff] }
 0x4c7   : > { %v2252_v31 = vld [vmem:[%s10340_s5 + $0x1e8] sm:$0xff] }
 0x4c8   : > { %5520 = vmatpush1.msk.msra.mxu1 %vm2040_vm3, %v8454_v44  ;;  %v6613_v44 = vpack.c.bf16 %v5325_v46, %v5323_v42  ;;  %v2194_v42 = vld [vmem:[%s10340_s5 + $0x18] sm:$0xff] }
 0x4c9   : > { %6883 = vmatprep.subr.bf16.mxu1 %v7344_v0  ;;  %5521 = vmatmul.mubr.msk.f32.vlgmr.msra.gmra.mrb[56].mxu1 %vm2036_vm4, %v5518_v5 }
 0x4ca   : > { %6885 = vmatpush3.bf16.msra.mxu1 %v8436_v40  ;;  %6608 = vmatpush1.bf16.msra.mxu0 %v6607_v35  ;;  %v5329_v40 = vld [vmem:[%s10340_s5 + $0x398] sm:$0xff]  ;;  %v6645_v35 = vpack.c.bf16 %v5357_v37, %v5355_v2  ;;  %v2217_v2 = vld [vmem:[%s10340_s5 + $0xd0] sm:$0xff]  ;;  %v2220_v37 = vld [vmem:[%s10340_s5 + $0xe8] sm:$0xff] }
 0x4cb   : > { %6245 = vmatprep.subr.mxu1 %v7346_v1  ;;  %6610 = vmatprep.subr.bf16.mxu0 %v6609_v43  ;;  %v6617_v51 = vpack.c.bf16 %v5329_v40, %v5327_v49  ;;  %v5354_v43 = vld [vmem:[%s10340_s5 + $0x460] sm:$0xff]  ;;  %v2193_v49 = vld [vmem:[%s10340_s5 + $0x10] sm:$0xff]  ;;  %v2196_v40 = vld [vmem:[%s10340_s5 + $0x28] sm:$0xff] }
 0x4cc   : > { %6247 = vmatprep.mubr.msk.f32.mxu1 %vm7345_vm0, %v7346_v1  ;;  %v6647_v46 = vpack.c.bf16 %v5356_v45, %v5354_v43  ;;  %v2224_v43 = vld [vmem:[%s10340_s5 + $0x108] sm:$0xff]  ;;  %v2226_v45 = vld [vmem:[%s10340_s5 + $0x118] sm:$0xff] }
 0x4ce   : > { %6246 = vmatpush3.msk.msra.mxu1 %vm2040_vm3, %v8497_v56  ;;  %6612 = vmatpush1.bf16.msra.mxu0 %v6611_v47  ;;  %v6621_v56 = vpack.c.bf16 %v5333_v55, %v5331_v54  ;;  %v2197_v54 = vld [vmem:[%s10340_s5 + $0x30] sm:$0xff] }
 0x4cf   : > { %6614 = vmatprep.subr.bf16.mxu0 %v6613_v44  ;;  %6248 = vmatmul.mubr.msk.f32.vlgmr.msra.gmra.mrb[58].mxu1 %vm2036_vm4, %v5518_v5  ;;  %v6649_v44 = vpack.c.bf16 %v2194_v42, %v2192_v12  ;;  %v6655_v34 = vpack.c.bf16 %v2197_v54, %v2195_v53  ;;  %v6681_v42 = vpack.c.bf16 %v2226_v45, %v2224_v43  ;;  %v2234_v53 = vld [vmem:[%s10340_s5 + $0x158] sm:$0xff]  ;;  %v2260_v43 = vld [vmem:[%s10340_s5 + $0x228] sm:$0xff] }
 0x4d0   : > { %4067 = vmatprep.mubr.f32.mxu1 %v7346_v1  ;;  %v2262_v45 = vld [vmem:[%s10340_s5 + $0x238] sm:$0xff] }
 0x4d2   : > { %6616 = vmatpush1.bf16.msra.mxu0 %v6615_v50  ;;  %v2198_v50 = vld [vmem:[%s10340_s5 + $0x38] sm:$0xff] }
 0x4d3   : > { %6618 = vmatprep.subr.bf16.mxu0 %v6617_v51  ;;  %v6651_v51 = vpack.c.bf16 %v2193_v49, %v2191_v7  ;;  %v6653_v52 = vpack.c.bf16 %v2198_v50, %v2196_v40  ;;  %v2230_v7 = vld [vmem:[%s10340_s5 + $0x138] sm:$0xff]  ;;  %v2227_v50 = vld [vmem:[%s10340_s5 + $0x120] sm:$0xff] }
 0x4d6   : > { %6620 = vmatpush1.bf16.msra.mxu0 %v6619_v26  ;;  %v2200_v26 = vld [vmem:[%s10340_s5 + $0x48] sm:$0xff] }
 0x4d7   : > { %6622 = vmatprep.subr.bf16.mxu0 %v6621_v56  ;;  %v2202_v56 = vld [vmem:[%s10340_s5 + $0x58] sm:$0xff] }
 0x4d8   : > { %v6657_v57 = vpack.c.bf16 %v2202_v56, %v2200_v26  ;;  %v2231_v26 = vld [vmem:[%s10340_s5 + $0x140] sm:$0xff]  ;;  %v2233_v56 = vld [vmem:[%s10340_s5 + $0x150] sm:$0xff] }
 0x4da   : > { %6624 = vmatpush1.bf16.msra.mxu0 %v6623_v63  ;;  %v2201_v63 = vld [vmem:[%s10340_s5 + $0x50] sm:$0xff] }
 0x4db   : > { %6626 = vmatprep.subr.bf16.mxu0 %v6625_v3  ;;  %v2204_v3 = vld [vmem:[%s10340_s5 + $0x68] sm:$0xff]  ;;  %v6659_v6 = vpack.c.bf16 %v2201_v63, %v2199_v60  ;;  %v2235_v63 = vld [vmem:[%s10340_s5 + $0x160] sm:$0xff] }
 0x4dc   : > { %v6661_v10 = vpack.c.bf16 %v2206_v4, %v2204_v3  ;;  %v2237_v3 = vld [vmem:[%s10340_s5 + $0x170] sm:$0xff]  ;;  %v2240_v4 = vld [vmem:[%s10340_s5 + $0x188] sm:$0xff] }
 0x4de   : > { %6628 = vmatpush1.bf16.msra.mxu0 %v6627_v11  ;;  %v2203_v11 = vld [vmem:[%s10340_s5 + $0x60] sm:$0xff] }
 0x4df   : > { %6630 = vmatprep.subr.bf16.mxu0 %v6629_v13  ;;  %v2205_v13 = vld [vmem:[%s10340_s5 + $0x70] sm:$0xff] }
 0x4e0   : > { %v6663_v17 = vpack.c.bf16 %v2205_v13, %v2203_v11  ;;  %v2239_v13 = vld [vmem:[%s10340_s5 + $0x180] sm:$0xff] }
 0x4e2   : > { %6632 = vmatpush1.bf16.msra.mxu0 %v6631_v18  ;;  %v6665_v18 = vpack.c.bf16 %v2210_v16, %v2208_v15  ;;  %v2241_v15 = vld [vmem:[%s10340_s5 + $0x190] sm:$0xff]  ;;  %v2244_v16 = vld [vmem:[%s10340_s5 + $0x1a8] sm:$0xff] }
 0x4e3   : > { %6634 = vmatprep.subr.bf16.mxu0 %v6633_v19  ;;  %v2207_v19 = vld [vmem:[%s10340_s5 + $0x80] sm:$0xff] }
 0x4e4   : > { %v6667_v23 = vpack.c.bf16 %v2209_v20, %v2207_v19  ;;  %v2243_v20 = vld [vmem:[%s10340_s5 + $0x1a0] sm:$0xff] }
 0x4e6   : > { %6636 = vmatpush1.bf16.msra.mxu0 %v6635_v24 }
 0x4e7   : > { %6638 = vmatprep.subr.bf16.mxu0 %v6637_v25  ;;  %v6669_v25 = vpack.c.bf16 %v2214_v22, %v2212_v21  ;;  %v2245_v21 = vld [vmem:[%s10340_s5 + $0x1b0] sm:$0xff]  ;;  %v2248_v22 = vld [vmem:[%s10340_s5 + $0x1c8] sm:$0xff] }
 0x4ea   : > { %6640 = vmatpush1.bf16.msra.mxu0 %v6639_v30 }
 0x4eb   : > { %6642 = vmatprep.subr.bf16.mxu0 %v6641_v33  ;;  %v6671_v33 = vpack.c.bf16 %v2213_v28, %v2211_v27  ;;  %v2247_v28 = vld [vmem:[%s10340_s5 + $0x1c0] sm:$0xff] }
 0x572   : > { %v8748_v38 = vpop.f32.mrb[42].mxu1 }
 0x573   : > { %v2334_v39 = vpop.f32.mrb[24].mxu0  ;;  %v2118_v41 = vpop.f32.mrb[43].mxu1 }
 0x574   : > { %v2336_v5 = vpop.f32.mrb[25].mxu0 }
 0x575   : > { %2550 = vmatprep.mubr.f32.mxu0 %v2336_v5  ;;  %v2219_v5 = vld [vmem:[%s10340_s5 + $0xe0] sm:$0xff] }
 0x576   : > { %2551 = vmatmul.mubr.f32.vlgmr.msra.gmra.mrb[26].mxu0 %v2334_v39  ;;  %v2222_v39 = vld [vmem:[%s10340_s5 + $0xf8] sm:$0xff] }
 0x577   : > { %6644 = vmatpush1.bf16.msra.mxu0 %v6643_v9  ;;  %2621 = vmatprep.mubr.f32.mxu0 %v7346_v1  ;;  %v6677_v9 = vpack.c.bf16 %v2222_v39, %v2220_v37  ;;  %v2256_v37 = vld [vmem:[%s10340_s5 + $0x208] sm:$0xff]  ;;  %v2258_v39 = vld [vmem:[%s10340_s5 + $0x218] sm:$0xff] }
 0x578   : > { %6646 = vmatprep.subr.bf16.mxu0 %v6645_v35  ;;  %v8763_v47 = vpop.f32.mrb[44].mxu1  ;;  %v2221_v35 = vld [vmem:[%s10340_s5 + $0xf0] sm:$0xff] }
 0x579   : > { %v6213_v48 = vpop.f32.mrb[45].mxu1  ;;  %v6679_v12 = vpack.c.bf16 %v2221_v35, %v2219_v5  ;;  %v2255_v5 = vld [vmem:[%s10340_s5 + $0x200] sm:$0xff]  ;;  %v2257_v35 = vld [vmem:[%s10340_s5 + $0x210] sm:$0xff] }
 0x57a   : > { %v2228_v48 = vld [vmem:[%s10340_s5 + $0x128] sm:$0xff] }
 0x57b   : > { %6648 = vmatpush1.bf16.msra.mxu0 %v6647_v46  ;;  %v2223_v46 = vld [vmem:[%s10340_s5 + $0x100] sm:$0xff]  ;;  %v6685_v40 = vpack.c.bf16 %v2230_v7, %v2228_v48  ;;  %v5367_v48 = vld [vmem:[%s10340_s5 + $0x488] sm:$0xff]  ;;  %v5369_v7 = vld [vmem:[%s10340_s5 + $0x498] sm:$0xff] }
 0x57c   : > { %6650 = vmatprep.subr.bf16.mxu0 %v6649_v44  ;;  %v2225_v44 = vld [vmem:[%s10340_s5 + $0x110] sm:$0xff] }
 0x57d   : > { %v6683_v49 = vpack.c.bf16 %v2225_v44, %v2223_v46  ;;  %v2259_v46 = vld [vmem:[%s10340_s5 + $0x220] sm:$0xff]  ;;  %v2261_v44 = vld [vmem:[%s10340_s5 + $0x230] sm:$0xff] }
 0x57e   : > { %v2405_v55 = vpop.f32.mrb[46].mxu1 }
 0x57f   : > { %5358 = vmatmul.mubr.msk.f32.vlgmr.msra.gmra.mrb[26].mxu0 %vm2482_vm5, %v2405_v55  ;;  %v6222_v29 = vpop.f32.mrb[47].mxu1 }
 0x580   : > { %6652 = vmatpush1.bf16.msra.mxu0 %v6651_v51  ;;  %2695 = vmatprep.mubr.f32.mxu0 %v2118_v41  ;;  %v6675_v41 = vpack.c.bf16 %v2217_v2, %v2215_v36  ;;  %v2229_v51 = vld [vmem:[%s10340_s5 + $0x130] sm:$0xff]  ;;  %v2236_v29 = vld [vmem:[%s10340_s5 + $0x168] sm:$0xff]  ;;  %v2251_v36 = vld [vmem:[%s10340_s5 + $0x1e0] sm:$0xff] }
 0x581   : > { %6654 = vmatprep.subr.bf16.mxu0 %v6653_v52  ;;  %v2232_v52 = vld [vmem:[%s10340_s5 + $0x148] sm:$0xff]  ;;  %v6687_v54 = vpack.c.bf16 %v2229_v51, %v2227_v50  ;;  %v2253_v2 = vld [vmem:[%s10340_s5 + $0x1f0] sm:$0xff]  ;;  %v5366_v50 = vld [vmem:[%s10340_s5 + $0x480] sm:$0xff] }
 0x582   : > { %v6689_v55 = vpack.c.bf16 %v2234_v53, %v2232_v52  ;;  %v5368_v51 = vld [vmem:[%s10340_s5 + $0x490] sm:$0xff]  ;;  %v5371_v52 = vld [vmem:[%s10340_s5 + $0x4a8] sm:$0xff] }
 0x583   : > { %v6730_v53 = vpack.c.bf16 %v5368_v51, %v5366_v50  ;;  %v5402_v51 = vld [vmem:[%s10340_s5 + $0x5a0] sm:$0xff] }
 0x584   : > { %6656 = vmatpush1.bf16.msra.mxu0 %v6655_v34  ;;  %v8802_v8 = vpop.f32.mrb[48].mxu1  ;;  %v2238_v34 = vld [vmem:[%s10340_s5 + $0x178] sm:$0xff] }
 0x585   : > { %6658 = vmatprep.subr.bf16.mxu0 %v6657_v57  ;;  %v8810_v14 = vpop.f32.mrb[49].mxu1  ;;  %v6691_v57 = vpack.c.bf16 %v2233_v56, %v2231_v26  ;;  %v6693_v60 = vpack.c.bf16 %v2238_v34, %v2236_v29  ;;  %v5372_v26 = vld [vmem:[%s10340_s5 + $0x4b0] sm:$0xff]  ;;  %v5375_v56 = vld [vmem:[%s10340_s5 + $0x4c8] sm:$0xff]  ;;  %v5377_v29 = vld [vmem:[%s10340_s5 + $0x4d8] sm:$0xff] }
 0x588   : > { %6660 = vmatpush1.bf16.msra.mxu0 %v6659_v6  ;;  %v2242_v6 = vld [vmem:[%s10340_s5 + $0x198] sm:$0xff] }
 0x589   : > { %6662 = vmatprep.subr.bf16.mxu0 %v6661_v10  ;;  %v6695_v10 = vpack.c.bf16 %v2237_v3, %v2235_v63  ;;  %v6697_v11 = vpack.c.bf16 %v2242_v6, %v2240_v4  ;;  %v5376_v63 = vld [vmem:[%s10340_s5 + $0x4d0] sm:$0xff]  ;;  %v5379_v3 = vld [vmem:[%s10340_s5 + $0x4e8] sm:$0xff] }
 0x58a   : > { %v8830_v24 = vpop.f32.mrb[50].mxu1 }
 0x58b   : > { %v6231_v30 = vpop.f32.mrb[51].mxu1 }
 0x58c   : > { %6664 = vmatpush1.bf16.msra.mxu0 %v6663_v17  ;;  %v2246_v17 = vld [vmem:[%s10340_s5 + $0x1b8] sm:$0xff]  ;;  %v2249_v30 = vld [vmem:[%s10340_s5 + $0x1d0] sm:$0xff] }
 0x58d   : > { %6666 = vmatprep.subr.bf16.mxu0 %v6665_v18  ;;  %v6699_v18 = vpack.c.bf16 %v2241_v15, %v2239_v13  ;;  %v6701_v19 = vpack.c.bf16 %v2246_v17, %v2244_v16  ;;  %v5383_v15 = vld [vmem:[%s10340_s5 + $0x508] sm:$0xff]  ;;  %v5385_v16 = vld [vmem:[%s10340_s5 + $0x518] sm:$0xff] }
 0x590   : > { %6668 = vmatpush1.bf16.msra.mxu0 %v6667_v23  ;;  %v2250_v23 = vld [vmem:[%s10340_s5 + $0x1d8] sm:$0xff]  ;;  %v9029_v4 = vpop.f32.mrb[52].mxu1 }
 0x591   : > { %6670 = vmatprep.subr.bf16.mxu0 %v6669_v25  ;;  %v6703_v25 = vpack.c.bf16 %v2245_v21, %v2243_v20  ;;  %v6705_v27 = vpack.c.bf16 %v2250_v23, %v2248_v22  ;;  %v9037_v13 = vpop.f32.mrb[53].mxu1  ;;  %v5384_v20 = vld [vmem:[%s10340_s5 + $0x510] sm:$0xff]  ;;  %v5387_v21 = vld [vmem:[%s10340_s5 + $0x528] sm:$0xff]  ;;  %v5389_v22 = vld [vmem:[%s10340_s5 + $0x538] sm:$0xff] }
 0x594   : > { %6672 = vmatpush1.bf16.msra.mxu0 %v6671_v33  ;;  %v6707_v33 = vpack.c.bf16 %v2249_v30, %v2247_v28  ;;  %v5386_v28 = vld [vmem:[%s10340_s5 + $0x520] sm:$0xff]  ;;  %v5388_v30 = vld [vmem:[%s10340_s5 + $0x530] sm:$0xff] }
 0x595   : > { %6674 = vmatprep.subr.bf16.mxu0 %v6673_v61  ;;  %v6709_v61 = vpack.c.bf16 %v2254_v32, %v2252_v31  ;;  %v5391_v32 = vld [vmem:[%s10340_s5 + $0x548] sm:$0xff] }
 0x598   : > { %6676 = vmatpush1.bf16.msra.mxu0 %v6675_v41  ;;  %v6711_v41 = vpack.c.bf16 %v2253_v2, %v2251_v36  ;;  %v5390_v2 = vld [vmem:[%s10340_s5 + $0x540] sm:$0xff] }
 0x599   : > { %6678 = vmatprep.subr.bf16.mxu0 %v6677_v9  ;;  %v6713_v9 = vpack.c.bf16 %v2258_v39, %v2256_v37  ;;  %v5392_v37 = vld [vmem:[%s10340_s5 + $0x550] sm:$0xff]  ;;  %v5395_v39 = vld [vmem:[%s10340_s5 + $0x568] sm:$0xff] }
 0x59c   : > { %6680 = vmatpush1.bf16.msra.mxu0 %v6679_v12  ;;  %v6715_v12 = vpack.c.bf16 %v2257_v35, %v2255_v5  ;;  %v5394_v35 = vld [vmem:[%s10340_s5 + $0x560] sm:$0xff] }
 0x59d   : > { %6682 = vmatprep.subr.bf16.mxu0 %v6681_v42  ;;  %v6717_v42 = vpack.c.bf16 %v2262_v45, %v2260_v43  ;;  %v5396_v43 = vld [vmem:[%s10340_s5 + $0x570] sm:$0xff]  ;;  %v5399_v45 = vld [vmem:[%s10340_s5 + $0x588] sm:$0xff] }
 0x5a0   : > { %6684 = vmatpush1.bf16.msra.mxu0 %v6683_v49  ;;  %v6719_v49 = vpack.c.bf16 %v2261_v44, %v2259_v46  ;;  %v5398_v44 = vld [vmem:[%s10340_s5 + $0x580] sm:$0xff] }
 0x5a1   : > { %6686 = vmatprep.subr.bf16.mxu0 %v6685_v40  ;;  %v6728_v40 = vpack.c.bf16 %v5369_v7, %v5367_v48  ;;  %v5400_v48 = vld [vmem:[%s10340_s5 + $0x590] sm:$0xff]  ;;  %v5403_v7 = vld [vmem:[%s10340_s5 + $0x5a8] sm:$0xff] }
 0x5a4   : > { %6688 = vmatpush1.bf16.msra.mxu0 %v6687_v54 }
 0x5a5   : > { %6690 = vmatprep.subr.bf16.mxu0 %v6689_v55  ;;  %v5370_v55 = vld [vmem:[%s10340_s5 + $0x4a0] sm:$0xff] }
 0x5a6   : > { %v6734_v34 = vpack.c.bf16 %v5372_v26, %v5370_v55  ;;  %v5406_v26 = vld [vmem:[%s10340_s5 + $0x5c0] sm:$0xff] }
 0x5a8   : > { %6692 = vmatpush1.bf16.msra.mxu0 %v6691_v57  ;;  %v6736_v57 = vpack.c.bf16 %v5377_v29, %v5375_v56  ;;  %v5408_v56 = vld [vmem:[%s10340_s5 + $0x5d0] sm:$0xff]  ;;  %v5411_v29 = vld [vmem:[%s10340_s5 + $0x5e8] sm:$0xff] }
 0x5a9   : > { %6694 = vmatprep.subr.bf16.mxu0 %v6693_v60  ;;  %v5374_v60 = vld [vmem:[%s10340_s5 + $0x4c0] sm:$0xff] }
 0x5ac   : > { %6696 = vmatpush1.bf16.msra.mxu0 %v6695_v10  ;;  %v5378_v10 = vld [vmem:[%s10340_s5 + $0x4e0] sm:$0xff] }
 0x5ad   : > { %6698 = vmatprep.subr.bf16.mxu0 %v6697_v11  ;;  %v5380_v11 = vld [vmem:[%s10340_s5 + $0x4f0] sm:$0xff] }
 0x5ae   : > { %v6742_v17 = vpack.c.bf16 %v5380_v11, %v5378_v10  ;;  %v5414_v11 = vld [vmem:[%s10340_s5 + $0x600] sm:$0xff] }
 0x5b0   : > { %6700 = vmatpush1.bf16.msra.mxu0 %v6699_v18  ;;  %v6744_v18 = vpack.c.bf16 %v5385_v16, %v5383_v15  ;;  %v5416_v15 = vld [vmem:[%s10340_s5 + $0x610] sm:$0xff]  ;;  %v5419_v16 = vld [vmem:[%s10340_s5 + $0x628] sm:$0xff] }
 0x5b1   : > { %6702 = vmatprep.subr.bf16.mxu0 %v6701_v19  ;;  %v5382_v19 = vld [vmem:[%s10340_s5 + $0x500] sm:$0xff] }
 0x5b2   : > { %v6746_v23 = vpack.c.bf16 %v5384_v20, %v5382_v19  ;;  %v5418_v20 = vld [vmem:[%s10340_s5 + $0x620] sm:$0xff] }
 0x5b4   : > { %6704 = vmatpush1.bf16.msra.mxu0 %v6703_v25  ;;  %v9057_v25 = vpop.f32.mrb[54].mxu1 }
 0x5b5   : > { %6706 = vmatprep.subr.bf16.mxu0 %v6705_v27  ;;  %v6748_v27 = vpack.c.bf16 %v5389_v22, %v5387_v21  ;;  %v6240_v31 = vpop.f32.mrb[55].mxu1  ;;  %v5420_v21 = vld [vmem:[%s10340_s5 + $0x630] sm:$0xff]  ;;  %v5423_v22 = vld [vmem:[%s10340_s5 + $0x648] sm:$0xff] }
 0x5b6   : > { %v5424_v31 = vld [vmem:[%s10340_s5 + $0x650] sm:$0xff] }
 0x5b8   : > { %6708 = vmatpush1.bf16.msra.mxu0 %v6707_v33  ;;  %v5393_v33 = vld [vmem:[%s10340_s5 + $0x558] sm:$0xff] }
 0x5b9   : > { %6710 = vmatprep.subr.bf16.mxu0 %v6709_v61  ;;  %v6750_v61 = vpack.c.bf16 %v5388_v30, %v5386_v28  ;;  %v6752_v36 = vpack.c.bf16 %v5393_v33, %v5391_v32  ;;  %v5422_v30 = vld [vmem:[%s10340_s5 + $0x640] sm:$0xff]  ;;  %v5427_v32 = vld [vmem:[%s10340_s5 + $0x668] sm:$0xff]  ;;  %v5429_v33 = vld [vmem:[%s10340_s5 + $0x678] sm:$0xff] }
 0x5bc   : > { %6712 = vmatpush1.bf16.msra.mxu0 %v6711_v41  ;;  %v5397_v41 = vld [vmem:[%s10340_s5 + $0x578] sm:$0xff] }
 0x5bd   : > { %6714 = vmatprep.subr.bf16.mxu0 %v6713_v9  ;;  %v6754_v9 = vpack.c.bf16 %v5392_v37, %v5390_v2  ;;  %v6756_v5 = vpack.c.bf16 %v5397_v41, %v5395_v39  ;;  %v5426_v2 = vld [vmem:[%s10340_s5 + $0x660] sm:$0xff]  ;;  %v5428_v37 = vld [vmem:[%s10340_s5 + $0x670] sm:$0xff]  ;;  %v5431_v39 = vld [vmem:[%s10340_s5 + $0x688] sm:$0xff] }
 0x5be   : > { %v5433_v41 = vld [vmem:[%s10340_s5 + $0x698] sm:$0xff] }
 0x5bf   : > { %2696 = vmatmul.mubr.f32.vlgmr.msra.gmra.mrb[26].mxu0 %v8748_v38  ;;  %v5373_v38 = vld [vmem:[%s10340_s5 + $0x4b8] sm:$0xff] }
 0x5c0   : > { %6716 = vmatpush1.bf16.msra.mxu0 %v6715_v12  ;;  %2766 = vmatprep.mubr.f32.mxu0 %v7346_v1  ;;  %v6732_v54 = vpack.c.bf16 %v5373_v38, %v5371_v52  ;;  %v5401_v12 = vld [vmem:[%s10340_s5 + $0x598] sm:$0xff]  ;;  %v5404_v52 = vld [vmem:[%s10340_s5 + $0x5b0] sm:$0xff]  ;;  %v5407_v38 = vld [vmem:[%s10340_s5 + $0x5c8] sm:$0xff] }
 0x5c1   : > { %6718 = vmatprep.subr.bf16.mxu0 %v6717_v42  ;;  %v6758_v42 = vpack.c.bf16 %v5396_v43, %v5394_v35  ;;  %v6760_v46 = vpack.c.bf16 %v5401_v12, %v5399_v45  ;;  %v5430_v35 = vld [vmem:[%s10340_s5 + $0x680] sm:$0xff]  ;;  %v5432_v43 = vld [vmem:[%s10340_s5 + $0x690] sm:$0xff]  ;;  %v5435_v45 = vld [vmem:[%s10340_s5 + $0x6a8] sm:$0xff] }
 0x5c2   : > { %v5437_v12 = vld [vmem:[%s10340_s5 + $0x6b8] sm:$0xff] }
 0x5c4   : > { %6720 = vmatpush1.bf16.msra.mxu0 %v6719_v49  ;;  %v5405_v49 = vld [vmem:[%s10340_s5 + $0x5b8] sm:$0xff] }
 0x5c5   : > { %6729 = vmatprep.subr.bf16.mxu0 %v6728_v40  ;;  %v6762_v40 = vpack.c.bf16 %v5400_v48, %v5398_v44  ;;  %v6764_v50 = vpack.c.bf16 %v5405_v49, %v5403_v7  ;;  %v5434_v44 = vld [vmem:[%s10340_s5 + $0x6a0] sm:$0xff]  ;;  %v5436_v48 = vld [vmem:[%s10340_s5 + $0x6b0] sm:$0xff]  ;;  %v5446_v7 = vld [vmem:[%s10340_s5 + $0x6c8] sm:$0xff] }
 0x5c6   : > { %v5448_v49 = vld [vmem:[%s10340_s5 + $0x6d8] sm:$0xff] }
 0x5c7   : > { %5359 = vmatmul.mubr.msk.f32.vlgmr.msra.gmra.mrb[26].mxu0 %vm2482_vm5, %v8763_v47  ;;  %v5381_v47 = vld [vmem:[%s10340_s5 + $0x4f8] sm:$0xff] }
 0x5c8   : > { %6731 = vmatpush1.bf16.msra.mxu0 %v6730_v53  ;;  %3059 = vmatprep.mubr.f32.mxu0 %v8810_v14  ;;  %v6738_v14 = vpack.c.bf16 %v5376_v63, %v5374_v60  ;;  %v6740_v6 = vpack.c.bf16 %v5381_v47, %v5379_v3  ;;  %v5409_v53 = vld [vmem:[%s10340_s5 + $0x5d8] sm:$0xff]  ;;  %v5410_v63 = vld [vmem:[%s10340_s5 + $0x5e0] sm:$0xff]  ;;  %v5412_v3 = vld [vmem:[%s10340_s5 + $0x5f0] sm:$0xff] }
 0x5c9   : > { %6733 = vmatprep.subr.bf16.mxu0 %v6732_v54  ;;  %v6766_v54 = vpack.c.bf16 %v5404_v52, %v5402_v51  ;;  %v6768_v55 = vpack.c.bf16 %v5409_v53, %v5407_v38  ;;  %v5415_v47 = vld [vmem:[%s10340_s5 + $0x608] sm:$0xff]  ;;  %v5445_v51 = vld [vmem:[%s10340_s5 + $0x6c0] sm:$0xff]  ;;  %v5447_v52 = vld [vmem:[%s10340_s5 + $0x6d0] sm:$0xff] }
 0x5ca   : > { %v5450_v38 = vld [vmem:[%s10340_s5 + $0x6e8] sm:$0xff]  ;;  %v6809_v53 = vpack.c.bf16 %v5447_v52, %v5445_v51  ;;  %v5481_v52 = vld [vmem:[%s10340_s5 + $0x7e0] sm:$0xff] }
 0x5cc   : > { %6735 = vmatpush1.bf16.msra.mxu0 %v6734_v34  ;;  %v5413_v34 = vld [vmem:[%s10340_s5 + $0x5f8] sm:$0xff] }
 0x5cd   : > { %6737 = vmatprep.subr.bf16.mxu0 %v6736_v57  ;;  %v6770_v57 = vpack.c.bf16 %v5408_v56, %v5406_v26  ;;  %v6772_v60 = vpack.c.bf16 %v5413_v34, %v5411_v29  ;;  %v5451_v26 = vld [vmem:[%s10340_s5 + $0x6f0] sm:$0xff]  ;;  %v5454_v56 = vld [vmem:[%s10340_s5 + $0x708] sm:$0xff]  ;;  %v5456_v29 = vld [vmem:[%s10340_s5 + $0x718] sm:$0xff] }
 0x5d0   : > { %6739 = vmatpush1.bf16.msra.mxu0 %v6738_v14  ;;  %v5417_v14 = vld [vmem:[%s10340_s5 + $0x618] sm:$0xff] }
 0x5d1   : > { %6741 = vmatprep.subr.bf16.mxu0 %v6740_v6  ;;  %v6774_v6 = vpack.c.bf16 %v5412_v3, %v5410_v63  ;;  %v6776_v10 = vpack.c.bf16 %v5417_v14, %v5415_v47  ;;  %v5455_v63 = vld [vmem:[%s10340_s5 + $0x710] sm:$0xff]  ;;  %v9250_v3 = vpop.f32.mrb[56].mxu1 }
 0x5d2   : > { %v9258_v14 = vpop.f32.mrb[57].mxu1 }
 0x5d4   : > { %6743 = vmatpush1.bf16.msra.mxu0 %v6742_v17  ;;  %v5421_v17 = vld [vmem:[%s10340_s5 + $0x638] sm:$0xff] }
 0x5d5   : > { %6745 = vmatprep.subr.bf16.mxu0 %v6744_v18  ;;  %v6778_v18 = vpack.c.bf16 %v5416_v15, %v5414_v11  ;;  %v6780_v19 = vpack.c.bf16 %v5421_v17, %v5419_v16  ;;  %v5459_v11 = vld [vmem:[%s10340_s5 + $0x730] sm:$0xff]  ;;  %v5462_v15 = vld [vmem:[%s10340_s5 + $0x748] sm:$0xff]  ;;  %v5464_v16 = vld [vmem:[%s10340_s5 + $0x758] sm:$0xff] }
 0x5d8   : > { %6747 = vmatpush1.bf16.msra.mxu0 %v6746_v23  ;;  %v5425_v23 = vld [vmem:[%s10340_s5 + $0x658] sm:$0xff] }
 0x5d9   : > { %6749 = vmatprep.subr.bf16.mxu0 %v6748_v27  ;;  %v6782_v27 = vpack.c.bf16 %v5420_v21, %v5418_v20  ;;  %v6784_v28 = vpack.c.bf16 %v5425_v23, %v5423_v22  ;;  %v5463_v20 = vld [vmem:[%s10340_s5 + $0x750] sm:$0xff]  ;;  %v5466_v21 = vld [vmem:[%s10340_s5 + $0x768] sm:$0xff]  ;;  %v5468_v22 = vld [vmem:[%s10340_s5 + $0x778] sm:$0xff] }
 0x5dc   : > { %6751 = vmatpush1.bf16.msra.mxu0 %v6750_v61  ;;  %v6786_v61 = vpack.c.bf16 %v5424_v31, %v5422_v30  ;;  %v5465_v30 = vld [vmem:[%s10340_s5 + $0x760] sm:$0xff]  ;;  %v5467_v31 = vld [vmem:[%s10340_s5 + $0x770] sm:$0xff] }
 0x5dd   : > { %6753 = vmatprep.subr.bf16.mxu0 %v6752_v36  ;;  %v6788_v36 = vpack.c.bf16 %v5429_v33, %v5427_v32  ;;  %v5470_v33 = vld [vmem:[%s10340_s5 + $0x788] sm:$0xff] }
 0x5e0   : > { %6755 = vmatpush1.bf16.msra.mxu0 %v6754_v9  ;;  %v6790_v9 = vpack.c.bf16 %v5428_v37, %v5426_v2  ;;  %v5469_v37 = vld [vmem:[%s10340_s5 + $0x780] sm:$0xff] }
 0x5e1   : > { %6757 = vmatprep.subr.bf16.mxu0 %v6756_v5  ;;  %v6792_v5 = vpack.c.bf16 %v5433_v41, %v5431_v39  ;;  %v5471_v39 = vld [vmem:[%s10340_s5 + $0x790] sm:$0xff]  ;;  %v5474_v41 = vld [vmem:[%s10340_s5 + $0x7a8] sm:$0xff] }
 0x5e4   : > { %6759 = vmatpush1.bf16.msra.mxu0 %v6758_v42  ;;  %v6794_v42 = vpack.c.bf16 %v5432_v43, %v5430_v35  ;;  %v5473_v43 = vld [vmem:[%s10340_s5 + $0x7a0] sm:$0xff] }
 0x5e5   : > { %6761 = vmatprep.subr.bf16.mxu0 %v6760_v46  ;;  %v6796_v46 = vpack.c.bf16 %v5437_v12, %v5435_v45  ;;  %v5475_v45 = vld [vmem:[%s10340_s5 + $0x7b0] sm:$0xff]  ;;  %v5478_v12 = vld [vmem:[%s10340_s5 + $0x7c8] sm:$0xff] }
 0x5e8   : > { %6763 = vmatpush1.bf16.msra.mxu0 %v6762_v40  ;;  %v6798_v40 = vpack.c.bf16 %v5436_v48, %v5434_v44  ;;  %v5477_v48 = vld [vmem:[%s10340_s5 + $0x7c0] sm:$0xff] }
 0x5e9   : > { %6765 = vmatprep.subr.bf16.mxu0 %v6764_v50  ;;  %v6807_v50 = vpack.c.bf16 %v5448_v49, %v5446_v7  ;;  %v5479_v7 = vld [vmem:[%s10340_s5 + $0x7d0] sm:$0xff]  ;;  %v5482_v49 = vld [vmem:[%s10340_s5 + $0x7e8] sm:$0xff] }
 0x5ec   : > { %6767 = vmatpush1.bf16.msra.mxu0 %v6766_v54 }
 0x5ed   : > { %6769 = vmatprep.subr.bf16.mxu0 %v6768_v55  ;;  %v5449_v55 = vld [vmem:[%s10340_s5 + $0x6e0] sm:$0xff] }
 0x5ee   : > { %v6813_v34 = vpack.c.bf16 %v5451_v26, %v5449_v55  ;;  %v5485_v26 = vld [vmem:[%s10340_s5 + $0x800] sm:$0xff] }
 0x5f0   : > { %6771 = vmatpush1.bf16.msra.mxu0 %v6770_v57  ;;  %v6815_v57 = vpack.c.bf16 %v5456_v29, %v5454_v56  ;;  %v5487_v56 = vld [vmem:[%s10340_s5 + $0x810] sm:$0xff]  ;;  %v5490_v29 = vld [vmem:[%s10340_s5 + $0x828] sm:$0xff] }
 0x5f1   : > { %6773 = vmatprep.subr.bf16.mxu0 %v6772_v60  ;;  %v5453_v60 = vld [vmem:[%s10340_s5 + $0x700] sm:$0xff] }
 0x5f2   : > { %v6817_v47 = vpack.c.bf16 %v5455_v63, %v5453_v60  ;;  %v5489_v63 = vld [vmem:[%s10340_s5 + $0x820] sm:$0xff] }
 0x5f4   : > { %6775 = vmatpush1.bf16.msra.mxu0 %v6774_v6 }
 0x5f5   : > { %6777 = vmatprep.subr.bf16.mxu0 %v6776_v10  ;;  %v5457_v10 = vld [vmem:[%s10340_s5 + $0x720] sm:$0xff] }
 0x5f6   : > { %v6821_v17 = vpack.c.bf16 %v5459_v11, %v5457_v10  ;;  %v5493_v11 = vld [vmem:[%s10340_s5 + $0x840] sm:$0xff] }
 0x5f8   : > { %6779 = vmatpush1.bf16.msra.mxu0 %v6778_v18  ;;  %v6823_v18 = vpack.c.bf16 %v5464_v16, %v5462_v15  ;;  %v5495_v15 = vld [vmem:[%s10340_s5 + $0x850] sm:$0xff]  ;;  %v5498_v16 = vld [vmem:[%s10340_s5 + $0x868] sm:$0xff] }
 0x5f9   : > { %6781 = vmatprep.subr.bf16.mxu0 %v6780_v19  ;;  %v5461_v19 = vld [vmem:[%s10340_s5 + $0x740] sm:$0xff] }
 0x5fa   : > { %v6825_v23 = vpack.c.bf16 %v5463_v20, %v5461_v19  ;;  %v5497_v20 = vld [vmem:[%s10340_s5 + $0x860] sm:$0xff] }
 0x5fc   : > { %6783 = vmatpush1.bf16.msra.mxu0 %v6782_v27  ;;  %v9284_v27 = vpop.f32.mrb[58].mxu1 }
 0x5fd   : > { %6785 = vmatprep.subr.bf16.mxu0 %v6784_v28  ;;  %v6827_v28 = vpack.c.bf16 %v5468_v22, %v5466_v21  ;;  %v6249_v32 = vpop.f32.mrb[59].mxu1  ;;  %v5499_v21 = vld [vmem:[%s10340_s5 + $0x870] sm:$0xff]  ;;  %v5502_v22 = vld [vmem:[%s10340_s5 + $0x888] sm:$0xff] }
 0x5fe   : > { %v5503_v32 = vld [vmem:[%s10340_s5 + $0x890] sm:$0xff] }
 0x600   : > { %6787 = vmatpush1.bf16.msra.mxu0 %v6786_v61  ;;  %v5472_v61 = vld [vmem:[%s10340_s5 + $0x798] sm:$0xff] }
 0x601   : > { %6789 = vmatprep.subr.bf16.mxu0 %v6788_v36  ;;  %v6829_v36 = vpack.c.bf16 %v5467_v31, %v5465_v30  ;;  %v6831_v2 = vpack.c.bf16 %v5472_v61, %v5470_v33  ;;  %v5501_v31 = vld [vmem:[%s10340_s5 + $0x880] sm:$0xff]  ;;  %v5506_v33 = vld [vmem:[%s10340_s5 + $0x8a8] sm:$0xff]  ;;  %v5508_v61 = vld [vmem:[%s10340_s5 + $0x8b8] sm:$0xff] }
 0x604   : > { %6791 = vmatpush1.bf16.msra.mxu0 %v6790_v9  ;;  %v5476_v9 = vld [vmem:[%s10340_s5 + $0x7b8] sm:$0xff] }
 0x605   : > { %6793 = vmatprep.subr.bf16.mxu0 %v6792_v5  ;;  %v6833_v5 = vpack.c.bf16 %v5471_v39, %v5469_v37  ;;  %v6835_v35 = vpack.c.bf16 %v5476_v9, %v5474_v41  ;;  %v5505_v37 = vld [vmem:[%s10340_s5 + $0x8a0] sm:$0xff]  ;;  %v5507_v39 = vld [vmem:[%s10340_s5 + $0x8b0] sm:$0xff]  ;;  %v5510_v41 = vld [vmem:[%s10340_s5 + $0x8c8] sm:$0xff] }
 0x606   : > { %v5512_v9 = vld [vmem:[%s10340_s5 + $0x8d8] sm:$0xff] }
 0x607   : > { %3060 = vmatmul.mubr.f32.vlgmr.msra.gmra.mrb[26].mxu0 %v8802_v8  ;;  %v5452_v8 = vld [vmem:[%s10340_s5 + $0x6f8] sm:$0xff] }
 0x608   : > { %6795 = vmatpush1.bf16.msra.mxu0 %v6794_v42  ;;  %3130 = vmatprep.mubr.f32.mxu0 %v7346_v1  ;;  %v6811_v54 = vpack.c.bf16 %v5452_v8, %v5450_v38  ;;  %v5480_v42 = vld [vmem:[%s10340_s5 + $0x7d8] sm:$0xff]  ;;  %v5483_v38 = vld [vmem:[%s10340_s5 + $0x7f0] sm:$0xff]  ;;  %v5486_v8 = vld [vmem:[%s10340_s5 + $0x808] sm:$0xff] }
 0x609   : > { %6797 = vmatprep.subr.bf16.mxu0 %v6796_v46  ;;  %v6837_v46 = vpack.c.bf16 %v5475_v45, %v5473_v43  ;;  %v6839_v44 = vpack.c.bf16 %v5480_v42, %v5478_v12  ;;  %v5509_v43 = vld [vmem:[%s10340_s5 + $0x8c0] sm:$0xff]  ;;  %v5511_v45 = vld [vmem:[%s10340_s5 + $0x8d0] sm:$0xff]  ;;  %v5514_v12 = vld [vmem:[%s10340_s5 + $0x8e8] sm:$0xff] }
 0x60a   : > { %v5516_v42 = vld [vmem:[%s10340_s5 + $0x8f8] sm:$0xff] }
 0x60c   : > { %6799 = vmatpush1.bf16.msra.mxu0 %v6798_v40  ;;  %v5484_v40 = vld [vmem:[%s10340_s5 + $0x7f8] sm:$0xff] }
 0x60d   : > { %6808 = vmatprep.subr.bf16.mxu0 %v6807_v50  ;;  %v6841_v50 = vpack.c.bf16 %v5479_v7, %v5477_v48  ;;  %v6843_v51 = vpack.c.bf16 %v5484_v40, %v5482_v49  ;;  %v5513_v48 = vld [vmem:[%s10340_s5 + $0x8e0] sm:$0xff]  ;;  %v5515_v7 = vld [vmem:[%s10340_s5 + $0x8f0] sm:$0xff]  ;;  %v5525_v49 = vld [vmem:[%s10340_s5 + $0x908] sm:$0xff] }
 0x60e   : > { %v5527_v40 = vld [vmem:[%s10340_s5 + $0x918] sm:$0xff] }
 0x60f   : > { %5438 = vmatmul.mubr.msk.f32.vlgmr.msra.gmra.mrb[26].mxu0 %vm2482_vm5, %v8830_v24  ;;  %v5458_v24 = vld [vmem:[%s10340_s5 + $0x728] sm:$0xff] }
 0x610   : > { %6810 = vmatpush1.bf16.msra.mxu0 %v6809_v53  ;;  %3425 = vmatprep.mubr.f32.mxu0 %v9037_v13  ;;  %v5460_v13 = vld [vmem:[%s10340_s5 + $0x738] sm:$0xff] }
 0x611   : > { %6812 = vmatprep.subr.bf16.mxu0 %v6811_v54  ;;  %v6819_v6 = vpack.c.bf16 %v5460_v13, %v5458_v24  ;;  %v5488_v53 = vld [vmem:[%s10340_s5 + $0x818] sm:$0xff]  ;;  %v6845_v54 = vpack.c.bf16 %v5483_v38, %v5481_v52  ;;  %v5491_v24 = vld [vmem:[%s10340_s5 + $0x830] sm:$0xff]  ;;  %v5494_v13 = vld [vmem:[%s10340_s5 + $0x848] sm:$0xff] }
 0x612   : > { %v6847_v55 = vpack.c.bf16 %v5488_v53, %v5486_v8  ;;  %v5524_v52 = vld [vmem:[%s10340_s5 + $0x900] sm:$0xff]  ;;  %v5526_v38 = vld [vmem:[%s10340_s5 + $0x910] sm:$0xff]  ;;  %v5529_v8 = vld [vmem:[%s10340_s5 + $0x928] sm:$0xff] }
 0x613   : > { %v6888_v53 = vpack.c.bf16 %v5526_v38, %v5524_v52  ;;  %v5567_v52 = vld [vmem:[%s10340_s5 + $0xa58] sm:$0xff] }
 0x614   : > { %6814 = vmatpush1.bf16.msra.mxu0 %v6813_v34  ;;  %v5492_v34 = vld [vmem:[%s10340_s5 + $0x838] sm:$0xff] }
 0x615   : > { %6816 = vmatprep.subr.bf16.mxu0 %v6815_v57  ;;  %v6849_v57 = vpack.c.bf16 %v5487_v56, %v5485_v26  ;;  %v6851_v60 = vpack.c.bf16 %v5492_v34, %v5490_v29  ;;  %v5530_v26 = vld [vmem:[%s10340_s5 + $0x930] sm:$0xff]  ;;  %v5533_v56 = vld [vmem:[%s10340_s5 + $0x948] sm:$0xff]  ;;  %v5535_v29 = vld [vmem:[%s10340_s5 + $0x958] sm:$0xff] }
 0x618   : > { %6818 = vmatpush1.bf16.msra.mxu0 %v6817_v47  ;;  %v5496_v47 = vld [vmem:[%s10340_s5 + $0x858] sm:$0xff] }
 0x619   : > { %6820 = vmatprep.subr.bf16.mxu0 %v6819_v6  ;;  %v6853_v6 = vpack.c.bf16 %v5491_v24, %v5489_v63  ;;  %v6855_v10 = vpack.c.bf16 %v5496_v47, %v5494_v13  ;;  %v5534_v63 = vld [vmem:[%s10340_s5 + $0x950] sm:$0xff]  ;;  %v5537_v24 = vld [vmem:[%s10340_s5 + $0x968] sm:$0xff]  ;;  %v5536_v47 = vld [vmem:[%s10340_s5 + $0x960] sm:$0xff] }
 0x61c   : > { %6822 = vmatpush1.bf16.msra.mxu0 %v6821_v17  ;;  %v5500_v17 = vld [vmem:[%s10340_s5 + $0x878] sm:$0xff] }
 0x61d   : > { %6824 = vmatprep.subr.bf16.mxu0 %v6823_v18  ;;  %v6857_v18 = vpack.c.bf16 %v5495_v15, %v5493_v11  ;;  %v6859_v19 = vpack.c.bf16 %v5500_v17, %v5498_v16  ;;  %v5543_v11 = vld [vmem:[%s10340_s5 + $0x998] sm:$0xff]  ;;  %v5540_v17 = vld [vmem:[%s10340_s5 + $0x980] sm:$0xff] }
 0x620   : > { %6826 = vmatpush1.bf16.msra.mxu0 %v6825_v23  ;;  %v5504_v23 = vld [vmem:[%s10340_s5 + $0x898] sm:$0xff] }
 0x621   : > { %6828 = vmatprep.subr.bf16.mxu0 %v6827_v28  ;;  %v6861_v28 = vpack.c.bf16 %v5499_v21, %v5497_v20  ;;  %v6863_v30 = vpack.c.bf16 %v5504_v23, %v5502_v22  ;;  %v5547_v20 = vld [vmem:[%s10340_s5 + $0x9b8] sm:$0xff]  ;;  %v5544_v23 = vld [vmem:[%s10340_s5 + $0x9a0] sm:$0xff] }
 0x624   : > { %6830 = vmatpush1.bf16.msra.mxu0 %v6829_v36  ;;  %v6865_v36 = vpack.c.bf16 %v5503_v32, %v5501_v31  ;;  %v5551_v31 = vld [vmem:[%s10340_s5 + $0x9d8] sm:$0xff] }
 0x625   : > { %6832 = vmatprep.subr.bf16.mxu0 %v6831_v2  ;;  %v6867_v2 = vpack.c.bf16 %v5508_v61, %v5506_v33  ;;  %v5548_v61 = vld [vmem:[%s10340_s5 + $0x9c0] sm:$0xff] }
 0x628   : > { %6834 = vmatpush1.bf16.msra.mxu0 %v6833_v5  ;;  %v6869_v5 = vpack.c.bf16 %v5507_v39, %v5505_v37  ;;  %v5555_v37 = vld [vmem:[%s10340_s5 + $0x9f8] sm:$0xff] }
 0x629   : > { %6836 = vmatprep.subr.bf16.mxu0 %v6835_v35  ;;  %v6871_v35 = vpack.c.bf16 %v5512_v9, %v5510_v41  ;;  %v5552_v9 = vld [vmem:[%s10340_s5 + $0x9e0] sm:$0xff] }
 0x62c   : > { %6838 = vmatpush1.bf16.msra.mxu0 %v6837_v46  ;;  %v6873_v46 = vpack.c.bf16 %v5511_v45, %v5509_v43  ;;  %v5559_v43 = vld [vmem:[%s10340_s5 + $0xa18] sm:$0xff] }
 0x62d   : > { %6840 = vmatprep.subr.bf16.mxu0 %v6839_v44  ;;  %v6875_v44 = vpack.c.bf16 %v5516_v42, %v5514_v12  ;;  %v5556_v42 = vld [vmem:[%s10340_s5 + $0xa00] sm:$0xff] }
 0x630   : > { %6842 = vmatpush1.bf16.msra.mxu0 %v6841_v50  ;;  %v6877_v50 = vpack.c.bf16 %v5515_v7, %v5513_v48  ;;  %v5563_v48 = vld [vmem:[%s10340_s5 + $0xa38] sm:$0xff] }
 0x631   : > { %6844 = vmatprep.subr.bf16.mxu0 %v6843_v51  ;;  %v6886_v51 = vpack.c.bf16 %v5527_v40, %v5525_v49  ;;  %v5560_v40 = vld [vmem:[%s10340_s5 + $0xa20] sm:$0xff] }
 0x634   : > { %6846 = vmatpush1.bf16.msra.mxu0 %v6845_v54 }
 0x635   : > { %6848 = vmatprep.subr.bf16.mxu0 %v6847_v55  ;;  %v5528_v55 = vld [vmem:[%s10340_s5 + $0x920] sm:$0xff] }
 0x636   : > { %v6892_v34 = vpack.c.bf16 %v5530_v26, %v5528_v55  ;;  %v5571_v55 = vld [vmem:[%s10340_s5 + $0xa78] sm:$0xff] }
 0x638   : > { %6850 = vmatpush1.bf16.msra.mxu0 %v6849_v57  ;;  %v6894_v57 = vpack.c.bf16 %v5535_v29, %v5533_v56  ;;  %v5568_v29 = vld [vmem:[%s10340_s5 + $0xa60] sm:$0xff] }
 0x639   : > { %6852 = vmatprep.subr.bf16.mxu0 %v6851_v60  ;;  %v5532_v60 = vld [vmem:[%s10340_s5 + $0x940] sm:$0xff] }
 0x63c   : > { %6854 = vmatpush1.bf16.msra.mxu0 %v6853_v6  ;;  %v5538_v6 = vld [vmem:[%s10340_s5 + $0x970] sm:$0xff] }
 0x63d   : > { %6856 = vmatprep.subr.bf16.mxu0 %v6855_v10  ;;  %v5541_v10 = vld [vmem:[%s10340_s5 + $0x988] sm:$0xff]  ;;  %v6900_v15 = vpack.c.bf16 %v5538_v6, %v5536_v47  ;;  %v5579_v47 = vld [vmem:[%s10340_s5 + $0xab8] sm:$0xff] }
 0x63e   : > { %v6902_v16 = vpack.c.bf16 %v5543_v11, %v5541_v10  ;;  %v5576_v11 = vld [vmem:[%s10340_s5 + $0xaa0] sm:$0xff] }
 0x640   : > { %6858 = vmatpush1.bf16.msra.mxu0 %v6857_v18  ;;  %v5542_v18 = vld [vmem:[%s10340_s5 + $0x990] sm:$0xff] }
 0x641   : > { %6860 = vmatprep.subr.bf16.mxu0 %v6859_v19  ;;  %v5545_v19 = vld [vmem:[%s10340_s5 + $0x9a8] sm:$0xff]  ;;  %v6904_v21 = vpack.c.bf16 %v5542_v18, %v5540_v17  ;;  %v5583_v17 = vld [vmem:[%s10340_s5 + $0xad8] sm:$0xff] }
 0x642   : > { %v6906_v22 = vpack.c.bf16 %v5547_v20, %v5545_v19  ;;  %v5580_v20 = vld [vmem:[%s10340_s5 + $0xac0] sm:$0xff] }
 0x644   : > { %6862 = vmatpush1.bf16.msra.mxu0 %v6861_v28  ;;  %v5546_v28 = vld [vmem:[%s10340_s5 + $0x9b0] sm:$0xff] }
 0x645   : > { %6864 = vmatprep.subr.bf16.mxu0 %v6863_v30  ;;  %v5549_v30 = vld [vmem:[%s10340_s5 + $0x9c8] sm:$0xff]  ;;  %v6908_v32 = vpack.c.bf16 %v5546_v28, %v5544_v23  ;;  %v5587_v23 = vld [vmem:[%s10340_s5 + $0xaf8] sm:$0xff] }
 0x646   : > { %v6910_v33 = vpack.c.bf16 %v5551_v31, %v5549_v30  ;;  %v5584_v31 = vld [vmem:[%s10340_s5 + $0xae0] sm:$0xff] }
 0x648   : > { %6866 = vmatpush1.bf16.msra.mxu0 %v6865_v36  ;;  %v5550_v36 = vld [vmem:[%s10340_s5 + $0x9d0] sm:$0xff] }
 0x649   : > { %6868 = vmatprep.subr.bf16.mxu0 %v6867_v2  ;;  %v5553_v2 = vld [vmem:[%s10340_s5 + $0x9e8] sm:$0xff]  ;;  %v6912_v39 = vpack.c.bf16 %v5550_v36, %v5548_v61  ;;  %v5591_v61 = vld [vmem:[%s10340_s5 + $0xb18] sm:$0xff] }
 0x64a   : > { %v6914_v41 = vpack.c.bf16 %v5555_v37, %v5553_v2  ;;  %v5588_v37 = vld [vmem:[%s10340_s5 + $0xb00] sm:$0xff] }
 0x64c   : > { %6870 = vmatpush1.bf16.msra.mxu0 %v6869_v5  ;;  %v5554_v5 = vld [vmem:[%s10340_s5 + $0x9f0] sm:$0xff] }
 0x64d   : > { %6872 = vmatprep.subr.bf16.mxu0 %v6871_v35  ;;  %v5557_v35 = vld [vmem:[%s10340_s5 + $0xa08] sm:$0xff]  ;;  %v6916_v45 = vpack.c.bf16 %v5554_v5, %v5552_v9  ;;  %v5595_v9 = vld [vmem:[%s10340_s5 + $0xb38] sm:$0xff] }
 0x64e   : > { %v6918_v12 = vpack.c.bf16 %v5559_v43, %v5557_v35  ;;  %v5592_v43 = vld [vmem:[%s10340_s5 + $0xb20] sm:$0xff] }
 0x64f   : > { %3426 = vmatmul.mubr.f32.vlgmr.msra.gmra.mrb[26].mxu0 %v9029_v4  ;;  %v5531_v4 = vld [vmem:[%s10340_s5 + $0x938] sm:$0xff] }
 0x650   : > { %6874 = vmatpush1.bf16.msra.mxu0 %v6873_v46  ;;  %3496 = vmatprep.mubr.f32.mxu0 %v7346_v1  ;;  %v6890_v54 = vpack.c.bf16 %v5531_v4, %v5529_v8  ;;  %v5558_v46 = vld [vmem:[%s10340_s5 + $0xa10] sm:$0xff]  ;;  %v5564_v4 = vld [vmem:[%s10340_s5 + $0xa40] sm:$0xff] }
 0x651   : > { %6876 = vmatprep.subr.bf16.mxu0 %v6875_v44  ;;  %v5561_v44 = vld [vmem:[%s10340_s5 + $0xa28] sm:$0xff]  ;;  %v6920_v7 = vpack.c.bf16 %v5558_v46, %v5556_v42  ;;  %v3871_v42 = vld [vmem:[%s10341_s6] sm:$0x3] }
 0x652   : > { %v6922_v49 = vpack.c.bf16 %v5563_v48, %v5561_v44  ;;  %v3876_v46 = vrot.slane %v3871_v42, %v2004_v59  ;;  %v3887_v59 = vld [vmem:[%s10342_s7] sm:$0x3] }
 0x654   : > { %6878 = vmatpush1.bf16.msra.mxu0 %v6877_v50  ;;  %v5562_v50 = vld [vmem:[%s10340_s5 + $0xa30] sm:$0xff] }
 0x655   : > { %6887 = vmatprep.subr.bf16.mxu0 %v6886_v51  ;;  %v5565_v51 = vld [vmem:[%s10340_s5 + $0xa48] sm:$0xff]  ;;  %v6924_v38 = vpack.c.bf16 %v5562_v50, %v5560_v40 }
 0x656   : > { %v6926_v8 = vpack.c.bf16 %v5567_v52, %v5565_v51  ;;  %v5605_v40 = vld [vmem:[%s10343_s8 + $0xe8] sm:$0xff]  ;;  %v5606_v52 = vld [vmem:[%s10343_s8 + $0xf0] sm:$0xff] }
 0x657   : > { %5517 = vmatmul.mubr.msk.f32.vlgmr.msra.gmra.mrb[26].mxu0 %vm2482_vm5, %v9057_v25  ;;  %v5539_v25 = vld [vmem:[%s10340_s5 + $0x978] sm:$0xff] }
 0x658   : > { %6889 = vmatpush1.bf16.msra.mxu0 %v6888_v53  ;;  %3791 = vmatprep.mubr.f32.mxu0 %v9258_v14  ;;  %v6896_v14 = vpack.c.bf16 %v5534_v63, %v5532_v60  ;;  %v6898_v13 = vpack.c.bf16 %v5539_v25, %v5537_v24  ;;  %v5566_v53 = vld [vmem:[%s10340_s5 + $0xa50] sm:$0xff]  ;;  %v5575_v60 = vld [vmem:[%s10340_s5 + $0xa98] sm:$0xff]  ;;  %v5572_v25 = vld [vmem:[%s10340_s5 + $0xa80] sm:$0xff] }
 0x659   : > { %6891 = vmatprep.subr.bf16.mxu0 %v6890_v54  ;;  %v5569_v54 = vld [vmem:[%s10340_s5 + $0xa68] sm:$0xff]  ;;  %v6928_v26 = vpack.c.bf16 %v5566_v53, %v5564_v4  ;;  %v5608_v4 = vld [vmem:[%s10343_s8 + $0x100] sm:$0xff] }
 0x65a   : > { %v6930_v56 = vpack.c.bf16 %v5571_v55, %v5569_v54  ;;  %v5609_v53 = vld [vmem:[%s10343_s8 + $0x108] sm:$0xff]  ;;  %v5610_v55 = vld [vmem:[%s10343_s8 + $0x110] sm:$0xff] }
 0x65b   : > { %v6965_v54 = vpack.c.bf16 %v5609_v53, %v5608_v4  ;;  %v3984_v53 = vld [vmem:[%s10343_s8 + $0x70] sm:$0xff] }
 0x65c   : > { %6893 = vmatpush1.bf16.msra.mxu0 %v6892_v34  ;;  %v5570_v34 = vld [vmem:[%s10340_s5 + $0xa70] sm:$0xff] }
 0x65d   : > { %6895 = vmatprep.subr.bf16.mxu0 %v6894_v57  ;;  %v5573_v57 = vld [vmem:[%s10340_s5 + $0xa88] sm:$0xff]  ;;  %v6932_v63 = vpack.c.bf16 %v5570_v34, %v5568_v29  ;;  %v5612_v29 = vld [vmem:[%s10343_s8 + $0x120] sm:$0xff] }
 0x65e   : > { %v6934_v24 = vpack.c.bf16 %v5575_v60, %v5573_v57  ;;  %v5613_v34 = vld [vmem:[%s10343_s8 + $0x128] sm:$0xff]  ;;  %v5614_v60 = vld [vmem:[%s10343_s8 + $0x130] sm:$0xff] }
 0x65f   : > { %v6971_v57 = vpack.c.bf16 %v5613_v34, %v5612_v29  ;;  %v3988_v34 = vld [vmem:[%s10343_s8 + $0x90] sm:$0xff] }
 0x660   : > { %6897 = vmatpush1.bf16.msra.mxu0 %v6896_v14  ;;  %v5574_v14 = vld [vmem:[%s10340_s5 + $0xa90] sm:$0xff] }
 0x661   : > { %6899 = vmatprep.subr.bf16.mxu0 %v6898_v13  ;;  %v5577_v13 = vld [vmem:[%s10340_s5 + $0xaa8] sm:$0xff]  ;;  %v6936_v6 = vpack.c.bf16 %v5574_v14, %v5572_v25  ;;  %v5616_v25 = vld [vmem:[%s10343_s8 + $0x140] sm:$0xff] }
 0x662   : > { %v6938_v10 = vpack.c.bf16 %v5579_v47, %v5577_v13  ;;  %v5617_v14 = vld [vmem:[%s10343_s8 + $0x148] sm:$0xff]  ;;  %v5618_v47 = vld [vmem:[%s10343_s8 + $0x150] sm:$0xff] }
 0x663   : > { %v6977_v13 = vpack.c.bf16 %v5617_v14, %v5616_v25  ;;  %v3992_v14 = vld [vmem:[%s10343_s8 + $0xb0] sm:$0xff] }
 0x664   : > { %6901 = vmatpush1.bf16.msra.mxu0 %v6900_v15  ;;  %v5578_v15 = vld [vmem:[%s10340_s5 + $0xab0] sm:$0xff] }
 0x665   : > { %6903 = vmatprep.subr.bf16.mxu0 %v6902_v16  ;;  %v5581_v16 = vld [vmem:[%s10340_s5 + $0xac8] sm:$0xff]  ;;  %v6940_v18 = vpack.c.bf16 %v5578_v15, %v5576_v11  ;;  %v5620_v11 = vld [vmem:[%s10343_s8 + $0x160] sm:$0xff] }
 0x666   : > { %v6942_v19 = vpack.c.bf16 %v5583_v17, %v5581_v16  ;;  %v5621_v15 = vld [vmem:[%s10343_s8 + $0x168] sm:$0xff]  ;;  %v5622_v17 = vld [vmem:[%s10343_s8 + $0x170] sm:$0xff] }
 0x667   : > { %v6983_v16 = vpack.c.bf16 %v5621_v15, %v5620_v11  ;;  %v3996_v15 = vld [vmem:[%s10343_s8 + $0xd0] sm:$0xff] }
 0x668   : > { %6905 = vmatpush1.bf16.msra.mxu0 %v6904_v21  ;;  %v5582_v21 = vld [vmem:[%s10340_s5 + $0xad0] sm:$0xff] }
 0x669   : > { %6907 = vmatprep.subr.bf16.mxu0 %v6906_v22  ;;  %v5585_v22 = vld [vmem:[%s10340_s5 + $0xae8] sm:$0xff]  ;;  %v6944_v28 = vpack.c.bf16 %v5582_v21, %v5580_v20  ;;  %v5624_v20 = vld [vmem:[%s10343_s8 + $0x180] sm:$0xff] }
 0x66a   : > { %v6946_v30 = vpack.c.bf16 %v5587_v23, %v5585_v22  ;;  %v5625_v21 = vld [vmem:[%s10343_s8 + $0x188] sm:$0xff]  ;;  %v5626_v23 = vld [vmem:[%s10343_s8 + $0x190] sm:$0xff] }
 0x66b   : > { %v6989_v22 = vpack.c.bf16 %v5625_v21, %v5624_v20  ;;  %v5634_v20 = vld [vmem:[%s10342_s7 + $0x4] sm:$0x3] }
 0x66c   : > { %6909 = vmatpush1.bf16.msra.mxu0 %v6908_v32  ;;  %v5586_v32 = vld [vmem:[%s10340_s5 + $0xaf0] sm:$0xff] }
 0x66d   : > { %6911 = vmatprep.subr.bf16.mxu0 %v6910_v33  ;;  %v5589_v33 = vld [vmem:[%s10340_s5 + $0xb08] sm:$0xff]  ;;  %v6948_v36 = vpack.c.bf16 %v5586_v32, %v5584_v31  ;;  %v5628_v31 = vld [vmem:[%s10343_s8 + $0x1a0] sm:$0xff] }
 0x66e   : > { %v6950_v2 = vpack.c.bf16 %v5591_v61, %v5589_v33  ;;  %v5629_v32 = vld [vmem:[%s10343_s8 + $0x1a8] sm:$0xff]  ;;  %v5630_v61 = vld [vmem:[%s10343_s8 + $0x1b0] sm:$0xff] }
 0x66f   : > { %v6995_v33 = vpack.c.bf16 %v5629_v32, %v5628_v31  ;;  %v5643_v31 = vld [vmem:[%s10343_s8 + $0x1e8] sm:$0xff] }
 0x670   : > { %6913 = vmatpush1.bf16.msra.mxu0 %v6912_v39  ;;  %v5590_v39 = vld [vmem:[%s10340_s5 + $0xb10] sm:$0xff] }
 0x671   : > { %6915 = vmatprep.subr.bf16.mxu0 %v6914_v41  ;;  %v5593_v41 = vld [vmem:[%s10340_s5 + $0xb28] sm:$0xff]  ;;  %v6952_v5 = vpack.c.bf16 %v5590_v39, %v5588_v37  ;;  %v3970_v37 = vld [vmem:[%s10343_s8] sm:$0xff] }
 0x672   : > { %v6954_v35 = vpack.c.bf16 %v5595_v9, %v5593_v41  ;;  %v3971_v39 = vld [vmem:[%s10343_s8 + $0x8] sm:$0xff] }
 0x673   : > { %v7001_v9 = vpack.c.bf16 %v3971_v39, %v3970_v37  ;;  %v5647_v37 = vld [vmem:[%s10343_s8 + $0x208] sm:$0xff] }
 0x674   : > { %6917 = vmatpush1.bf16.msra.mxu0 %v6916_v45  ;;  %v5594_v45 = vld [vmem:[%s10340_s5 + $0xb30] sm:$0xff] }
 0x675   : > { %6919 = vmatprep.subr.bf16.mxu0 %v6918_v12  ;;  %v6956_v12 = vpack.c.bf16 %v5594_v45, %v5592_v43  ;;  %v3972_v43 = vld [vmem:[%s10343_s8 + $0x10] sm:$0xff]  ;;  %v3973_v45 = vld [vmem:[%s10343_s8 + $0x18] sm:$0xff] }
 0x678   : > { %6921 = vmatpush1.bf16.msra.mxu0 %v6920_v7 }
 0x679   : > { %6923 = vmatprep.subr.bf16.mxu0 %v6922_v49 }
 0x67c   : > { %6925 = vmatpush1.bf16.msra.mxu0 %v6924_v38  ;;  %v5607_v38 = vld [vmem:[%s10343_s8 + $0xf8] sm:$0xff] }
 0x67d   : > { %6927 = vmatprep.subr.bf16.mxu0 %v6926_v8  ;;  %v6962_v8 = vpack.c.bf16 %v5607_v38, %v5606_v52  ;;  %v3982_v38 = vld [vmem:[%s10343_s8 + $0x60] sm:$0xff] }
 0x680   : > { %6929 = vmatpush1.bf16.msra.mxu0 %v6928_v26  ;;  %v5611_v26 = vld [vmem:[%s10343_s8 + $0x118] sm:$0xff] }
 0x681   : > { %6931 = vmatprep.subr.bf16.mxu0 %v6930_v56  ;;  %v6968_v56 = vpack.c.bf16 %v5611_v26, %v5610_v55  ;;  %v3986_v26 = vld [vmem:[%s10343_s8 + $0x80] sm:$0xff] }
 0x684   : > { %6933 = vmatpush1.bf16.msra.mxu0 %v6932_v63  ;;  %v5615_v63 = vld [vmem:[%s10343_s8 + $0x138] sm:$0xff] }
 0x685   : > { %6935 = vmatprep.subr.bf16.mxu0 %v6934_v24  ;;  %v6974_v24 = vpack.c.bf16 %v5615_v63, %v5614_v60  ;;  %v3990_v63 = vld [vmem:[%s10343_s8 + $0xa0] sm:$0xff] }
 0x688   : > { %6937 = vmatpush1.bf16.msra.mxu0 %v6936_v6  ;;  %v5619_v6 = vld [vmem:[%s10343_s8 + $0x158] sm:$0xff] }
 0x689   : > { %6939 = vmatprep.subr.bf16.mxu0 %v6938_v10  ;;  %v6980_v10 = vpack.c.bf16 %v5619_v6, %v5618_v47  ;;  %v3994_v6 = vld [vmem:[%s10343_s8 + $0xc0] sm:$0xff] }
 0x68c   : > { %6941 = vmatpush1.bf16.msra.mxu0 %v6940_v18  ;;  %v5623_v18 = vld [vmem:[%s10343_s8 + $0x178] sm:$0xff] }
 0x68d   : > { %6943 = vmatprep.subr.bf16.mxu0 %v6942_v19  ;;  %v6986_v19 = vpack.c.bf16 %v5623_v18, %v5622_v17  ;;  %v5638_v18 = vld [vmem:[%s10343_s8 + $0x1c0] sm:$0xff] }
 0x690   : > { %6945 = vmatpush1.bf16.msra.mxu0 %v6944_v28  ;;  %v5627_v28 = vld [vmem:[%s10343_s8 + $0x198] sm:$0xff] }
 0x691   : > { %6947 = vmatprep.subr.bf16.mxu0 %v6946_v30  ;;  %v6992_v30 = vpack.c.bf16 %v5627_v28, %v5626_v23  ;;  %v5641_v23 = vld [vmem:[%s10343_s8 + $0x1d8] sm:$0xff] }
 0x694   : > { %6949 = vmatpush1.bf16.msra.mxu0 %v6948_v36  ;;  %v5631_v36 = vld [vmem:[%s10343_s8 + $0x1b8] sm:$0xff] }
 0x695   : > { %6951 = vmatprep.subr.bf16.mxu0 %v6950_v2  ;;  %v6998_v2 = vpack.c.bf16 %v5631_v36, %v5630_v61  ;;  %v5645_v61 = vld [vmem:[%s10343_s8 + $0x1f8] sm:$0xff] }
 0x697   : > { %3792 = vmatmul.mubr.f32.vlgmr.msra.gmra.mrb[26].mxu0 %v9250_v3  ;;  %v3880_v3 = vrot.slane %v3871_v42, %v2008_v62  ;;  %v7004_v42 = vpack.c.bf16 %v3973_v45, %v3972_v43  ;;  %v5651_v43 = vld [vmem:[%s10343_s8 + $0x228] sm:$0xff] }
 0x698   : > { %6953 = vmatpush1.bf16.msra.mxu0 %v6952_v5  ;;  %3862 = vmatprep.mubr.f32.mxu0 %v7346_v1 }
 0x699   : > { %6955 = vmatprep.subr.bf16.mxu0 %v6954_v35 }
 0x69c   : > { %6957 = vmatpush1.bf16.msra.mxu0 %v6956_v12 }
 0x69f   : > { %5596 = vmatmul.mubr.msk.f32.vlgmr.msra.gmra.mrb[26].mxu0 %vm2482_vm5, %v9284_v27  ;;  %v5604_v27 = vld [vmem:[%s10343_s8 + $0xe0] sm:$0xff] }
 0x6a0   : > { %3963 = vmatprep.mubr.f32.mxu0 %v7346_v1  ;;  %v6959_v62 = vpack.c.bf16 %v5605_v40, %v5604_v27  ;;  %v3978_v27 = vld [vmem:[%s10343_s8 + $0x40] sm:$0xff]  ;;  %v3979_v40 = vld [vmem:[%s10343_s8 + $0x48] sm:$0xff] }
 0x772   : > { %v3864_v44 = vpop.f32.mrb[26].mxu0 }
 0x773   : > { %v3883_v48 = vadd.f32 %v3876_v46, %v3864_v44  ;;  %v3866_v7 = vpop.f32.mrb[27].mxu0  ;;  %v3974_v46 = vld [vmem:[%s10343_s8 + $0x20] sm:$0xff] }
 0x774   : > { %v3884_v49 = vadd.f32 %v3880_v3, %v3866_v7  ;;  %v3975_v3 = vld [vmem:[%s10343_s8 + $0x28] sm:$0xff]  ;;  %v3977_v7 = vld [vmem:[%s10343_s8 + $0x38] sm:$0xff] }
 0x775   : > { %v9677_v51 = vmax.f32 %v3883_v48, 0.0  ;;  %v7007_v44 = vpack.c.bf16 %v3975_v3, %v3974_v46  ;;  %v3976_v48 = vld [vmem:[%s10343_s8 + $0x30] sm:$0xff]  ;;  %v5654_v3 = vld [vmem:[%s10343_s8 + $0x240] sm:$0xff] }
 0x776   : > { %v9675_v50 = vmax.f32 %v3884_v49, 0.0  ;;  %v7010_v49 = vpack.c.bf16 %v3977_v7, %v3976_v48  ;;  %v5656_v7 = vld [vmem:[%s10343_s8 + $0x250] sm:$0xff] }
 0x778   : > { %5597 = vmatprep.subr.msk.mxu0 %vm3892_vm6, %v9675_v50  ;;  %5601 = vmatprep.subr.msk.mxu1 %vm3892_vm6, %v9675_v50 }
 0x779   : > { %5598 = vmatpush1.msk.msra.mxu0 %vm3892_vm6, %v9677_v51  ;;  %5602 = vmatpush1.msk.msra.mxu1 %vm3892_vm6, %v9677_v51 }
 0x77a   : > { %5603 = vmatmul.mubr.msk.f32.vlgmr.msra.gmra.mrb[60].mxu1 %vm3888_vm7, %v5600_v58  ;;  %5599 = vmatmul.mubr.msk.f32.vlgmr.msra.gmra.mrb[28].mxu0 %vm3888_vm7, %v3887_v59  ;;  %v7013_v58 = vpack.c.bf16 %v3979_v40, %v3978_v27  ;;  %v3980_v59 = vld [vmem:[%s10343_s8 + $0x50] sm:$0xff]  ;;  %v5658_v40 = vld [vmem:[%s10343_s8 + $0x260] sm:$0xff] }
 0x77b   : > { %6958 = vmatprep.subr.bf16.mxu1 %v7344_v0 }
 0x77c   : > { %6960 = vmatpush1.bf16.msra.mxu1 %v6959_v62  ;;  %v3981_v62 = vld [vmem:[%s10343_s8 + $0x58] sm:$0xff] }
 0x77d   : > { %6961 = vmatprep.subr.bf16.mxu1 %v7344_v0  ;;  %v7016_v52 = vpack.c.bf16 %v3981_v62, %v3980_v59  ;;  %v5660_v62 = vld [vmem:[%s10343_s8 + $0x270] sm:$0xff] }
 0x780   : > { %6963 = vmatpush1.bf16.msra.mxu1 %v6962_v8  ;;  %v3983_v8 = vld [vmem:[%s10343_s8 + $0x68] sm:$0xff] }
 0x781   : > { %6964 = vmatprep.subr.bf16.mxu1 %v7344_v0  ;;  %v7019_v4 = vpack.c.bf16 %v3983_v8, %v3982_v38  ;;  %v5662_v8 = vld [vmem:[%s10343_s8 + $0x280] sm:$0xff] }
 0x784   : > { %6966 = vmatpush1.bf16.msra.mxu1 %v6965_v54  ;;  %v3985_v54 = vld [vmem:[%s10343_s8 + $0x78] sm:$0xff] }
 0x785   : > { %6967 = vmatprep.subr.bf16.mxu1 %v7344_v0  ;;  %v7022_v55 = vpack.c.bf16 %v3985_v54, %v3984_v53  ;;  %v5664_v54 = vld [vmem:[%s10343_s8 + $0x290] sm:$0xff] }
 0x788   : > { %6969 = vmatpush1.bf16.msra.mxu1 %v6968_v56  ;;  %v3987_v56 = vld [vmem:[%s10343_s8 + $0x88] sm:$0xff] }
 0x789   : > { %6970 = vmatprep.subr.bf16.mxu1 %v7344_v0  ;;  %v7025_v29 = vpack.c.bf16 %v3987_v56, %v3986_v26 }
 0x78c   : > { %6972 = vmatpush1.bf16.msra.mxu1 %v6971_v57  ;;  %v3989_v57 = vld [vmem:[%s10343_s8 + $0x98] sm:$0xff] }
 0x78d   : > { %6973 = vmatprep.subr.bf16.mxu1 %v7344_v0  ;;  %v7028_v60 = vpack.c.bf16 %v3989_v57, %v3988_v34 }
 0x790   : > { %6975 = vmatpush1.bf16.msra.mxu1 %v6974_v24  ;;  %v3991_v24 = vld [vmem:[%s10343_s8 + $0xa8] sm:$0xff] }
 0x791   : > { %6976 = vmatprep.subr.bf16.mxu1 %v7344_v0  ;;  %v7031_v25 = vpack.c.bf16 %v3991_v24, %v3990_v63 }
 0x794   : > { %6978 = vmatpush1.bf16.msra.mxu1 %v6977_v13  ;;  %v3993_v13 = vld [vmem:[%s10343_s8 + $0xb8] sm:$0xff] }
 0x795   : > { %6979 = vmatprep.subr.bf16.mxu1 %v7344_v0  ;;  %v7034_v47 = vpack.c.bf16 %v3993_v13, %v3992_v14  ;;  %v5672_v14 = vld [vmem:[%s10343_s8 + $0x2a8] sm:$0xff]  ;;  %v5667_v13 = vld [vmem:[%s10342_s7 + $0x6] sm:$0x3] }
 0x798   : > { %6981 = vmatpush1.bf16.msra.mxu1 %v6980_v10  ;;  %v3995_v10 = vld [vmem:[%s10343_s8 + $0xc8] sm:$0xff] }
 0x799   : > { %6982 = vmatprep.subr.bf16.mxu1 %v7344_v0  ;;  %v7037_v11 = vpack.c.bf16 %v3995_v10, %v3994_v6  ;;  %v5673_v6 = vld [vmem:[%s10343_s8 + $0x2b0] sm:$0xff]  ;;  %v5674_v10 = vld [vmem:[%s10343_s8 + $0x2b8] sm:$0xff] }
 0x79c   : > { %6984 = vmatpush1.bf16.msra.mxu1 %v6983_v16  ;;  %v3997_v16 = vld [vmem:[%s10343_s8 + $0xd8] sm:$0xff] }
 0x79d   : > { %6985 = vmatprep.subr.bf16.mxu1 %v7344_v0  ;;  %v7040_v17 = vpack.c.bf16 %v3997_v16, %v3996_v15  ;;  %v5675_v15 = vld [vmem:[%s10343_s8 + $0x2c0] sm:$0xff]  ;;  %v5676_v16 = vld [vmem:[%s10343_s8 + $0x2c8] sm:$0xff] }
 0x7a0   : > { %6987 = vmatpush1.bf16.msra.mxu1 %v6986_v19  ;;  %v5639_v19 = vld [vmem:[%s10343_s8 + $0x1c8] sm:$0xff] }
 0x7a1   : > { %6988 = vmatprep.subr.bf16.mxu1 %v7344_v0  ;;  %v7043_v21 = vpack.c.bf16 %v5639_v19, %v5638_v18  ;;  %v5677_v18 = vld [vmem:[%s10343_s8 + $0x2d0] sm:$0xff]  ;;  %v5678_v19 = vld [vmem:[%s10343_s8 + $0x2d8] sm:$0xff] }
 0x7a4   : > { %6990 = vmatpush1.bf16.msra.mxu1 %v6989_v22  ;;  %v5640_v22 = vld [vmem:[%s10343_s8 + $0x1d0] sm:$0xff] }
 0x7a5   : > { %6991 = vmatprep.subr.bf16.mxu1 %v7344_v0  ;;  %v7046_v28 = vpack.c.bf16 %v5641_v23, %v5640_v22  ;;  %v5680_v22 = vld [vmem:[%s10343_s8 + $0x2e8] sm:$0xff] }
 0x7a8   : > { %6993 = vmatpush1.bf16.msra.mxu1 %v6992_v30  ;;  %v5642_v30 = vld [vmem:[%s10343_s8 + $0x1e0] sm:$0xff] }
 0x7a9   : > { %6994 = vmatprep.subr.bf16.mxu1 %v7344_v0  ;;  %v7049_v32 = vpack.c.bf16 %v5643_v31, %v5642_v30  ;;  %v5682_v30 = vld [vmem:[%s10343_s8 + $0x2f8] sm:$0xff] }
 0x7ac   : > { %6996 = vmatpush1.bf16.msra.mxu1 %v6995_v33  ;;  %v5644_v33 = vld [vmem:[%s10343_s8 + $0x1f0] sm:$0xff] }
 0x7ad   : > { %6997 = vmatprep.subr.bf16.mxu1 %v7344_v0  ;;  %v7052_v36 = vpack.c.bf16 %v5645_v61, %v5644_v33  ;;  %v5684_v33 = vld [vmem:[%s10343_s8 + $0x308] sm:$0xff] }
 0x7b0   : > { %6999 = vmatpush1.bf16.msra.mxu1 %v6998_v2  ;;  %v5646_v2 = vld [vmem:[%s10343_s8 + $0x200] sm:$0xff] }
 0x7b1   : > { %7000 = vmatprep.subr.bf16.mxu1 %v7344_v0  ;;  %v7055_v39 = vpack.c.bf16 %v5647_v37, %v5646_v2  ;;  %v5686_v2 = vld [vmem:[%s10343_s8 + $0x318] sm:$0xff] }
 0x84d   : > { %v4069_v41 = vpop.f32.mrb[60].mxu1  ;;  %v9794_v5 = vpop.f32.mrb[28].mxu0 }
 0x84e   : > { %v4071_v35 = vpop.f32.mrb[61].mxu1  ;;  %v3967_v12 = vpop.f32.mrb[29].mxu0 }
 0x84f   : > { %5632 = vmatprep.mubr.msk.f32.mxu1 %vm4103_vm8, %v4071_v35  ;;  %v5650_v35 = vld [vmem:[%s10343_s8 + $0x220] sm:$0xff] }
 0x850   : > { %4172 = vmatmul.mubr.f32.vlgmr.msra.gmra.mrb[62].mxu1 %v4069_v41  ;;  %v5648_v41 = vld [vmem:[%s10343_s8 + $0x210] sm:$0xff]  ;;  %v7061_v45 = vpack.c.bf16 %v5651_v43, %v5650_v35  ;;  %v5690_v35 = vld [vmem:[%s10343_s8 + $0x338] sm:$0xff] }
 0x851   : > { %7002 = vmatpush1.bf16.msra.mxu1 %v7001_v9  ;;  %5633 = vmatprep.mubr.msk.f32.mxu1 %vm4103_vm8, %v3967_v12  ;;  %v5649_v9 = vld [vmem:[%s10343_s8 + $0x218] sm:$0xff]  ;;  %v5652_v12 = vld [vmem:[%s10343_s8 + $0x230] sm:$0xff] }
 0x852   : > { %7003 = vmatprep.subr.bf16.mxu1 %v7344_v0 }
 0x855   : > { %7005 = vmatpush1.bf16.msra.mxu1 %v7004_v42  ;;  %v5653_v42 = vld [vmem:[%s10343_s8 + $0x238] sm:$0xff] }
 0x856   : > { %7006 = vmatprep.subr.bf16.mxu1 %v7344_v0  ;;  %v7064_v46 = vpack.c.bf16 %v5653_v42, %v5652_v12  ;;  %v5692_v12 = vld [vmem:[%s10343_s8 + $0x348] sm:$0xff] }
 0x859   : > { %7008 = vmatpush1.bf16.msra.mxu1 %v7007_v44  ;;  %v5655_v44 = vld [vmem:[%s10343_s8 + $0x248] sm:$0xff] }
 0x85a   : > { %7009 = vmatprep.subr.bf16.mxu1 %v7344_v0  ;;  %v7067_v48 = vpack.c.bf16 %v5655_v44, %v5654_v3  ;;  %v5694_v3 = vld [vmem:[%s10343_s8 + $0x358] sm:$0xff] }
 0x85d   : > { %7011 = vmatpush1.bf16.msra.mxu1 %v7010_v49  ;;  %v5657_v49 = vld [vmem:[%s10343_s8 + $0x258] sm:$0xff] }
 0x85e   : > { %7012 = vmatprep.subr.bf16.mxu1 %v7344_v0  ;;  %v7070_v27 = vpack.c.bf16 %v5657_v49, %v5656_v7  ;;  %v5696_v7 = vld [vmem:[%s10343_s8 + $0x368] sm:$0xff] }
 0x861   : > { %7014 = vmatpush1.bf16.msra.mxu1 %v7013_v58  ;;  %v5659_v58 = vld [vmem:[%s10343_s8 + $0x268] sm:$0xff] }
 0x862   : > { %7015 = vmatprep.subr.bf16.mxu1 %v7344_v0  ;;  %v7073_v59 = vpack.c.bf16 %v5659_v58, %v5658_v40  ;;  %v5698_v40 = vld [vmem:[%s10343_s8 + $0x378] sm:$0xff] }
 0x865   : > { %7017 = vmatpush1.bf16.msra.mxu1 %v7016_v52  ;;  %v5661_v52 = vld [vmem:[%s10343_s8 + $0x278] sm:$0xff] }
 0x866   : > { %7018 = vmatprep.subr.bf16.mxu1 %v7344_v0  ;;  %v7076_v38 = vpack.c.bf16 %v5661_v52, %v5660_v62 }
 0x869   : > { %7020 = vmatpush1.bf16.msra.mxu1 %v7019_v4  ;;  %v5663_v4 = vld [vmem:[%s10343_s8 + $0x288] sm:$0xff] }
 0x86a   : > { %7021 = vmatprep.subr.bf16.mxu1 %v7344_v0  ;;  %v7079_v53 = vpack.c.bf16 %v5663_v4, %v5662_v8  ;;  %v5704_v4 = vld [vmem:[%s10343_s8 + $0x380] sm:$0xff] }
 0x86d   : > { %7023 = vmatpush1.bf16.msra.mxu1 %v7022_v55  ;;  %v5665_v55 = vld [vmem:[%s10343_s8 + $0x298] sm:$0xff] }
 0x86e   : > { %7024 = vmatprep.subr.bf16.mxu1 %v7344_v0  ;;  %v7082_v26 = vpack.c.bf16 %v5665_v55, %v5664_v54  ;;  %v5706_v55 = vld [vmem:[%s10343_s8 + $0x390] sm:$0xff] }
 0x871   : > { %7026 = vmatpush1.bf16.msra.mxu1 %v7025_v29 }
 0x872   : > { %7027 = vmatprep.subr.bf16.mxu1 %v7344_v0 }
 0x875   : > { %7029 = vmatpush1.bf16.msra.mxu1 %v7028_v60 }
 0x876   : > { %7030 = vmatprep.subr.bf16.mxu1 %v7344_v0 }
 0x879   : > { %7032 = vmatpush1.bf16.msra.mxu1 %v7031_v25  ;;  %v5671_v25 = vld [vmem:[%s10343_s8 + $0x2a0] sm:$0xff] }
 0x87a   : > { %7033 = vmatprep.subr.bf16.mxu1 %v7344_v0 }
 0x87d   : > { %7035 = vmatpush1.bf16.msra.mxu1 %v7034_v47  ;;  %v7085_v47 = vpack.c.bf16 %v5672_v14, %v5671_v25  ;;  %v5713_v25 = vld [vmem:[%s10343_s8 + $0x3c8] sm:$0xff] }
 0x87e   : > { %7036 = vmatprep.subr.bf16.mxu1 %v7344_v0 }
 0x881   : > { %7038 = vmatpush1.bf16.msra.mxu1 %v7037_v11  ;;  %v7088_v11 = vpack.c.bf16 %v5674_v10, %v5673_v6  ;;  %v5716_v10 = vld [vmem:[%s10343_s8 + $0x3e0] sm:$0xff] }
 0x882   : > { %7039 = vmatprep.subr.bf16.mxu1 %v7344_v0 }
 0x885   : > { %7041 = vmatpush1.bf16.msra.mxu1 %v7040_v17  ;;  %v7091_v17 = vpack.c.bf16 %v5676_v16, %v5675_v15  ;;  %v5718_v16 = vld [vmem:[%s10343_s8 + $0x3f0] sm:$0xff] }
 0x886   : > { %5635 = vmatprep.subr.msk.mxu1 %vm3892_vm6, %v9675_v50 }
 0x888   : > { %4245 = vmatmul.mubr.f32.vlgmr.msra.gmra.mrb[64].mxu1 %v9794_v5  ;;  %v7058_v5 = vpack.c.bf16 %v5649_v9, %v5648_v41  ;;  %v5688_v41 = vld [vmem:[%s10343_s8 + $0x328] sm:$0xff] }
 0x889   : > { %5636 = vmatpush1.msk.msra.mxu1 %vm3892_vm6, %v9677_v51  ;;  %4319 = vmatprep.mubr.f32.mxu1 %v7346_v1 }
 0x88a   : > { %7042 = vmatprep.subr.bf16.mxu1 %v7344_v0 }
 0x88c   : > { %5637 = vmatmul.mubr.msk.f32.vlgmr.msra.gmra.mrb[66].mxu1 %vm3888_vm7, %v5634_v20  ;;  %v7094_v20 = vpack.c.bf16 %v5678_v19, %v5677_v18  ;;  %v5720_v19 = vld [vmem:[%s10343_s8 + $0x400] sm:$0xff] }
 0x88d   : > { %7044 = vmatpush1.bf16.msra.mxu1 %v7043_v21  ;;  %v5679_v21 = vld [vmem:[%s10343_s8 + $0x2e0] sm:$0xff] }
 0x88e   : > { %7045 = vmatprep.subr.bf16.mxu1 %v7344_v0  ;;  %v7097_v23 = vpack.c.bf16 %v5680_v22, %v5679_v21  ;;  %v5722_v22 = vld [vmem:[%s10343_s8 + $0x410] sm:$0xff] }
 0x891   : > { %7047 = vmatpush1.bf16.msra.mxu1 %v7046_v28  ;;  %v5681_v28 = vld [vmem:[%s10343_s8 + $0x2f0] sm:$0xff] }
 0x892   : > { %7048 = vmatprep.subr.bf16.mxu1 %v7344_v0  ;;  %v7100_v31 = vpack.c.bf16 %v5682_v30, %v5681_v28  ;;  %v5724_v30 = vld [vmem:[%s10343_s8 + $0x420] sm:$0xff] }
 0x895   : > { %7050 = vmatpush1.bf16.msra.mxu1 %v7049_v32  ;;  %v5683_v32 = vld [vmem:[%s10343_s8 + $0x300] sm:$0xff] }
 0x896   : > { %7051 = vmatprep.subr.bf16.mxu1 %v7344_v0  ;;  %v7103_v61 = vpack.c.bf16 %v5684_v33, %v5683_v32  ;;  %v5726_v33 = vld [vmem:[%s10343_s8 + $0x430] sm:$0xff] }
 0x899   : > { %7053 = vmatpush1.bf16.msra.mxu1 %v7052_v36  ;;  %v5685_v36 = vld [vmem:[%s10343_s8 + $0x310] sm:$0xff] }
 0x89a   : > { %7054 = vmatprep.subr.bf16.mxu1 %v7344_v0  ;;  %v7106_v37 = vpack.c.bf16 %v5686_v2, %v5685_v36  ;;  %v5728_v2 = vld [vmem:[%s10343_s8 + $0x440] sm:$0xff] }
 0x89d   : > { %7056 = vmatpush1.bf16.msra.mxu1 %v7055_v39  ;;  %v5687_v39 = vld [vmem:[%s10343_s8 + $0x320] sm:$0xff] }
 0x89e   : > { %7057 = vmatprep.subr.bf16.mxu1 %v7344_v0  ;;  %v7109_v9 = vpack.c.bf16 %v5688_v41, %v5687_v39  ;;  %v5730_v41 = vld [vmem:[%s10343_s8 + $0x450] sm:$0xff] }
 0x8a1   : > { %7059 = vmatpush1.bf16.msra.mxu1 %v7058_v5  ;;  %v5689_v5 = vld [vmem:[%s10343_s8 + $0x330] sm:$0xff] }
 0x8a2   : > { %7060 = vmatprep.subr.bf16.mxu1 %v7344_v0  ;;  %v7112_v43 = vpack.c.bf16 %v5690_v35, %v5689_v5 }
 0x8a5   : > { %7062 = vmatpush1.bf16.msra.mxu1 %v7061_v45  ;;  %v5691_v45 = vld [vmem:[%s10343_s8 + $0x340] sm:$0xff] }
 0x8a6   : > { %7063 = vmatprep.subr.bf16.mxu1 %v7344_v0  ;;  %v7115_v42 = vpack.c.bf16 %v5692_v12, %v5691_v45  ;;  %v4797_v12 = vld [vmem:[%s10345_s10] sm:$0xff] }
 0x8a9   : > { %7065 = vmatpush1.bf16.msra.mxu1 %v7064_v46  ;;  %v5693_v46 = vld [vmem:[%s10343_s8 + $0x350] sm:$0xff] }
 0x8aa   : > { %7066 = vmatprep.subr.bf16.mxu1 %v7344_v0  ;;  %v7118_v44 = vpack.c.bf16 %v5694_v3, %v5693_v46 }
 0x8ad   : > { %7068 = vmatpush1.bf16.msra.mxu1 %v7067_v48  ;;  %v5695_v48 = vld [vmem:[%s10343_s8 + $0x360] sm:$0xff] }
 0x8ae   : > { %7069 = vmatprep.subr.bf16.mxu1 %v7344_v0  ;;  %v7121_v49 = vpack.c.bf16 %v5696_v7, %v5695_v48  ;;  %v4799_v48 = vld [vmem:[%s10345_s10 + $0x10] sm:$0xff]  ;;  %v4800_v7 = vld [vmem:[%s10345_s10 + $0x18] sm:$0xff] }
 0x8b1   : > { %7071 = vmatpush1.bf16.msra.mxu1 %v7070_v27  ;;  %v5697_v27 = vld [vmem:[%s10343_s8 + $0x370] sm:$0xff] }
 0x8b2   : > { %7072 = vmatprep.subr.bf16.mxu1 %v7344_v0  ;;  %v7124_v58 = vpack.c.bf16 %v5698_v40, %v5697_v27  ;;  %v4801_v27 = vld [vmem:[%s10345_s10 + $0x20] sm:$0xff]  ;;  %v4802_v40 = vld [vmem:[%s10345_s10 + $0x28] sm:$0xff] }
 0x8b5   : > { %7074 = vmatpush1.bf16.msra.mxu1 %v7073_v59 }
 0x8b6   : > { %7075 = vmatprep.subr.bf16.mxu1 %v7344_v0 }
 0x8b9   : > { %7077 = vmatpush1.bf16.msra.mxu1 %v7076_v38 }
 0x8ba   : > { %7078 = vmatprep.subr.bf16.mxu1 %v7344_v0 }
 0x8bd   : > { %7080 = vmatpush1.bf16.msra.mxu1 %v7079_v53  ;;  %v5705_v53 = vld [vmem:[%s10343_s8 + $0x388] sm:$0xff] }
 0x8be   : > { %7081 = vmatprep.subr.bf16.mxu1 %v7344_v0  ;;  %v7127_v54 = vpack.c.bf16 %v5705_v53, %v5704_v4 }
 0x8c1   : > { %7083 = vmatpush1.bf16.msra.mxu1 %v7082_v26  ;;  %v5707_v26 = vld [vmem:[%s10343_s8 + $0x398] sm:$0xff] }
 0x8c2   : > { %5668 = vmatprep.subr.msk.mxu1 %vm3892_vm6, %v9675_v50 }
 0x923   : > { %v4173_v56 = vpop.f32.mrb[62].mxu1 }
 0x924   : > { %v4175_v29 = vpop.f32.mrb[63].mxu1 }
 0x925   : > { %v5709_v29 = vld [vmem:[%s10343_s8 + $0x3a8] sm:$0xff] }
 0x95b   : > { %v4246_v34 = vpop.f32.mrb[64].mxu1 }
 0x95c   : > { %v9999_v57 = vadd.f32 %v4246_v34, %v4173_v56  ;;  %v4248_v60 = vpop.f32.mrb[65].mxu1  ;;  %v5708_v56 = vld [vmem:[%s10343_s8 + $0x3a0] sm:$0xff] }
 0x95d   : > { %v7133_v34 = vpack.c.bf16 %v5709_v29, %v5708_v56  ;;  %v5711_v60 = vld [vmem:[%s10343_s8 + $0x3b8] sm:$0xff]  ;;  %v5737_v56 = vld [vmem:[%s10345_s10 + $0x50] sm:$0xff] }
 0x95e   : > { %v5738_v29 = vld [vmem:[%s10345_s10 + $0x58] sm:$0xff] }
 0x95f   : > { %v4321_v63 = vpop.f32.mrb[66].mxu1 }
 0x960   : > { %v4323_v24 = vpop.f32.mrb[67].mxu1 }
 0x961   : > { %5666 = vmatprep.mubr.msk.f32.mxu1 %vm4103_vm8, %v4323_v24  ;;  %v5712_v24 = vld [vmem:[%s10343_s8 + $0x3c0] sm:$0xff] }
 0x962   : > { %4423 = vmatmul.mubr.f32.vlgmr.msra.gmra.mrb[68].mxu1 %v4321_v63  ;;  %v7139_v14 = vpack.c.bf16 %v5713_v25, %v5712_v24  ;;  %v5741_v24 = vld [vmem:[%s10345_s10 + $0x70] sm:$0xff] }
 0x963   : > { %5669 = vmatpush1.msk.msra.mxu1 %vm3892_vm6, %v9677_v51  ;;  %4498 = vmatprep.mubr.f32.mxu1 %v7346_v1 }
 0x964   : > { %7084 = vmatprep.subr.bf16.mxu1 %v7344_v0 }
 0x966   : > { %5670 = vmatmul.mubr.msk.f32.vlgmr.msra.gmra.mrb[70].mxu1 %vm3888_vm7, %v5667_v13  ;;  %v5714_v13 = vld [vmem:[%s10343_s8 + $0x3d0] sm:$0xff] }
 0x967   : > { %7086 = vmatpush1.bf16.msra.mxu1 %v7085_v47  ;;  %v5715_v47 = vld [vmem:[%s10343_s8 + $0x3d8] sm:$0xff] }
 0x968   : > { %7087 = vmatprep.subr.bf16.mxu1 %v7344_v0  ;;  %v7142_v6 = vpack.c.bf16 %v5715_v47, %v5714_v13  ;;  %v4796_v13 = vld [vmem:[%s10346_s11] sm:$0x1] }
 0x96b   : > { %7089 = vmatpush1.bf16.msra.mxu1 %v7088_v11  ;;  %v5717_v11 = vld [vmem:[%s10343_s8 + $0x3e8] sm:$0xff] }
 0x96c   : > { %7090 = vmatprep.subr.bf16.mxu1 %v7344_v0  ;;  %v7145_v15 = vpack.c.bf16 %v5717_v11, %v5716_v10 }
 0x96f   : > { %7092 = vmatpush1.bf16.msra.mxu1 %v7091_v17  ;;  %v5719_v17 = vld [vmem:[%s10343_s8 + $0x3f8] sm:$0xff] }
 0x970   : > { %7093 = vmatprep.subr.bf16.mxu1 %v7344_v0  ;;  %v7148_v18 = vpack.c.bf16 %v5719_v17, %v5718_v16 }
 0x973   : > { %7095 = vmatpush1.bf16.msra.mxu1 %v7094_v20  ;;  %v5721_v20 = vld [vmem:[%s10343_s8 + $0x408] sm:$0xff] }
 0x974   : > { %7096 = vmatprep.subr.bf16.mxu1 %v7344_v0  ;;  %v7151_v21 = vpack.c.bf16 %v5721_v20, %v5720_v19 }
 0x977   : > { %7098 = vmatpush1.bf16.msra.mxu1 %v7097_v23  ;;  %v5723_v23 = vld [vmem:[%s10343_s8 + $0x418] sm:$0xff] }
 0x978   : > { %7099 = vmatprep.subr.bf16.mxu1 %v7344_v0  ;;  %v7154_v28 = vpack.c.bf16 %v5723_v23, %v5722_v22 }
 0x97b   : > { %7101 = vmatpush1.bf16.msra.mxu1 %v7100_v31  ;;  %v5725_v31 = vld [vmem:[%s10343_s8 + $0x428] sm:$0xff] }
 0x97c   : > { %7102 = vmatprep.subr.bf16.mxu1 %v7344_v0  ;;  %v7157_v32 = vpack.c.bf16 %v5725_v31, %v5724_v30 }
 0x97f   : > { %7104 = vmatpush1.bf16.msra.mxu1 %v7103_v61  ;;  %v5727_v61 = vld [vmem:[%s10343_s8 + $0x438] sm:$0xff] }
 0x980   : > { %7105 = vmatprep.subr.bf16.mxu1 %v7344_v0  ;;  %v7160_v36 = vpack.c.bf16 %v5727_v61, %v5726_v33 }
 0x983   : > { %7107 = vmatpush1.bf16.msra.mxu1 %v7106_v37  ;;  %v5729_v37 = vld [vmem:[%s10343_s8 + $0x448] sm:$0xff] }
 0x984   : > { %7108 = vmatprep.subr.bf16.mxu1 %v7344_v0  ;;  %v7163_v39 = vpack.c.bf16 %v5729_v37, %v5728_v2 }
 0x987   : > { %7110 = vmatpush1.bf16.msra.mxu1 %v7109_v9  ;;  %v5731_v9 = vld [vmem:[%s10343_s8 + $0x458] sm:$0xff] }
 0x988   : > { %7111 = vmatprep.subr.bf16.mxu1 %v7344_v0  ;;  %v7166_v5 = vpack.c.bf16 %v5731_v9, %v5730_v41 }
 0x98b   : > { %7113 = vmatpush1.bf16.msra.mxu1 %v7112_v43 }
 0x98c   : > { %7114 = vmatprep.subr.bf16.mxu1 %v7344_v0 }
 0x98f   : > { %7116 = vmatpush1.bf16.msra.mxu1 %v7115_v42  ;;  %v4798_v42 = vld [vmem:[%s10345_s10 + $0x8] sm:$0xff] }
 0x990   : > { %7117 = vmatprep.subr.bf16.mxu1 %v7344_v0  ;;  %v7169_v3 = vpack.c.bf16 %v4798_v42, %v4797_v12 }
 0x993   : > { %7119 = vmatpush1.bf16.msra.mxu1 %v7118_v44 }
 0x994   : > { %7120 = vmatprep.subr.bf16.mxu1 %v7344_v0 }
 0x997   : > { %7122 = vmatpush1.bf16.msra.mxu1 %v7121_v49  ;;  %v7172_v49 = vpack.c.bf16 %v4800_v7, %v4799_v48 }
 0x998   : > { %7123 = vmatprep.subr.bf16.mxu1 %v7344_v0 }
 0x99b   : > { %7125 = vmatpush1.bf16.msra.mxu1 %v7124_v58  ;;  %v7175_v58 = vpack.c.bf16 %v4802_v40, %v4801_v27 }
 0x99c   : > { %5701 = vmatprep.subr.msk.mxu1 %vm3892_vm6, %v9675_v50  ;;  %v5700_v50 = vld [vmem:[%s10342_s7 + $0x8] sm:$0x3] }
 0xa35   : > { %v4424_v59 = vpop.f32.mrb[68].mxu1 }
 0xa36   : > { %v10110_v62 = vadd.f32 %v4424_v59, %v9999_v57  ;;  %v4426_v52 = vpop.f32.mrb[69].mxu1  ;;  %v5710_v57 = vld [vmem:[%s10343_s8 + $0x3b0] sm:$0xff] }
 0xa37   : > { %v7136_v63 = vpack.c.bf16 %v5711_v60, %v5710_v57  ;;  %v4803_v59 = vld [vmem:[%s10345_s10 + $0x30] sm:$0xff]  ;;  %v5739_v57 = vld [vmem:[%s10345_s10 + $0x60] sm:$0xff]  ;;  %v5740_v60 = vld [vmem:[%s10345_s10 + $0x68] sm:$0xff] }
 0xa39   : > { %v4500_v38 = vpop.f32.mrb[70].mxu1 }
 0xa3a   : > { %v4502_v8 = vpop.f32.mrb[71].mxu1 }
 0xa3b   : > { %5699 = vmatprep.mubr.msk.f32.mxu1 %vm4103_vm8, %v4502_v8  ;;  %v5733_v8 = vld [vmem:[%s10344_s9] ss:$0 sm:$0xff] }
 0xa3c   : > { %4602 = vmatmul.mubr.f32.vlgmr.msra.gmra.mrb[72].mxu1 %v4500_v38 }
 0xa3d   : > { %5702 = vmatpush1.msk.msra.mxu1 %vm3892_vm6, %v9677_v51  ;;  %4677 = vmatprep.mubr.f32.mxu1 %v7346_v1  ;;  %v7130_v51 = vpack.c.bf16 %v5707_v26, %v5706_v55 }
 0xa3e   : > { %7126 = vmatprep.subr.bf16.mxu1 %v7344_v0 }
 0xa40   : > { %5703 = vmatmul.mubr.msk.f32.vlgmr.msra.gmra.mrb[74].mxu1 %vm3888_vm7, %v5700_v50  ;;  %v5735_v50 = vld [vmem:[%s10345_s10 + $0x40] sm:$0xff] }
 0xa41   : > { %7128 = vmatpush1.bf16.msra.mxu1 %v7127_v54  ;;  %v5736_v54 = vld [vmem:[%s10345_s10 + $0x48] sm:$0xff] }
 0xa42   : > { %7129 = vmatprep.subr.bf16.mxu1 %v7344_v0  ;;  %v7181_v26 = vpack.c.bf16 %v5736_v54, %v5735_v50 }
 0xa45   : > { %7131 = vmatpush1.bf16.msra.mxu1 %v7130_v51 }
 0xa46   : > { %7132 = vmatprep.subr.bf16.mxu1 %v7344_v0 }
 0xa49   : > { %7134 = vmatpush1.bf16.msra.mxu1 %v7133_v34  ;;  %v7184_v34 = vpack.c.bf16 %v5738_v29, %v5737_v56 }
 0xa4a   : > { %7135 = vmatprep.subr.bf16.mxu1 %v7344_v0 }
 0xa4d   : > { %7137 = vmatpush1.bf16.msra.mxu1 %v7136_v63  ;;  %v7187_v63 = vpack.c.bf16 %v5740_v60, %v5739_v57 }
 0xa4e   : > { %7138 = vmatprep.subr.bf16.mxu1 %v7344_v0 }
 0xa51   : > { %7140 = vmatpush1.bf16.msra.mxu1 %v7139_v14 }
 0xa52   : > { %7141 = vmatprep.subr.bf16.mxu1 %v7344_v0 }
 0xa55   : > { %7143 = vmatpush1.bf16.msra.mxu1 %v7142_v6 }
 0xa56   : > { %7144 = vmatprep.subr.bf16.mxu1 %v7344_v0 }
 0xa59   : > { %7146 = vmatpush1.bf16.msra.mxu1 %v7145_v15 }
 0xa5a   : > { %7147 = vmatprep.subr.bf16.mxu1 %v7344_v0 }
 0xa5d   : > { %7149 = vmatpush1.bf16.msra.mxu1 %v7148_v18 }
 0xa5e   : > { %7150 = vmatprep.subr.bf16.mxu1 %v7344_v0 }
 0xa61   : > { %7152 = vmatpush1.bf16.msra.mxu1 %v7151_v21 }
 0xa62   : > { %7153 = vmatprep.subr.bf16.mxu1 %v7344_v0 }
 0xa65   : > { %7155 = vmatpush1.bf16.msra.mxu1 %v7154_v28 }
 0xa66   : > { %7156 = vmatprep.subr.bf16.mxu1 %v7344_v0 }
 0xa69   : > { %7158 = vmatpush1.bf16.msra.mxu1 %v7157_v32 }
 0xa6a   : > { %7159 = vmatprep.subr.bf16.mxu1 %v7344_v0 }
 0xa6d   : > { %7161 = vmatpush1.bf16.msra.mxu1 %v7160_v36 }
 0xa6e   : > { %7162 = vmatprep.subr.bf16.mxu1 %v7344_v0 }
 0xa71   : > { %7164 = vmatpush1.bf16.msra.mxu1 %v7163_v39 }
 0xa72   : > { %7165 = vmatprep.subr.bf16.mxu1 %v7344_v0 }
 0xa75   : > { %7167 = vmatpush1.bf16.msra.mxu1 %v7166_v5 }
 0xa76   : > { %7168 = vmatprep.subr.bf16.mxu1 %v7344_v0 }
 0xb0f   : > { %v4603_v35 = vpop.f32.mrb[72].mxu1 }
 0xb10   : > { %v4607_v43 = vadd.f32 %v4603_v35, %v10110_v62  ;;  %v4605_v45 = vpop.f32.mrb[73].mxu1  ;;  %v4804_v62 = vld [vmem:[%s10345_s10 + $0x38] sm:$0xff] }
 0xb11   : > { %v7178_v52 = vpack.c.bf16 %v4804_v62, %v4803_v59 }
 0xb13   : > { %v4679_v46 = vpop.f32.mrb[74].mxu1 }
 0xb14   : > { %v4681_v44 = vpop.f32.mrb[75].mxu1 }
 0xb15   : > { %5732 = vmatprep.mubr.msk.f32.mxu1 %vm4103_vm8, %v4681_v44 }
 0xb16   : > { %4781 = vmatmul.mubr.f32.vlgmr.msra.gmra.mrb[76].mxu1 %v4679_v46 }
 0xb17   : > { %7170 = vmatpush3.bf16.msra.mxu1 %v7169_v3  ;;  %6266 = vmatprep.mubr.msk.f32.mxu1 %vm7345_vm0, %v7346_v1 }
 0xb18   : > { %7171 = vmatprep.subr.bf16.mxu1 %v7344_v0 }
 0xb1b   : > { %7173 = vmatpush3.bf16.msra.mxu1 %v7172_v49 }
 0xb1c   : > { %7174 = vmatprep.subr.bf16.mxu1 %v7344_v0 }
 0xb1f   : > { %7176 = vmatpush3.bf16.msra.mxu1 %v7175_v58 }
 0xb20   : > { %7177 = vmatprep.subr.bf16.mxu1 %v7344_v0 }
 0xb23   : > { %7179 = vmatpush3.bf16.msra.mxu1 %v7178_v52 }
 0xb24   : > { %7180 = vmatprep.subr.bf16.mxu1 %v7344_v0 }
 0xbe9   : > { %v4782_v38 = vpop.f32.mrb[76].mxu1 }
 0xbea   : > { %v4786_v4 = vadd.f32 %v4782_v38, %v4607_v43  ;;  %v4784_v53 = vpop.f32.mrb[77].mxu1 }
 0xbec   : > { %v4794_v55 = vadd.f32 %v5733_v8, %v4786_v4 }
 0xbee   : > { %v4795_v51 = vmax.f32 %v4794_v55, 0.0 }
 0xbf0   : > { %6267 = vmatmul.mubr.msk.f32.vlgmr.msra.gmra.mrb[78].mxu1 %vm4805_vm9, %v4795_v51  ;;  %v4889_v14 = vrot.slane %v4795_v51, 1 }
 0xbf1   : > { %7182 = vmatpush3.bf16.msra.mxu1 %v7181_v26  ;;  %6285 = vmatprep.mubr.msk.f32.mxu1 %vm7345_vm0, %v7346_v1  ;;  %v5742_v1 = vld [vmem:[%s10345_s10 + $0x78] sm:$0xff] }
 0xbf2   : > { %7183 = vmatprep.subr.bf16.mxu1 %v7344_v0  ;;  %v7190_v25 = vpack.c.bf16 %v5742_v1, %v5741_v24 }
 0xbf5   : > { %7185 = vmatpush3.bf16.msra.mxu1 %v7184_v34 }
 0xbf6   : > { %7186 = vmatprep.subr.bf16.mxu1 %v7344_v0 }
 0xbf9   : > { %7188 = vmatpush3.bf16.msra.mxu1 %v7187_v63 }
 0xbfa   : > { %7189 = vmatprep.subr.bf16.mxu1 %v7344_v0 }
 0xbfd   : > { %7191 = vmatpush3.bf16.msra.mxu1 %v7190_v25 }
 0xc00   : > { %6286 = vmatmul.mubr.msk.f32.vlgmr.msra.gmra.mrb[78].mxu1 %vm4805_vm9, %v4889_v14 }
 0xcd3   : > { %v4958_v47 = vpop.f32.mrb[78].mxu1 }
 0xcd4   : > { %v7192_v6 = vadd.f32 %v4958_v47, %v4796_v13  ;;  %v6287_v10 = vpop.f32.mrb[79].mxu1 }
 0xcd6   : > { %4964 = vst.msk [vmem:[%s406_s16] sm:$0x1] %vm4963_vm10, %v7192_v6 }
 0xcd7   : > { %7293 = shalt.err (!%p7290_p3)
}
 0xcd8   : > { %s7294_s28 = scalar_lea.hbm %s10293_s27, 16  ;;  %s7298_s15 = scalar_lea.hbm %s10347_s12, 32 }
 0xcd9   : > { %p7295_p4 = scmp.ne.s32.totalorder %s10293_s27, %s7294_s28  ;;  %p7299_p9 = scmp.lt.u32.totalorder %s10293_s27, %s10347_s12 }
 0xcda   : > { %p7300_p10 = scmp.lt.u32.totalorder %s7298_s15, %s7294_s28  ;;  %p7302_p12 = scmp.lt.u32.totalorder %s7294_s28, %s10293_s27 }
 0xcdb   : > { %p7296_p7 = pnand %p7295_p4, %p7451_p5 }
 0xcdc   : > { %p7301_p11 = por %p7300_p10, %p7299_p9 }
 0xcdd   : > { %p7297_p8 = pneg %p7296_p7 }
 0xcde   : > { %p7303_p13 = por %p7302_p12, %p7301_p11 }
 0xce0   : > { %p7304_p0 = pnand %p7303_p13, %p7297_p8 }
 0xce2   : > { %7307 = shalt.err (!%p7304_p0)
}
 0xce3   : > { %7237 = dma.vmem_to_hbm [thread:$0]  (%p7451_p5), %s10295_s0, 16, %s10293_s27, %s4966_s17  }
 0xce4 PF: > { %p7243_p1 = scmp.ge.s32.totalorder %s7342_s24, 2  ;;  %s4990_s23 = sand.u32 1, %s7330_s21  }
 0xce5   : > { %s4991_s18 = scalar_lea.sflag [#allocation3], %s4990_s23 }
 0xce6   : > { %p7240_p2 = pnand %p7243_p1, %p7455_p6 }
 0xce8   : > { %7325 = dma.done.wait (!%p7240_p2), %s4991_s18, 16  }
 0xce9   : > { %7327 = vsyncadd (!%p7240_p2), %s4991_s18, 4294967280  ;;  %s10358_s24 = sld [smem:[#allocation6_spill]]  ;;  %s10359_s25 = sld [smem:[#allocation5_spill]] }
 0xcea   : > { %s10360_s23 = sld [smem:[#allocation7_spill]]  ;;  %s10361_s21 = smov %s7334_s22 }
 0xcef   : > { %p22_p3 = scmp.ge.s32.totalorder %s10358_s24, 4   ;;  %s10362_s22 = smov %s10359_s25 }
 0xcf1   :  { %24 = sbr.rel (!%p22_p3) target bundleno = 5 (0x5), region = 128 }
 0xcf8   :  { %4995 = vsyncpa [#allocation3], 1 }
 0xcf9   :  { %4997 = vsyncpa [#allocation3 + $0x1], 1 }

</bundles_post_ra>
